<compile_context>
chip_gen: v7x
topology: tpu7x:2x2x1
jax: 0.10.0
libtpu: 0.0.40
codegen_flags: <defaults>
</compile_context>

<pallas_src>
import functools
import math

import jax
import jax.numpy as jnp
from jax.experimental import pallas as pl
from jax.experimental.pallas import tpu as pltpu


# -----------------------------------------------------------------------------
# PositionalEncoder._buildMatrix — parameter setup, plain JAX, built once.
# -----------------------------------------------------------------------------
def build_positional_matrix(input_dimension: int, maximum_length: int = 20,
                            add: bool = True) -> jnp.ndarray:
    if not add:
        return jnp.zeros((maximum_length, input_dimension), dtype=jnp.float32)
    position = jnp.arange(0, maximum_length, 1).astype(jnp.float32).reshape(maximum_length, 1)
    idx = jnp.arange(0, input_dimension, 1) * 2 / input_dimension
    idx = jnp.power(1000.0, idx)
    idx = jnp.power(idx, -1.0).astype(jnp.float32).reshape(1, input_dimension)
    matrix = jnp.matmul(position, idx)
    # Faithful to the PyTorch code: sin applied to even ROWS, cos to odd ROWS.
    matrix = matrix.at[0::2].set(jnp.sin(matrix[0::2]))
    matrix = matrix.at[1::2].set(jnp.cos(matrix[1::2]))
    return matrix


# -----------------------------------------------------------------------------
# Kernel 1: fused TransformerEncoderLayer (with the PE add folded in).
#   Attention is computed across the num_segments axis within each batch element
#   (the module docstring's intended semantics).
# TODO(synk): PyTorch's TransformerEncoderLayer default batch_first=False would
#             literally attend across dim 0 of the (batch, segments, D) input;
#             transpose x in the wrapper if bug-for-bug parity with that quirk is required.
# -----------------------------------------------------------------------------
def _make_encoder_layer_kernel(B: int, S: int, H: int, D: int):
    dh = D // H
    scale = 1.0 / math.sqrt(dh)
    f32 = jnp.float32

    def _layer_norm(v, g, b):  # PyTorch LayerNorm, eps=1e-5, biased variance
        mu = jnp.mean(v, axis=-1, keepdims=True)
        var = jnp.mean(jnp.square(v - mu), axis=-1, keepdims=True)
        return (v - mu) * jax.lax.rsqrt(var + 1e-5) * g + b

    def kernel(x_ref, pe_ref,
               wq_ref, bq_ref, wk_ref, bk_ref, wv_ref, bv_ref,
               wo_ref, bo_ref, g1_ref, be1_ref,
               w1_ref, b1_ref, w2_ref, b2_ref, g2_ref, be2_ref,
               o_ref,
               q_scr, k_scr, v_scr, attn_scr):
        # Fused positional-encoding add on the lane-dense (B*S, D) tile.
        x = x_ref[...].astype(f32) + pe_ref[...].astype(f32)

        # QKV projections on the MXU: (B*S, D) @ (D, D).
        q_scr[...] = jnp.dot(x, wq_ref[...], preferred_element_type=f32) + bq_ref[...]
        k_scr[...] = jnp.dot(x, wk_ref[...], preferred_element_type=f32) + bk_ref[...]
        v_scr[...] = jnp.dot(x, wv_ref[...], preferred_element_type=f32) + bv_ref[...]

        # Hoist the per-head out-projection blocks (loaded once each).
        wo_blocks = [wo_ref[h * dh:(h + 1) * dh, :] for h in range(H)]

        # Scaled dot-product attention per (batch, head); tiny, statically unrolled.
        # concat-over-heads followed by out_proj == sum_h ctx_h @ Wo[h-block].
        for b in range(B):
            r0 = b * S
            attn_b = jnp.zeros((S, D), f32)
            for h in range(H):
                c0 = h * dh
                qh = q_scr[r0:r0 + S, c0:c0 + dh]
                kh = k_scr[r0:r0 + S, c0:c0 + dh]
                vh = v_scr[r0:r0 + S, c0:c0 + dh]
                s = jax.lax.dot_general(  # q @ k^T without materializing k^T
                    qh, kh, (((1,), (1,)), ((), ())),
                    preferred_element_type=f32) * scale
                s = s - jnp.max(s, axis=-1, keepdims=True)
                p = jnp.exp(s)
                a = p / jnp.sum(p, axis=-1, keepdims=True)
                ctx = jnp.dot(a, vh, preferred_element_type=f32)          # (S, dh)
                attn_b = attn_b + jnp.dot(ctx, wo_blocks[h],
                                          preferred_element_type=f32)     # (S, D)
            attn_scr[r0:r0 + S, :] = attn_b

        attn = attn_scr[...] + bo_ref[...]

        # Residual + LayerNorm, FFN(ReLU), residual + LayerNorm (eval: dropout = id).
        y = _layer_norm(x + attn, g1_ref[...], be1_ref[...])
        ff = jnp.maximum(jnp.dot(y, w1_ref[...], preferred_element_type=f32)
                         + b1_ref[...], 0.0)
        ff = jnp.dot(ff, w2_ref[...], preferred_element_type=f32) + b2_ref[...]
        y = _layer_norm(y + ff, g2_ref[...], be2_ref[...])
        o_ref[...] = y.astype(o_ref.dtype)

    return kernel


def encoder_layer_forward(x2, pe2, lp, *, batch, seq, num_heads):
    """x2, pe2: (batch*seq, D) lane-dense activations; lp: layer parameter dict."""
    BS, D = x2.shape
    kernel = _make_encoder_layer_kernel(batch, seq, num_heads, D)
    return pl.pallas_call(
        kernel,
        out_shape=jax.ShapeDtypeStruct((BS, D), x2.dtype),
        scratch_shapes=[pltpu.VMEM((BS, D), jnp.float32) for _ in range(4)],
    )(x2, pe2,
      lp['wq'], lp['bq'], lp['wk'], lp['bk'], lp['wv'], lp['bv'],
      lp['wo'], lp['bo'], lp['ln1_g'], lp['ln1_b'],
      lp['w_ff1'], lp['b_ff1'], lp['w_ff2'], lp['b_ff2'],
      lp['ln2_g'], lp['ln2_b'])


# -----------------------------------------------------------------------------
# Kernel 2: fused classifier head (_feedForward): Linear -> ReLU -> ... -> Linear.
# -----------------------------------------------------------------------------
def _make_mlp_head_kernel(num_layers: int):
    def kernel(*refs):
        x_ref, o_ref = refs[0], refs[-1]
        wb = refs[1:-1]
        h = x_ref[...].astype(jnp.float32)
        for i in range(num_layers):
            h = jnp.dot(h, wb[2 * i][...], preferred_element_type=jnp.float32) + wb[2 * i + 1][...]
            if i != num_layers - 1:
                h = jnp.maximum(h, 0.0)  # ReLU on every layer but the last
            # TODO(synk): training-mode nn.Dropout after inner layers (eval-mode identity here).
        o_ref[...] = h.astype(o_ref.dtype)
    return kernel


def mlp_head_forward(x2, head_layers):
    flat = []
    for w, b in head_layers:
        flat += [w, b]
    out_dim = head_layers[-1][0].shape[1]
    return pl.pallas_call(
        _make_mlp_head_kernel(len(head_layers)),
        out_shape=jax.ShapeDtypeStruct((x2.shape[0], out_dim), x2.dtype),
    )(x2, *flat)


# -----------------------------------------------------------------------------
# Full module forward.
# -----------------------------------------------------------------------------
def multi_head_attention_classifier_forward(x, params, *, num_heads):
    B, S, D = x.shape
    pe = params['pe']
    if S > pe.shape[0] or D > pe.shape[1]:
        raise ValueError(
            f"num_segments={S} / input_dim={D} exceed positional-encoding matrix "
            f"{pe.shape}; PositionalEncoder(maximum_length) is a hard limit.")
    if D % num_heads != 0:
        raise ValueError("input_size must be divisible by attention_heads")

    # Lane-dense activations: (B, S, D) -> (B*S, D) (row-major no-op reshape).
    h = x.reshape(B * S, D)
    # Pre-cast + pre-broadcast the PE slice so the kernel does a plain 2-D add.
    pe2 = jnp.tile(pe[:S, :D].astype(x.dtype), (B, 1))

    for li, lp in enumerate(params['encoder_layers']):
        add = pe2 if li == 0 else jnp.zeros_like(h)  # PE only before the first layer
        h = encoder_layer_forward(h, add, lp, batch=B, seq=S, num_heads=num_heads)

    # _squeeze, mode='all': (B, S, D) -> (B, S*D) — row-major no-op reshape.
    # TODO(synk): mode='avg' (AvgPool1d squeeze) path is not implemented.
    h = h.reshape(B, S * D)
    return mlp_head_forward(h, params['head'])


# -----------------------------------------------------------------------------
# Parameters + pure-JAX reference (for correctness checking only).
# -----------------------------------------------------------------------------
def init_params(key, *, d_model, ffn_dim, num_encoder_layers, num_frames,
                pe_max_len, add_positional, hidden_sizes, output_size):
    keys = iter(jax.random.split(key, 128))

    def nrm(shape, scale):
        return (scale * jax.random.normal(next(keys), shape)).astype(jnp.float32)

    enc_layers = []
    for _ in range(num_encoder_layers):
        enc_layers.append(dict(
            wq=nrm((d_model, d_model), 0.05), bq=nrm((1, d_model), 0.02),
            wk=nrm((d_model, d_model), 0.05), bk=nrm((1, d_model), 0.02),
            wv=nrm((d_model, d_model), 0.05), bv=nrm((1, d_model), 0.02),
            wo=nrm((d_model, d_model), 0.05), bo=nrm((1, d_model), 0.02),
            ln1_g=1.0 + nrm((1, d_model), 0.05), ln1_b=nrm((1, d_model), 0.05),
            w_ff1=nrm((d_model, ffn_dim), 0.05), b_ff1=nrm((1, ffn_dim), 0.02),
            w_ff2=nrm((ffn_dim, d_model), 0.05), b_ff2=nrm((1, d_model), 0.02),
            ln2_g=1.0 + nrm((1, d_model), 0.05), ln2_b=nrm((1, d_model), 0.05),
        ))

    sizes = [d_model * num_frames] + list(hidden_sizes) + [output_size]
    head = [(nrm((sizes[i], sizes[i + 1]), 0.1), nrm((1, sizes[i + 1]), 0.05))
            for i in range(len(sizes) - 1)]

    pe = build_positional_matrix(d_model, pe_max_len, add=add_positional)
    return dict(pe=pe, encoder_layers=enc_layers, head=head)


def reference_forward(x, params, *, num_heads):
    B, S, D = x.shape
    H = num_heads
    dh = D // H
    scale = 1.0 / math.sqrt(dh)

    def ln(u, g, b):
        mu = jnp.mean(u, axis=-1, keepdims=True)
        var = jnp.mean(jnp.square(u - mu), axis=-1, keepdims=True)
        return (u - mu) * jax.lax.rsqrt(var + 1e-5) * g + b

    h = x + params['pe'][:S, :D][None].astype(x.dtype)
    for lp in params['encoder_layers']:
        q = jnp.einsum('bsd,de->bse', h, lp['wq']) + lp['bq'][0]
        k = jnp.einsum('bsd,de->bse', h, lp['wk']) + lp['bk'][0]
        v = jnp.einsum('bsd,de->bse', h, lp['wv']) + lp['bv'][0]
        q = q.reshape(B, S, H, dh).transpose(0, 2, 1, 3)
        k = k.reshape(B, S, H, dh).transpose(0, 2, 1, 3)
        v = v.reshape(B, S, H, dh).transpose(0, 2, 1, 3)
        s = jnp.einsum('bhid,bhjd->bhij', q, k) * scale
        a = jax.nn.softmax(s, axis=-1)
        ctx = jnp.einsum('bhij,bhjd->bhid', a, v).transpose(0, 2, 1, 3).reshape(B, S, D)
        attn = jnp.einsum('bsd,de->bse', ctx, lp['wo']) + lp['bo'][0]
        y = ln(h + attn, lp['ln1_g'][0], lp['ln1_b'][0])
        ff = jnp.maximum(jnp.einsum('bsd,df->bsf', y, lp['w_ff1']) + lp['b_ff1'][0], 0.0)
        ff = jnp.einsum('bsf,fd->bsd', ff, lp['w_ff2']) + lp['b_ff2'][0]
        h = ln(y + ff, lp['ln2_g'][0], lp['ln2_b'][0])
    z = h.reshape(B, S * D)
    for i, (w, b) in enumerate(params['head']):
        z = z @ w + b[0]
        if i != len(params['head']) - 1:
            z = jnp.maximum(z, 0.0)
    return z


if __name__ == "__main__":
    # Small shapes consistent with the module (scaled down from input_size=2048):
    #   batch=4, num_segments=num_frames=5 (<= PositionalEncoder maximum_length=6),
    #   input_size=256, attention_heads=2 (head_dim=128), forward_hidden_size=512,
    #   encoder_layers=1, classifier hidden_sizes=[128, 64], output_size=8,
    #   mode='all', add_positional=True.
    B, S, D = 4, 5, 256
    H, FFN = 2, 512
    NUM_LAYERS = 1
    HIDDEN = [128, 64]
    OUT = 8
    PE_MAX_LEN = 6

    root = jax.random.PRNGKey(0)
    kx, kp = jax.random.split(root)
    x = jax.random.normal(kx, (B, S, D), dtype=jnp.float32)
    params = init_params(kp, d_model=D, ffn_dim=FFN, num_encoder_layers=NUM_LAYERS,
                         num_frames=S, pe_max_len=PE_MAX_LEN, add_positional=True,
                         hidden_sizes=HIDDEN, output_size=OUT)

    fwd = jax.jit(functools.partial(multi_head_attention_classifier_forward, num_heads=H))
    out = jax.block_until_ready(fwd(x, params))

    ref = jax.block_until_ready(reference_forward(x, params, num_heads=H))

    assert out.shape == (B, OUT) and out.dtype == x.dtype
    max_err = float(jnp.max(jnp.abs(out - ref)))
    assert bool(jnp.allclose(out, ref, atol=5e-2, rtol=5e-2)), f"max_abs_err={max_err}"
    print("KERNEL_OK")
</pallas_src>

<mosaic_0001>
module attributes {stable_mosaic.version = 11 : i64} {
  func.func @kernel(%arg0: memref<20x256xf32, #tpu.memory_space<vmem>>, %arg1: memref<20x256xf32, #tpu.memory_space<vmem>>, %arg2: memref<256x256xf32, #tpu.memory_space<vmem>>, %arg3: memref<1x256xf32, #tpu.memory_space<vmem>>, %arg4: memref<256x256xf32, #tpu.memory_space<vmem>>, %arg5: memref<1x256xf32, #tpu.memory_space<vmem>>, %arg6: memref<256x256xf32, #tpu.memory_space<vmem>>, %arg7: memref<1x256xf32, #tpu.memory_space<vmem>>, %arg8: memref<256x256xf32, #tpu.memory_space<vmem>>, %arg9: memref<1x256xf32, #tpu.memory_space<vmem>>, %arg10: memref<1x256xf32, #tpu.memory_space<vmem>>, %arg11: memref<1x256xf32, #tpu.memory_space<vmem>>, %arg12: memref<256x512xf32, #tpu.memory_space<vmem>>, %arg13: memref<1x512xf32, #tpu.memory_space<vmem>>, %arg14: memref<512x256xf32, #tpu.memory_space<vmem>>, %arg15: memref<1x256xf32, #tpu.memory_space<vmem>>, %arg16: memref<1x256xf32, #tpu.memory_space<vmem>>, %arg17: memref<1x256xf32, #tpu.memory_space<vmem>>, %arg18: memref<20x256xf32, #tpu.memory_space<vmem>>, %arg19: memref<20x256xf32, #tpu.memory_space<vmem>>, %arg20: memref<20x256xf32, #tpu.memory_space<vmem>>, %arg21: memref<20x256xf32, #tpu.memory_space<vmem>>, %arg22: memref<20x256xf32, #tpu.memory_space<vmem>>) attributes {dimension_semantics = [], scalar_prefetch = 0 : i64, scratch_operands = 4 : i64, tpu.core_type = #tpu.core_type<tc>} {
    %c0 = arith.constant 0 : index
    %c0_0 = arith.constant 0 : index
    %0 = vector.load %arg0[%c0, %c0_0] : memref<20x256xf32, #tpu.memory_space<vmem>>, vector<20x256xf32>
    %c0_1 = arith.constant 0 : index
    %c0_2 = arith.constant 0 : index
    %1 = vector.load %arg1[%c0_1, %c0_2] : memref<20x256xf32, #tpu.memory_space<vmem>>, vector<20x256xf32>
    %2 = arith.addf %0, %1 : vector<20x256xf32>
    %c0_3 = arith.constant 0 : index
    %c0_4 = arith.constant 0 : index
    %3 = vector.load %arg2[%c0_3, %c0_4] : memref<256x256xf32, #tpu.memory_space<vmem>>, vector<256x256xf32>
    %cst = arith.constant dense<0.000000e+00> : vector<20x256xf32>
    %4 = tpu.matmul %2, %3, %cst {dimension_numbers = #tpu.dot_dimension_numbers<[1], [0], [0], [1], [0, 0, 1, 1], [], []>} : vector<20x256xf32>, vector<256x256xf32>, vector<20x256xf32> -> vector<20x256xf32>
    %c0_5 = arith.constant 0 : index
    %c0_6 = arith.constant 0 : index
    %5 = vector.load %arg3[%c0_5, %c0_6] : memref<1x256xf32, #tpu.memory_space<vmem>>, vector<1x256xf32>
    %6 = vector.broadcast %5 : vector<1x256xf32> to vector<20x256xf32>
    %7 = arith.addf %4, %6 : vector<20x256xf32>
    %c0_7 = arith.constant 0 : index
    %c0_8 = arith.constant 0 : index
    %8 = vector.load %arg19[%c0_7, %c0_8] : memref<20x256xf32, #tpu.memory_space<vmem>>, vector<20x256xf32>
    tpu.vector_store %arg19[%c0_7, %c0_8], %7 {strides = array<i32>} : memref<20x256xf32, #tpu.memory_space<vmem>>, vector<20x256xf32>,
    %c0_9 = arith.constant 0 : index
    %c0_10 = arith.constant 0 : index
    %9 = vector.load %arg4[%c0_9, %c0_10] : memref<256x256xf32, #tpu.memory_space<vmem>>, vector<256x256xf32>
    %cst_11 = arith.constant dense<0.000000e+00> : vector<20x256xf32>
    %10 = tpu.matmul %2, %9, %cst_11 {dimension_numbers = #tpu.dot_dimension_numbers<[1], [0], [0], [1], [0, 0, 1, 1], [], []>} : vector<20x256xf32>, vector<256x256xf32>, vector<20x256xf32> -> vector<20x256xf32>
    %c0_12 = arith.constant 0 : index
    %c0_13 = arith.constant 0 : index
    %11 = vector.load %arg5[%c0_12, %c0_13] : memref<1x256xf32, #tpu.memory_space<vmem>>, vector<1x256xf32>
    %12 = vector.broadcast %11 : vector<1x256xf32> to vector<20x256xf32>
    %13 = arith.addf %10, %12 : vector<20x256xf32>
    %c0_14 = arith.constant 0 : index
    %c0_15 = arith.constant 0 : index
    %14 = vector.load %arg20[%c0_14, %c0_15] : memref<20x256xf32, #tpu.memory_space<vmem>>, vector<20x256xf32>
    tpu.vector_store %arg20[%c0_14, %c0_15], %13 {strides = array<i32>} : memref<20x256xf32, #tpu.memory_space<vmem>>, vector<20x256xf32>,
    %c0_16 = arith.constant 0 : index
    %c0_17 = arith.constant 0 : index
    %15 = vector.load %arg6[%c0_16, %c0_17] : memref<256x256xf32, #tpu.memory_space<vmem>>, vector<256x256xf32>
    %cst_18 = arith.constant dense<0.000000e+00> : vector<20x256xf32>
    %16 = tpu.matmul %2, %15, %cst_18 {dimension_numbers = #tpu.dot_dimension_numbers<[1], [0], [0], [1], [0, 0, 1, 1], [], []>} : vector<20x256xf32>, vector<256x256xf32>, vector<20x256xf32> -> vector<20x256xf32>
    %c0_19 = arith.constant 0 : index
    %c0_20 = arith.constant 0 : index
    %17 = vector.load %arg7[%c0_19, %c0_20] : memref<1x256xf32, #tpu.memory_space<vmem>>, vector<1x256xf32>
    %18 = vector.broadcast %17 : vector<1x256xf32> to vector<20x256xf32>
    %19 = arith.addf %16, %18 : vector<20x256xf32>
    %c0_21 = arith.constant 0 : index
    %c0_22 = arith.constant 0 : index
    %20 = vector.load %arg21[%c0_21, %c0_22] : memref<20x256xf32, #tpu.memory_space<vmem>>, vector<20x256xf32>
    tpu.vector_store %arg21[%c0_21, %c0_22], %19 {strides = array<i32>} : memref<20x256xf32, #tpu.memory_space<vmem>>, vector<20x256xf32>,
    %c0_23 = arith.constant 0 : index
    %c0_24 = arith.constant 0 : index
    %21 = vector.load %arg8[%c0_23, %c0_24] : memref<256x256xf32, #tpu.memory_space<vmem>>, vector<128x256xf32>
    %c128 = arith.constant 128 : index
    %c0_25 = arith.constant 0 : index
    %22 = vector.load %arg8[%c128, %c0_25] : memref<256x256xf32, #tpu.memory_space<vmem>>, vector<128x256xf32>
    %cst_26 = arith.constant 0.000000e+00 : f32
    %23 = vector.broadcast %cst_26 : f32 to vector<5x256xf32>
    %c0_27 = arith.constant 0 : index
    %c0_28 = arith.constant 0 : index
    %24 = vector.load %arg19[%c0_27, %c0_28] : memref<20x256xf32, #tpu.memory_space<vmem>>, vector<5x128xf32>
    %c0_29 = arith.constant 0 : index
    %c0_30 = arith.constant 0 : index
    %25 = vector.load %arg20[%c0_29, %c0_30] : memref<20x256xf32, #tpu.memory_space<vmem>>, vector<5x128xf32>
    %c0_31 = arith.constant 0 : index
    %c0_32 = arith.constant 0 : index
    %26 = vector.load %arg21[%c0_31, %c0_32] : memref<20x256xf32, #tpu.memory_space<vmem>>, vector<5x128xf32>
    %cst_33 = arith.constant dense<0.000000e+00> : vector<5x5xf32>
    %27 = tpu.matmul %24, %25, %cst_33 {dimension_numbers = #tpu.dot_dimension_numbers<[1], [1], [0], [0], [0, 0, 1, 0], [], []>} : vector<5x128xf32>, vector<5x128xf32>, vector<5x5xf32> -> vector<5x5xf32>
    %cst_34 = arith.constant 0.0883883461 : f32
    %28 = vector.broadcast %cst_34 : f32 to vector<5x5xf32>
    %29 = arith.mulf %27, %28 : vector<5x5xf32>
    %cst_35 = arith.constant dense<0xFF800000> : vector<5xf32>
    %30 = vector.multi_reduction <maximumf>, %29, %cst_35 [1] : vector<5x5xf32> to vector<5xf32>
    %31 = vector.shape_cast %30 : vector<5xf32> to vector<5x1xf32>
    %32 = vector.broadcast %31 : vector<5x1xf32> to vector<5x5xf32>
    %33 = arith.subf %29, %32 : vector<5x5xf32>
    %34 = math.exp %33 : vector<5x5xf32>
    %cst_36 = arith.constant dense<0.000000e+00> : vector<5xf32>
    %35 = vector.multi_reduction <add>, %34, %cst_36 [1] : vector<5x5xf32> to vector<5xf32>
    %36 = vector.shape_cast %35 : vector<5xf32> to vector<5x1xf32>
    %37 = vector.broadcast %36 : vector<5x1xf32> to vector<5x5xf32>
    %38 = arith.divf %34, %37 : vector<5x5xf32>
    %cst_37 = arith.constant dense<0.000000e+00> : vector<5x128xf32>
    %39 = tpu.matmul %38, %26, %cst_37 {dimension_numbers = #tpu.dot_dimension_numbers<[1], [0], [0], [1], [0, 0, 1, 1], [], []>} : vector<5x5xf32>, vector<5x128xf32>, vector<5x128xf32> -> vector<5x128xf32>
    %cst_38 = arith.constant dense<0.000000e+00> : vector<5x256xf32>
    %40 = tpu.matmul %39, %21, %cst_38 {dimension_numbers = #tpu.dot_dimension_numbers<[1], [0], [0], [1], [0, 0, 1, 1], [], []>} : vector<5x128xf32>, vector<128x256xf32>, vector<5x256xf32> -> vector<5x256xf32>
    %41 = arith.addf %23, %40 : vector<5x256xf32>
    %c0_39 = arith.constant 0 : index
    %c128_40 = arith.constant 128 : index
    %42 = vector.load %arg19[%c0_39, %c128_40] : memref<20x256xf32, #tpu.memory_space<vmem>>, vector<5x128xf32>
    %c0_41 = arith.constant 0 : index
    %c128_42 = arith.constant 128 : index
    %43 = vector.load %arg20[%c0_41, %c128_42] : memref<20x256xf32, #tpu.memory_space<vmem>>, vector<5x128xf32>
    %c0_43 = arith.constant 0 : index
    %c128_44 = arith.constant 128 : index
    %44 = vector.load %arg21[%c0_43, %c128_44] : memref<20x256xf32, #tpu.memory_space<vmem>>, vector<5x128xf32>
    %cst_45 = arith.constant dense<0.000000e+00> : vector<5x5xf32>
    %45 = tpu.matmul %42, %43, %cst_45 {dimension_numbers = #tpu.dot_dimension_numbers<[1], [1], [0], [0], [0, 0, 1, 0], [], []>} : vector<5x128xf32>, vector<5x128xf32>, vector<5x5xf32> -> vector<5x5xf32>
    %cst_46 = arith.constant 0.0883883461 : f32
    %46 = vector.broadcast %cst_46 : f32 to vector<5x5xf32>
    %47 = arith.mulf %45, %46 : vector<5x5xf32>
    %cst_47 = arith.constant dense<0xFF800000> : vector<5xf32>
    %48 = vector.multi_reduction <maximumf>, %47, %cst_47 [1] : vector<5x5xf32> to vector<5xf32>
    %49 = vector.shape_cast %48 : vector<5xf32> to vector<5x1xf32>
    %50 = vector.broadcast %49 : vector<5x1xf32> to vector<5x5xf32>
    %51 = arith.subf %47, %50 : vector<5x5xf32>
    %52 = math.exp %51 : vector<5x5xf32>
    %cst_48 = arith.constant dense<0.000000e+00> : vector<5xf32>
    %53 = vector.multi_reduction <add>, %52, %cst_48 [1] : vector<5x5xf32> to vector<5xf32>
    %54 = vector.shape_cast %53 : vector<5xf32> to vector<5x1xf32>
    %55 = vector.broadcast %54 : vector<5x1xf32> to vector<5x5xf32>
    %56 = arith.divf %52, %55 : vector<5x5xf32>
    %cst_49 = arith.constant dense<0.000000e+00> : vector<5x128xf32>
    %57 = tpu.matmul %56, %44, %cst_49 {dimension_numbers = #tpu.dot_dimension_numbers<[1], [0], [0], [1], [0, 0, 1, 1], [], []>} : vector<5x5xf32>, vector<5x128xf32>, vector<5x128xf32> -> vector<5x128xf32>
    %cst_50 = arith.constant dense<0.000000e+00> : vector<5x256xf32>
    %58 = tpu.matmul %57, %22, %cst_50 {dimension_numbers = #tpu.dot_dimension_numbers<[1], [0], [0], [1], [0, 0, 1, 1], [], []>} : vector<5x128xf32>, vector<128x256xf32>, vector<5x256xf32> -> vector<5x256xf32>
    %59 = arith.addf %41, %58 : vector<5x256xf32>
    %c0_51 = arith.constant 0 : index
    %c0_52 = arith.constant 0 : index
    %60 = vector.load %arg22[%c0_51, %c0_52] : memref<20x256xf32, #tpu.memory_space<vmem>>, vector<5x256xf32>
    tpu.vector_store %arg22[%c0_51, %c0_52], %59 {strides = array<i32>} : memref<20x256xf32, #tpu.memory_space<vmem>>, vector<5x256xf32>,
    %cst_53 = arith.constant 0.000000e+00 : f32
    %61 = vector.broadcast %cst_53 : f32 to vector<5x256xf32>
    %c5 = arith.constant 5 : index
    %c0_54 = arith.constant 0 : index
    %62 = vector.load %arg19[%c5, %c0_54] : memref<20x256xf32, #tpu.memory_space<vmem>>, vector<5x128xf32>
    %c5_55 = arith.constant 5 : index
    %c0_56 = arith.constant 0 : index
    %63 = vector.load %arg20[%c5_55, %c0_56] : memref<20x256xf32, #tpu.memory_space<vmem>>, vector<5x128xf32>
    %c5_57 = arith.constant 5 : index
    %c0_58 = arith.constant 0 : index
    %64 = vector.load %arg21[%c5_57, %c0_58] : memref<20x256xf32, #tpu.memory_space<vmem>>, vector<5x128xf32>
    %cst_59 = arith.constant dense<0.000000e+00> : vector<5x5xf32>
    %65 = tpu.matmul %62, %63, %cst_59 {dimension_numbers = #tpu.dot_dimension_numbers<[1], [1], [0], [0], [0, 0, 1, 0], [], []>} : vector<5x128xf32>, vector<5x128xf32>, vector<5x5xf32> -> vector<5x5xf32>
    %cst_60 = arith.constant 0.0883883461 : f32
    %66 = vector.broadcast %cst_60 : f32 to vector<5x5xf32>
    %67 = arith.mulf %65, %66 : vector<5x5xf32>
    %cst_61 = arith.constant dense<0xFF800000> : vector<5xf32>
    %68 = vector.multi_reduction <maximumf>, %67, %cst_61 [1] : vector<5x5xf32> to vector<5xf32>
    %69 = vector.shape_cast %68 : vector<5xf32> to vector<5x1xf32>
    %70 = vector.broadcast %69 : vector<5x1xf32> to vector<5x5xf32>
    %71 = arith.subf %67, %70 : vector<5x5xf32>
    %72 = math.exp %71 : vector<5x5xf32>
    %cst_62 = arith.constant dense<0.000000e+00> : vector<5xf32>
    %73 = vector.multi_reduction <add>, %72, %cst_62 [1] : vector<5x5xf32> to vector<5xf32>
    %74 = vector.shape_cast %73 : vector<5xf32> to vector<5x1xf32>
    %75 = vector.broadcast %74 : vector<5x1xf32> to vector<5x5xf32>
    %76 = arith.divf %72, %75 : vector<5x5xf32>
    %cst_63 = arith.constant dense<0.000000e+00> : vector<5x128xf32>
    %77 = tpu.matmul %76, %64, %cst_63 {dimension_numbers = #tpu.dot_dimension_numbers<[1], [0], [0], [1], [0, 0, 1, 1], [], []>} : vector<5x5xf32>, vector<5x128xf32>, vector<5x128xf32> -> vector<5x128xf32>
    %cst_64 = arith.constant dense<0.000000e+00> : vector<5x256xf32>
    %78 = tpu.matmul %77, %21, %cst_64 {dimension_numbers = #tpu.dot_dimension_numbers<[1], [0], [0], [1], [0, 0, 1, 1], [], []>} : vector<5x128xf32>, vector<128x256xf32>, vector<5x256xf32> -> vector<5x256xf32>
    %79 = arith.addf %61, %78 : vector<5x256xf32>
    %c5_65 = arith.constant 5 : index
    %c128_66 = arith.constant 128 : index
    %80 = vector.load %arg19[%c5_65, %c128_66] : memref<20x256xf32, #tpu.memory_space<vmem>>, vector<5x128xf32>
    %c5_67 = arith.constant 5 : index
    %c128_68 = arith.constant 128 : index
    %81 = vector.load %arg20[%c5_67, %c128_68] : memref<20x256xf32, #tpu.memory_space<vmem>>, vector<5x128xf32>
    %c5_69 = arith.constant 5 : index
    %c128_70 = arith.constant 128 : index
    %82 = vector.load %arg21[%c5_69, %c128_70] : memref<20x256xf32, #tpu.memory_space<vmem>>, vector<5x128xf32>
    %cst_71 = arith.constant dense<0.000000e+00> : vector<5x5xf32>
    %83 = tpu.matmul %80, %81, %cst_71 {dimension_numbers = #tpu.dot_dimension_numbers<[1], [1], [0], [0], [0, 0, 1, 0], [], []>} : vector<5x128xf32>, vector<5x128xf32>, vector<5x5xf32> -> vector<5x5xf32>
    %cst_72 = arith.constant 0.0883883461 : f32
    %84 = vector.broadcast %cst_72 : f32 to vector<5x5xf32>
    %85 = arith.mulf %83, %84 : vector<5x5xf32>
    %cst_73 = arith.constant dense<0xFF800000> : vector<5xf32>
    %86 = vector.multi_reduction <maximumf>, %85, %cst_73 [1] : vector<5x5xf32> to vector<5xf32>
    %87 = vector.shape_cast %86 : vector<5xf32> to vector<5x1xf32>
    %88 = vector.broadcast %87 : vector<5x1xf32> to vector<5x5xf32>
    %89 = arith.subf %85, %88 : vector<5x5xf32>
    %90 = math.exp %89 : vector<5x5xf32>
    %cst_74 = arith.constant dense<0.000000e+00> : vector<5xf32>
    %91 = vector.multi_reduction <add>, %90, %cst_74 [1] : vector<5x5xf32> to vector<5xf32>
    %92 = vector.shape_cast %91 : vector<5xf32> to vector<5x1xf32>
    %93 = vector.broadcast %92 : vector<5x1xf32> to vector<5x5xf32>
    %94 = arith.divf %90, %93 : vector<5x5xf32>
    %cst_75 = arith.constant dense<0.000000e+00> : vector<5x128xf32>
    %95 = tpu.matmul %94, %82, %cst_75 {dimension_numbers = #tpu.dot_dimension_numbers<[1], [0], [0], [1], [0, 0, 1, 1], [], []>} : vector<5x5xf32>, vector<5x128xf32>, vector<5x128xf32> -> vector<5x128xf32>
    %cst_76 = arith.constant dense<0.000000e+00> : vector<5x256xf32>
    %96 = tpu.matmul %95, %22, %cst_76 {dimension_numbers = #tpu.dot_dimension_numbers<[1], [0], [0], [1], [0, 0, 1, 1], [], []>} : vector<5x128xf32>, vector<128x256xf32>, vector<5x256xf32> -> vector<5x256xf32>
    %97 = arith.addf %79, %96 : vector<5x256xf32>
    %c5_77 = arith.constant 5 : index
    %c0_78 = arith.constant 0 : index
    %98 = vector.load %arg22[%c5_77, %c0_78] : memref<20x256xf32, #tpu.memory_space<vmem>>, vector<5x256xf32>
    tpu.vector_store %arg22[%c5_77, %c0_78], %97 {strides = array<i32>} : memref<20x256xf32, #tpu.memory_space<vmem>>, vector<5x256xf32>,
    %cst_79 = arith.constant 0.000000e+00 : f32
    %99 = vector.broadcast %cst_79 : f32 to vector<5x256xf32>
    %c10 = arith.constant 10 : index
    %c0_80 = arith.constant 0 : index
    %100 = vector.load %arg19[%c10, %c0_80] : memref<20x256xf32, #tpu.memory_space<vmem>>, vector<5x128xf32>
    %c10_81 = arith.constant 10 : index
    %c0_82 = arith.constant 0 : index
    %101 = vector.load %arg20[%c10_81, %c0_82] : memref<20x256xf32, #tpu.memory_space<vmem>>, vector<5x128xf32>
    %c10_83 = arith.constant 10 : index
    %c0_84 = arith.constant 0 : index
    %102 = vector.load %arg21[%c10_83, %c0_84] : memref<20x256xf32, #tpu.memory_space<vmem>>, vector<5x128xf32>
    %cst_85 = arith.constant dense<0.000000e+00> : vector<5x5xf32>
    %103 = tpu.matmul %100, %101, %cst_85 {dimension_numbers = #tpu.dot_dimension_numbers<[1], [1], [0], [0], [0, 0, 1, 0], [], []>} : vector<5x128xf32>, vector<5x128xf32>, vector<5x5xf32> -> vector<5x5xf32>
    %cst_86 = arith.constant 0.0883883461 : f32
    %104 = vector.broadcast %cst_86 : f32 to vector<5x5xf32>
    %105 = arith.mulf %103, %104 : vector<5x5xf32>
    %cst_87 = arith.constant dense<0xFF800000> : vector<5xf32>
    %106 = vector.multi_reduction <maximumf>, %105, %cst_87 [1] : vector<5x5xf32> to vector<5xf32>
    %107 = vector.shape_cast %106 : vector<5xf32> to vector<5x1xf32>
    %108 = vector.broadcast %107 : vector<5x1xf32> to vector<5x5xf32>
    %109 = arith.subf %105, %108 : vector<5x5xf32>
    %110 = math.exp %109 : vector<5x5xf32>
    %cst_88 = arith.constant dense<0.000000e+00> : vector<5xf32>
    %111 = vector.multi_reduction <add>, %110, %cst_88 [1] : vector<5x5xf32> to vector<5xf32>
    %112 = vector.shape_cast %111 : vector<5xf32> to vector<5x1xf32>
    %113 = vector.broadcast %112 : vector<5x1xf32> to vector<5x5xf32>
    %114 = arith.divf %110, %113 : vector<5x5xf32>
    %cst_89 = arith.constant dense<0.000000e+00> : vector<5x128xf32>
    %115 = tpu.matmul %114, %102, %cst_89 {dimension_numbers = #tpu.dot_dimension_numbers<[1], [0], [0], [1], [0, 0, 1, 1], [], []>} : vector<5x5xf32>, vector<5x128xf32>, vector<5x128xf32> -> vector<5x128xf32>
    %cst_90 = arith.constant dense<0.000000e+00> : vector<5x256xf32>
    %116 = tpu.matmul %115, %21, %cst_90 {dimension_numbers = #tpu.dot_dimension_numbers<[1], [0], [0], [1], [0, 0, 1, 1], [], []>} : vector<5x128xf32>, vector<128x256xf32>, vector<5x256xf32> -> vector<5x256xf32>
    %117 = arith.addf %99, %116 : vector<5x256xf32>
    %c10_91 = arith.constant 10 : index
    %c128_92 = arith.constant 128 : index
    %118 = vector.load %arg19[%c10_91, %c128_92] : memref<20x256xf32, #tpu.memory_space<vmem>>, vector<5x128xf32>
    %c10_93 = arith.constant 10 : index
    %c128_94 = arith.constant 128 : index
    %119 = vector.load %arg20[%c10_93, %c128_94] : memref<20x256xf32, #tpu.memory_space<vmem>>, vector<5x128xf32>
    %c10_95 = arith.constant 10 : index
    %c128_96 = arith.constant 128 : index
    %120 = vector.load %arg21[%c10_95, %c128_96] : memref<20x256xf32, #tpu.memory_space<vmem>>, vector<5x128xf32>
    %cst_97 = arith.constant dense<0.000000e+00> : vector<5x5xf32>
    %121 = tpu.matmul %118, %119, %cst_97 {dimension_numbers = #tpu.dot_dimension_numbers<[1], [1], [0], [0], [0, 0, 1, 0], [], []>} : vector<5x128xf32>, vector<5x128xf32>, vector<5x5xf32> -> vector<5x5xf32>
    %cst_98 = arith.constant 0.0883883461 : f32
    %122 = vector.broadcast %cst_98 : f32 to vector<5x5xf32>
    %123 = arith.mulf %121, %122 : vector<5x5xf32>
    %cst_99 = arith.constant dense<0xFF800000> : vector<5xf32>
    %124 = vector.multi_reduction <maximumf>, %123, %cst_99 [1] : vector<5x5xf32> to vector<5xf32>
    %125 = vector.shape_cast %124 : vector<5xf32> to vector<5x1xf32>
    %126 = vector.broadcast %125 : vector<5x1xf32> to vector<5x5xf32>
    %127 = arith.subf %123, %126 : vector<5x5xf32>
    %128 = math.exp %127 : vector<5x5xf32>
    %cst_100 = arith.constant dense<0.000000e+00> : vector<5xf32>
    %129 = vector.multi_reduction <add>, %128, %cst_100 [1] : vector<5x5xf32> to vector<5xf32>
    %130 = vector.shape_cast %129 : vector<5xf32> to vector<5x1xf32>
    %131 = vector.broadcast %130 : vector<5x1xf32> to vector<5x5xf32>
    %132 = arith.divf %128, %131 : vector<5x5xf32>
    %cst_101 = arith.constant dense<0.000000e+00> : vector<5x128xf32>
    %133 = tpu.matmul %132, %120, %cst_101 {dimension_numbers = #tpu.dot_dimension_numbers<[1], [0], [0], [1], [0, 0, 1, 1], [], []>} : vector<5x5xf32>, vector<5x128xf32>, vector<5x128xf32> -> vector<5x128xf32>
    %cst_102 = arith.constant dense<0.000000e+00> : vector<5x256xf32>
    %134 = tpu.matmul %133, %22, %cst_102 {dimension_numbers = #tpu.dot_dimension_numbers<[1], [0], [0], [1], [0, 0, 1, 1], [], []>} : vector<5x128xf32>, vector<128x256xf32>, vector<5x256xf32> -> vector<5x256xf32>
    %135 = arith.addf %117, %134 : vector<5x256xf32>
    %c10_103 = arith.constant 10 : index
    %c0_104 = arith.constant 0 : index
    %136 = vector.load %arg22[%c10_103, %c0_104] : memref<20x256xf32, #tpu.memory_space<vmem>>, vector<5x256xf32>
    tpu.vector_store %arg22[%c10_103, %c0_104], %135 {strides = array<i32>} : memref<20x256xf32, #tpu.memory_space<vmem>>, vector<5x256xf32>,
    %cst_105 = arith.constant 0.000000e+00 : f32
    %137 = vector.broadcast %cst_105 : f32 to vector<5x256xf32>
    %c15 = arith.constant 15 : index
    %c0_106 = arith.constant 0 : index
    %138 = vector.load %arg19[%c15, %c0_106] : memref<20x256xf32, #tpu.memory_space<vmem>>, vector<5x128xf32>
    %c15_107 = arith.constant 15 : index
    %c0_108 = arith.constant 0 : index
    %139 = vector.load %arg20[%c15_107, %c0_108] : memref<20x256xf32, #tpu.memory_space<vmem>>, vector<5x128xf32>
    %c15_109 = arith.constant 15 : index
    %c0_110 = arith.constant 0 : index
    %140 = vector.load %arg21[%c15_109, %c0_110] : memref<20x256xf32, #tpu.memory_space<vmem>>, vector<5x128xf32>
    %cst_111 = arith.constant dense<0.000000e+00> : vector<5x5xf32>
    %141 = tpu.matmul %138, %139, %cst_111 {dimension_numbers = #tpu.dot_dimension_numbers<[1], [1], [0], [0], [0, 0, 1, 0], [], []>} : vector<5x128xf32>, vector<5x128xf32>, vector<5x5xf32> -> vector<5x5xf32>
    %cst_112 = arith.constant 0.0883883461 : f32
    %142 = vector.broadcast %cst_112 : f32 to vector<5x5xf32>
    %143 = arith.mulf %141, %142 : vector<5x5xf32>
    %cst_113 = arith.constant dense<0xFF800000> : vector<5xf32>
    %144 = vector.multi_reduction <maximumf>, %143, %cst_113 [1] : vector<5x5xf32> to vector<5xf32>
    %145 = vector.shape_cast %144 : vector<5xf32> to vector<5x1xf32>
    %146 = vector.broadcast %145 : vector<5x1xf32> to vector<5x5xf32>
    %147 = arith.subf %143, %146 : vector<5x5xf32>
    %148 = math.exp %147 : vector<5x5xf32>
    %cst_114 = arith.constant dense<0.000000e+00> : vector<5xf32>
    %149 = vector.multi_reduction <add>, %148, %cst_114 [1] : vector<5x5xf32> to vector<5xf32>
    %150 = vector.shape_cast %149 : vector<5xf32> to vector<5x1xf32>
    %151 = vector.broadcast %150 : vector<5x1xf32> to vector<5x5xf32>
    %152 = arith.divf %148, %151 : vector<5x5xf32>
    %cst_115 = arith.constant dense<0.000000e+00> : vector<5x128xf32>
    %153 = tpu.matmul %152, %140, %cst_115 {dimension_numbers = #tpu.dot_dimension_numbers<[1], [0], [0], [1], [0, 0, 1, 1], [], []>} : vector<5x5xf32>, vector<5x128xf32>, vector<5x128xf32> -> vector<5x128xf32>
    %cst_116 = arith.constant dense<0.000000e+00> : vector<5x256xf32>
    %154 = tpu.matmul %153, %21, %cst_116 {dimension_numbers = #tpu.dot_dimension_numbers<[1], [0], [0], [1], [0, 0, 1, 1], [], []>} : vector<5x128xf32>, vector<128x256xf32>, vector<5x256xf32> -> vector<5x256xf32>
    %155 = arith.addf %137, %154 : vector<5x256xf32>
    %c15_117 = arith.constant 15 : index
    %c128_118 = arith.constant 128 : index
    %156 = vector.load %arg19[%c15_117, %c128_118] : memref<20x256xf32, #tpu.memory_space<vmem>>, vector<5x128xf32>
    %c15_119 = arith.constant 15 : index
    %c128_120 = arith.constant 128 : index
    %157 = vector.load %arg20[%c15_119, %c128_120] : memref<20x256xf32, #tpu.memory_space<vmem>>, vector<5x128xf32>
    %c15_121 = arith.constant 15 : index
    %c128_122 = arith.constant 128 : index
    %158 = vector.load %arg21[%c15_121, %c128_122] : memref<20x256xf32, #tpu.memory_space<vmem>>, vector<5x128xf32>
    %cst_123 = arith.constant dense<0.000000e+00> : vector<5x5xf32>
    %159 = tpu.matmul %156, %157, %cst_123 {dimension_numbers = #tpu.dot_dimension_numbers<[1], [1], [0], [0], [0, 0, 1, 0], [], []>} : vector<5x128xf32>, vector<5x128xf32>, vector<5x5xf32> -> vector<5x5xf32>
    %cst_124 = arith.constant 0.0883883461 : f32
    %160 = vector.broadcast %cst_124 : f32 to vector<5x5xf32>
    %161 = arith.mulf %159, %160 : vector<5x5xf32>
    %cst_125 = arith.constant dense<0xFF800000> : vector<5xf32>
    %162 = vector.multi_reduction <maximumf>, %161, %cst_125 [1] : vector<5x5xf32> to vector<5xf32>
    %163 = vector.shape_cast %162 : vector<5xf32> to vector<5x1xf32>
    %164 = vector.broadcast %163 : vector<5x1xf32> to vector<5x5xf32>
    %165 = arith.subf %161, %164 : vector<5x5xf32>
    %166 = math.exp %165 : vector<5x5xf32>
    %cst_126 = arith.constant dense<0.000000e+00> : vector<5xf32>
    %167 = vector.multi_reduction <add>, %166, %cst_126 [1] : vector<5x5xf32> to vector<5xf32>
    %168 = vector.shape_cast %167 : vector<5xf32> to vector<5x1xf32>
    %169 = vector.broadcast %168 : vector<5x1xf32> to vector<5x5xf32>
    %170 = arith.divf %166, %169 : vector<5x5xf32>
    %cst_127 = arith.constant dense<0.000000e+00> : vector<5x128xf32>
    %171 = tpu.matmul %170, %158, %cst_127 {dimension_numbers = #tpu.dot_dimension_numbers<[1], [0], [0], [1], [0, 0, 1, 1], [], []>} : vector<5x5xf32>, vector<5x128xf32>, vector<5x128xf32> -> vector<5x128xf32>
    %cst_128 = arith.constant dense<0.000000e+00> : vector<5x256xf32>
    %172 = tpu.matmul %171, %22, %cst_128 {dimension_numbers = #tpu.dot_dimension_numbers<[1], [0], [0], [1], [0, 0, 1, 1], [], []>} : vector<5x128xf32>, vector<128x256xf32>, vector<5x256xf32> -> vector<5x256xf32>
    %173 = arith.addf %155, %172 : vector<5x256xf32>
    %c15_129 = arith.constant 15 : index
    %c0_130 = arith.constant 0 : index
    %174 = vector.load %arg22[%c15_129, %c0_130] : memref<20x256xf32, #tpu.memory_space<vmem>>, vector<5x256xf32>
    tpu.vector_store %arg22[%c15_129, %c0_130], %173 {strides = array<i32>} : memref<20x256xf32, #tpu.memory_space<vmem>>, vector<5x256xf32>,
    %c0_131 = arith.constant 0 : index
    %c0_132 = arith.constant 0 : index
    %175 = vector.load %arg22[%c0_131, %c0_132] : memref<20x256xf32, #tpu.memory_space<vmem>>, vector<20x256xf32>
    %c0_133 = arith.constant 0 : index
    %c0_134 = arith.constant 0 : index
    %176 = vector.load %arg9[%c0_133, %c0_134] : memref<1x256xf32, #tpu.memory_space<vmem>>, vector<1x256xf32>
    %177 = vector.broadcast %176 : vector<1x256xf32> to vector<20x256xf32>
    %178 = arith.addf %175, %177 : vector<20x256xf32>
    %179 = arith.addf %2, %178 : vector<20x256xf32>
    %c0_135 = arith.constant 0 : index
    %c0_136 = arith.constant 0 : index
    %180 = vector.load %arg10[%c0_135, %c0_136] : memref<1x256xf32, #tpu.memory_space<vmem>>, vector<1x256xf32>
    %c0_137 = arith.constant 0 : index
    %c0_138 = arith.constant 0 : index
    %181 = vector.load %arg11[%c0_137, %c0_138] : memref<1x256xf32, #tpu.memory_space<vmem>>, vector<1x256xf32>
    %cst_139 = arith.constant dense<0.000000e+00> : vector<20xf32>
    %182 = vector.multi_reduction <add>, %179, %cst_139 [1] : vector<20x256xf32> to vector<20xf32>
    %183 = vector.shape_cast %182 : vector<20xf32> to vector<20x1xf32>
    %cst_140 = arith.constant 2.560000e+02 : f32
    %184 = vector.broadcast %cst_140 : f32 to vector<20x1xf32>
    %185 = arith.divf %183, %184 : vector<20x1xf32>
    %186 = vector.broadcast %185 : vector<20x1xf32> to vector<20x256xf32>
    %187 = arith.subf %179, %186 : vector<20x256xf32>
    %188 = arith.mulf %187, %187 : vector<20x256xf32>
    %cst_141 = arith.constant dense<0.000000e+00> : vector<20xf32>
    %189 = vector.multi_reduction <add>, %188, %cst_141 [1] : vector<20x256xf32> to vector<20xf32>
    %190 = vector.shape_cast %189 : vector<20xf32> to vector<20x1xf32>
    %cst_142 = arith.constant 2.560000e+02 : f32
    %191 = vector.broadcast %cst_142 : f32 to vector<20x1xf32>
    %192 = arith.divf %190, %191 : vector<20x1xf32>
    %193 = vector.broadcast %185 : vector<20x1xf32> to vector<20x256xf32>
    %194 = arith.subf %179, %193 : vector<20x256xf32>
    %cst_143 = arith.constant 9.99999974E-6 : f32
    %195 = vector.broadcast %cst_143 : f32 to vector<20x1xf32>
    %196 = arith.addf %192, %195 : vector<20x1xf32>
    %197 = math.rsqrt %196 : vector<20x1xf32>
    %198 = vector.broadcast %197 : vector<20x1xf32> to vector<20x256xf32>
    %199 = arith.mulf %194, %198 : vector<20x256xf32>
    %200 = vector.broadcast %180 : vector<1x256xf32> to vector<20x256xf32>
    %201 = arith.mulf %199, %200 : vector<20x256xf32>
    %202 = vector.broadcast %181 : vector<1x256xf32> to vector<20x256xf32>
    %203 = arith.addf %201, %202 : vector<20x256xf32>
    %c0_144 = arith.constant 0 : index
    %c0_145 = arith.constant 0 : index
    %204 = vector.load %arg12[%c0_144, %c0_145] : memref<256x512xf32, #tpu.memory_space<vmem>>, vector<256x512xf32>
    %cst_146 = arith.constant dense<0.000000e+00> : vector<20x512xf32>
    %205 = tpu.matmul %203, %204, %cst_146 {dimension_numbers = #tpu.dot_dimension_numbers<[1], [0], [0], [1], [0, 0, 1, 1], [], []>} : vector<20x256xf32>, vector<256x512xf32>, vector<20x512xf32> -> vector<20x512xf32>
    %c0_147 = arith.constant 0 : index
    %c0_148 = arith.constant 0 : index
    %206 = vector.load %arg13[%c0_147, %c0_148] : memref<1x512xf32, #tpu.memory_space<vmem>>, vector<1x512xf32>
    %207 = vector.broadcast %206 : vector<1x512xf32> to vector<20x512xf32>
    %208 = arith.addf %205, %207 : vector<20x512xf32>
    %cst_149 = arith.constant 0.000000e+00 : f32
    %209 = vector.broadcast %cst_149 : f32 to vector<20x512xf32>
    %210 = arith.maximumf %208, %209 : vector<20x512xf32>
    %c0_150 = arith.constant 0 : index
    %c0_151 = arith.constant 0 : index
    %211 = vector.load %arg14[%c0_150, %c0_151] : memref<512x256xf32, #tpu.memory_space<vmem>>, vector<512x256xf32>
    %cst_152 = arith.constant dense<0.000000e+00> : vector<20x256xf32>
    %212 = tpu.matmul %210, %211, %cst_152 {dimension_numbers = #tpu.dot_dimension_numbers<[1], [0], [0], [1], [0, 0, 1, 1], [], []>} : vector<20x512xf32>, vector<512x256xf32>, vector<20x256xf32> -> vector<20x256xf32>
    %c0_153 = arith.constant 0 : index
    %c0_154 = arith.constant 0 : index
    %213 = vector.load %arg15[%c0_153, %c0_154] : memref<1x256xf32, #tpu.memory_space<vmem>>, vector<1x256xf32>
    %214 = vector.broadcast %213 : vector<1x256xf32> to vector<20x256xf32>
    %215 = arith.addf %212, %214 : vector<20x256xf32>
    %216 = arith.addf %203, %215 : vector<20x256xf32>
    %c0_155 = arith.constant 0 : index
    %c0_156 = arith.constant 0 : index
    %217 = vector.load %arg16[%c0_155, %c0_156] : memref<1x256xf32, #tpu.memory_space<vmem>>, vector<1x256xf32>
    %c0_157 = arith.constant 0 : index
    %c0_158 = arith.constant 0 : index
    %218 = vector.load %arg17[%c0_157, %c0_158] : memref<1x256xf32, #tpu.memory_space<vmem>>, vector<1x256xf32>
    %cst_159 = arith.constant dense<0.000000e+00> : vector<20xf32>
    %219 = vector.multi_reduction <add>, %216, %cst_159 [1] : vector<20x256xf32> to vector<20xf32>
    %220 = vector.shape_cast %219 : vector<20xf32> to vector<20x1xf32>
    %cst_160 = arith.constant 2.560000e+02 : f32
    %221 = vector.broadcast %cst_160 : f32 to vector<20x1xf32>
    %222 = arith.divf %220, %221 : vector<20x1xf32>
    %223 = vector.broadcast %222 : vector<20x1xf32> to vector<20x256xf32>
    %224 = arith.subf %216, %223 : vector<20x256xf32>
    %225 = arith.mulf %224, %224 : vector<20x256xf32>
    %cst_161 = arith.constant dense<0.000000e+00> : vector<20xf32>
    %226 = vector.multi_reduction <add>, %225, %cst_161 [1] : vector<20x256xf32> to vector<20xf32>
    %227 = vector.shape_cast %226 : vector<20xf32> to vector<20x1xf32>
    %cst_162 = arith.constant 2.560000e+02 : f32
    %228 = vector.broadcast %cst_162 : f32 to vector<20x1xf32>
    %229 = arith.divf %227, %228 : vector<20x1xf32>
    %230 = vector.broadcast %222 : vector<20x1xf32> to vector<20x256xf32>
    %231 = arith.subf %216, %230 : vector<20x256xf32>
    %cst_163 = arith.constant 9.99999974E-6 : f32
    %232 = vector.broadcast %cst_163 : f32 to vector<20x1xf32>
    %233 = arith.addf %229, %232 : vector<20x1xf32>
    %234 = math.rsqrt %233 : vector<20x1xf32>
    %235 = vector.broadcast %234 : vector<20x1xf32> to vector<20x256xf32>
    %236 = arith.mulf %231, %235 : vector<20x256xf32>
    %237 = vector.broadcast %217 : vector<1x256xf32> to vector<20x256xf32>
    %238 = arith.mulf %236, %237 : vector<20x256xf32>
    %239 = vector.broadcast %218 : vector<1x256xf32> to vector<20x256xf32>
    %240 = arith.addf %238, %239 : vector<20x256xf32>
    %c0_164 = arith.constant 0 : index
    %c0_165 = arith.constant 0 : index
    %241 = vector.load %arg18[%c0_164, %c0_165] : memref<20x256xf32, #tpu.memory_space<vmem>>, vector<20x256xf32>
    tpu.vector_store %arg18[%c0_164, %c0_165], %240 {strides = array<i32>} : memref<20x256xf32, #tpu.memory_space<vmem>>, vector<20x256xf32>,
    return
  }
}

module attributes {stable_mosaic.version = 11 : i64} {
  func.func @kernel(%arg0: memref<4x1280xf32, #tpu.memory_space<vmem>>, %arg1: memref<1280x128xf32, #tpu.memory_space<vmem>>, %arg2: memref<1x128xf32, #tpu.memory_space<vmem>>, %arg3: memref<128x64xf32, #tpu.memory_space<vmem>>, %arg4: memref<1x64xf32, #tpu.memory_space<vmem>>, %arg5: memref<64x8xf32, #tpu.memory_space<vmem>>, %arg6: memref<1x8xf32, #tpu.memory_space<vmem>>, %arg7: memref<4x8xf32, #tpu.memory_space<vmem>>) attributes {dimension_semantics = [], scalar_prefetch = 0 : i64, scratch_operands = 0 : i64, tpu.core_type = #tpu.core_type<tc>} {
    %c0 = arith.constant 0 : index
    %c0_0 = arith.constant 0 : index
    %0 = vector.load %arg0[%c0, %c0_0] : memref<4x1280xf32, #tpu.memory_space<vmem>>, vector<4x1280xf32>
    %c0_1 = arith.constant 0 : index
    %c0_2 = arith.constant 0 : index
    %1 = vector.load %arg1[%c0_1, %c0_2] : memref<1280x128xf32, #tpu.memory_space<vmem>>, vector<1280x128xf32>
    %cst = arith.constant dense<0.000000e+00> : vector<4x128xf32>
    %2 = tpu.matmul %0, %1, %cst {dimension_numbers = #tpu.dot_dimension_numbers<[1], [0], [0], [1], [0, 0, 1, 1], [], []>} : vector<4x1280xf32>, vector<1280x128xf32>, vector<4x128xf32> -> vector<4x128xf32>
    %c0_3 = arith.constant 0 : index
    %c0_4 = arith.constant 0 : index
    %3 = vector.load %arg2[%c0_3, %c0_4] : memref<1x128xf32, #tpu.memory_space<vmem>>, vector<1x128xf32>
    %4 = vector.broadcast %3 : vector<1x128xf32> to vector<4x128xf32>
    %5 = arith.addf %2, %4 : vector<4x128xf32>
    %cst_5 = arith.constant 0.000000e+00 : f32
    %6 = vector.broadcast %cst_5 : f32 to vector<4x128xf32>
    %7 = arith.maximumf %5, %6 : vector<4x128xf32>
    %c0_6 = arith.constant 0 : index
    %c0_7 = arith.constant 0 : index
    %8 = vector.load %arg3[%c0_6, %c0_7] : memref<128x64xf32, #tpu.memory_space<vmem>>, vector<128x64xf32>
    %cst_8 = arith.constant dense<0.000000e+00> : vector<4x64xf32>
    %9 = tpu.matmul %7, %8, %cst_8 {dimension_numbers = #tpu.dot_dimension_numbers<[1], [0], [0], [1], [0, 0, 1, 1], [], []>} : vector<4x128xf32>, vector<128x64xf32>, vector<4x64xf32> -> vector<4x64xf32>
    %c0_9 = arith.constant 0 : index
    %c0_10 = arith.constant 0 : index
    %10 = vector.load %arg4[%c0_9, %c0_10] : memref<1x64xf32, #tpu.memory_space<vmem>>, vector<1x64xf32>
    %11 = vector.broadcast %10 : vector<1x64xf32> to vector<4x64xf32>
    %12 = arith.addf %9, %11 : vector<4x64xf32>
    %cst_11 = arith.constant 0.000000e+00 : f32
    %13 = vector.broadcast %cst_11 : f32 to vector<4x64xf32>
    %14 = arith.maximumf %12, %13 : vector<4x64xf32>
    %c0_12 = arith.constant 0 : index
    %c0_13 = arith.constant 0 : index
    %15 = vector.load %arg5[%c0_12, %c0_13] : memref<64x8xf32, #tpu.memory_space<vmem>>, vector<64x8xf32>
    %cst_14 = arith.constant dense<0.000000e+00> : vector<4x8xf32>
    %16 = tpu.matmul %14, %15, %cst_14 {dimension_numbers = #tpu.dot_dimension_numbers<[1], [0], [0], [1], [0, 0, 1, 1], [], []>} : vector<4x64xf32>, vector<64x8xf32>, vector<4x8xf32> -> vector<4x8xf32>
    %c0_15 = arith.constant 0 : index
    %c0_16 = arith.constant 0 : index
    %17 = vector.load %arg6[%c0_15, %c0_16] : memref<1x8xf32, #tpu.memory_space<vmem>>, vector<1x8xf32>
    %18 = vector.broadcast %17 : vector<1x8xf32> to vector<4x8xf32>
    %19 = arith.addf %16, %18 : vector<4x8xf32>
    %c0_17 = arith.constant 0 : index
    %c0_18 = arith.constant 0 : index
    %20 = vector.load %arg7[%c0_17, %c0_18] : memref<4x8xf32, #tpu.memory_space<vmem>>, vector<4x8xf32>
    tpu.vector_store %arg7[%c0_17, %c0_18], %19 {strides = array<i32>} : memref<4x8xf32, #tpu.memory_space<vmem>>, vector<4x8xf32>,
    return
  }
}

</mosaic_0001>

<bundles_post_ra>
// kernel: multi_head_attention_classifier_forward.3
= control target key start
LH: loop header
LB: loop body
LE: loop exit
PB: predicated region body
PF: predicated region fallthrough
CT: control target
= control target key end

     0   :  { %s1904_s0 = inlined_call_operand.vmem [shape: f32[4,1280], index: 0, kind: input, shape index: {}]   ;;  %s1905_s1 = inlined_call_operand.vmem [shape: f32[1280,128], index: 1, kind: input, shape index: {}]   ;;  %s1906_s2 = inlined_call_operand.vmem [shape: f32[1,128], index: 2, kind: input, shape index: {}]   ;;  %s1907_s3 = inlined_call_operand.vmem [shape: f32[128,64], index: 3, kind: input, shape index: {}]   ;;  %s1908_s4 = inlined_call_operand.vmem [shape: f32[1,64], index: 4, kind: input, shape index: {}]   ;;  %s1909_s5 = inlined_call_operand.vmem [shape: f32[64,8], index: 5, kind: input, shape index: {}]   ;;  %s1910_s6 = inlined_call_operand.vmem [shape: f32[1,8], index: 6, kind: input, shape index: {}]   ;;  %s1911_s7 = inlined_call_operand.hbm [shape: f32[4,8], index: 7, kind: output, shape index: {}]  }
   0x1   :  { %v48_v0 = vld [vmem:[%s1905_s1 + $0x80] sm:$0xff]  ;;  %v49_v1 = vld [vmem:[%s1905_s1 + $0x88] sm:$0xff]  ;;  %v50_v11 = vld [vmem:[%s1905_s1 + $0x90] sm:$0xff] }
   0x2   :  { %v32_v2 = vld [vmem:[%s1905_s1] sm:$0xff]  ;;  %v1023_v3 = vpack.c.bf16 %v49_v1, %v48_v0  ;;  %v33_v4 = vld [vmem:[%s1905_s1 + $0x8] sm:$0xff]  ;;  %v51_v13 = vld [vmem:[%s1905_s1 + $0x98] sm:$0xff] }
   0x3   :  { %v80_v5 = vld [vmem:[%s1905_s1 + $0x180] sm:$0xff]  ;;  %v81_v6 = vld [vmem:[%s1905_s1 + $0x188] sm:$0xff]  ;;  %v1025_v7 = vpack.c.bf16 %v33_v4, %v32_v2  ;;  %v34_v14 = vld [vmem:[%s1905_s1 + $0x10] sm:$0xff]  ;;  %v1027_v16 = vpack.c.bf16 %v51_v13, %v50_v11 }
   0x4   :  { %v1055_v8 = vpack.c.bf16 %v81_v6, %v80_v5  ;;  %v64_v9 = vld [vmem:[%s1905_s1 + $0x100] sm:$0xff]  ;;  %v65_v10 = vld [vmem:[%s1905_s1 + $0x108] sm:$0xff]  ;;  %1024 = vmatprep.subr.bf16.mxu0 %v1023_v3  ;;  %v35_v15 = vld [vmem:[%s1905_s1 + $0x18] sm:$0xff] }
   0x5   :  { %v1057_v12 = vpack.c.bf16 %v65_v10, %v64_v9  ;;  %1026 = vmatpush3.bf16.msra.mxu0 %v1025_v7  ;;  %v1029_v17 = vpack.c.bf16 %v35_v15, %v34_v14  ;;  %v82_v18 = vld [vmem:[%s1905_s1 + $0x190] sm:$0xff]  ;;  %v83_v19 = vld [vmem:[%s1905_s1 + $0x198] sm:$0xff]  ;;  %v52_v23 = vld [vmem:[%s1905_s1 + $0xa0] sm:$0xff] }
   0x6   :  { %1056 = vmatprep.subr.bf16.mxu1 %v1055_v8  ;;  %v66_v20 = vld [vmem:[%s1905_s1 + $0x110] sm:$0xff]  ;;  %v1059_v21 = vpack.c.bf16 %v83_v19, %v82_v18  ;;  %v67_v22 = vld [vmem:[%s1905_s1 + $0x118] sm:$0xff]  ;;  %v53_v24 = vld [vmem:[%s1905_s1 + $0xa8] sm:$0xff]  ;;  %1028 = vmatprep.subr.bf16.mxu0 %v1027_v16 }
   0x7   :  { %1058 = vmatpush3.bf16.msra.mxu1 %v1057_v12  ;;  %v1061_v25 = vpack.c.bf16 %v67_v22, %v66_v20  ;;  %v1031_v26 = vpack.c.bf16 %v53_v24, %v52_v23  ;;  %v36_v27 = vld [vmem:[%s1905_s1 + $0x20] sm:$0xff]  ;;  %v37_v28 = vld [vmem:[%s1905_s1 + $0x28] sm:$0xff]  ;;  %v54_v35 = vld [vmem:[%s1905_s1 + $0xb0] sm:$0xff] }
   0x8   :  { %v84_v29 = vld [vmem:[%s1905_s1 + $0x1a0] sm:$0xff]  ;;  %1060 = vmatprep.subr.bf16.mxu1 %v1059_v21  ;;  %v85_v30 = vld [vmem:[%s1905_s1 + $0x1a8] sm:$0xff]  ;;  %v1033_v33 = vpack.c.bf16 %v37_v28, %v36_v27  ;;  %v55_v36 = vld [vmem:[%s1905_s1 + $0xb8] sm:$0xff] }
   0x9   :  { %v68_v31 = vld [vmem:[%s1905_s1 + $0x120] sm:$0xff]  ;;  %v69_v32 = vld [vmem:[%s1905_s1 + $0x128] sm:$0xff]  ;;  %1030 = vmatpush3.bf16.msra.mxu0 %v1029_v17  ;;  %v1063_v34 = vpack.c.bf16 %v85_v30, %v84_v29  ;;  %v38_v37 = vld [vmem:[%s1905_s1 + $0x30] sm:$0xff]  ;;  %v1035_v39 = vpack.c.bf16 %v55_v36, %v54_v35 }
   0xa   :  { %1032 = vmatprep.subr.bf16.mxu0 %v1031_v26  ;;  %v1065_v38 = vpack.c.bf16 %v69_v32, %v68_v31  ;;  %v39_v40 = vld [vmem:[%s1905_s1 + $0x38] sm:$0xff]  ;;  %v86_v41 = vld [vmem:[%s1905_s1 + $0x1b0] sm:$0xff]  ;;  %v56_v46 = vld [vmem:[%s1905_s1 + $0xc0] sm:$0xff] }
   0xb   :  { %1062 = vmatpush3.bf16.msra.mxu1 %v1061_v25  ;;  %v87_v42 = vld [vmem:[%s1905_s1 + $0x1b8] sm:$0xff]  ;;  %v70_v44 = vld [vmem:[%s1905_s1 + $0x130] sm:$0xff]  ;;  %v57_v47 = vld [vmem:[%s1905_s1 + $0xc8] sm:$0xff]  ;;  %v1037_v48 = vpack.c.bf16 %v39_v40, %v38_v37 }
   0xc   :  { %1064 = vmatprep.subr.bf16.mxu1 %v1063_v34  ;;  %v1067_v43 = vpack.c.bf16 %v87_v42, %v86_v41  ;;  %v71_v45 = vld [vmem:[%s1905_s1 + $0x138] sm:$0xff]  ;;  %v88_v49 = vld [vmem:[%s1905_s1 + $0x1c0] sm:$0xff]  ;;  %v89_v50 = vld [vmem:[%s1905_s1 + $0x1c8] sm:$0xff]  ;;  %v1039_v52 = vpack.c.bf16 %v57_v47, %v56_v46 }
   0xd   :  { %1034 = vmatpush3.bf16.msra.mxu0 %v1033_v33  ;;  %v1069_v51 = vpack.c.bf16 %v71_v45, %v70_v44  ;;  %v40_v53 = vld [vmem:[%s1905_s1 + $0x40] sm:$0xff]  ;;  %v41_v54 = vld [vmem:[%s1905_s1 + $0x48] sm:$0xff]  ;;  %v1071_v56 = vpack.c.bf16 %v89_v50, %v88_v49  ;;  %v58_v58 = vld [vmem:[%s1905_s1 + $0xd0] sm:$0xff] }
   0xe   :  { %1036 = vmatprep.subr.bf16.mxu0 %v1035_v39  ;;  %v72_v55 = vld [vmem:[%s1905_s1 + $0x140] sm:$0xff]  ;;  %v73_v57 = vld [vmem:[%s1905_s1 + $0x148] sm:$0xff]  ;;  %v59_v59 = vld [vmem:[%s1905_s1 + $0xd8] sm:$0xff]  ;;  %v1041_v62 = vpack.c.bf16 %v41_v54, %v40_v53 }
   0xf   :  { %1066 = vmatpush3.bf16.msra.mxu1 %v1065_v38  ;;  %v90_v60 = vld [vmem:[%s1905_s1 + $0x1d0] sm:$0xff]  ;;  %v91_v61 = vld [vmem:[%s1905_s1 + $0x1d8] sm:$0xff]  ;;  %v1073_v63 = vpack.c.bf16 %v73_v57, %v72_v55  ;;  %v1043_v0 = vpack.c.bf16 %v59_v59, %v58_v58  ;;  %v60_v6 = vld [vmem:[%s1905_s1 + $0xe0] sm:$0xff] }
  0x10   :  { %1068 = vmatprep.subr.bf16.mxu1 %v1067_v43  ;;  %v42_v1 = vld [vmem:[%s1905_s1 + $0x50] sm:$0xff]  ;;  %v43_v2 = vld [vmem:[%s1905_s1 + $0x58] sm:$0xff]  ;;  %v1075_v4 = vpack.c.bf16 %v91_v61, %v90_v60  ;;  %v61_v7 = vld [vmem:[%s1905_s1 + $0xe8] sm:$0xff] }
  0x11   :  { %1038 = vmatpush3.bf16.msra.mxu0 %v1037_v48  ;;  %v74_v3 = vld [vmem:[%s1905_s1 + $0x150] sm:$0xff]  ;;  %v75_v5 = vld [vmem:[%s1905_s1 + $0x158] sm:$0xff]  ;;  %v92_v8 = vld [vmem:[%s1905_s1 + $0x1e0] sm:$0xff]  ;;  %v1045_v10 = vpack.c.bf16 %v43_v2, %v42_v1  ;;  %v1047_v14 = vpack.c.bf16 %v61_v7, %v60_v6 }
  0x12   :  { %1040 = vmatprep.subr.bf16.mxu0 %v1039_v52  ;;  %v93_v9 = vld [vmem:[%s1905_s1 + $0x1e8] sm:$0xff]  ;;  %v44_v11 = vld [vmem:[%s1905_s1 + $0x60] sm:$0xff]  ;;  %v1077_v13 = vpack.c.bf16 %v75_v5, %v74_v3  ;;  %v62_v20 = vld [vmem:[%s1905_s1 + $0xf0] sm:$0xff] }
  0x13   :  { %1070 = vmatpush3.bf16.msra.mxu1 %v1069_v51  ;;  %v1458_v12 = vld [vmem:[%s1904_s0] sm:$0xff]  ;;  %v45_v15 = vld [vmem:[%s1905_s1 + $0x68] sm:$0xff]  ;;  %v1079_v19 = vpack.c.bf16 %v93_v9, %v92_v8  ;;  %v63_v21 = vld [vmem:[%s1905_s1 + $0xf8] sm:$0xff] }
  0x14   :  { %1072 = vmatprep.subr.bf16.mxu1 %v1071_v56  ;;  %v76_v16 = vld [vmem:[%s1905_s1 + $0x160] sm:$0xff]  ;;  %v77_v17 = vld [vmem:[%s1905_s1 + $0x168] sm:$0xff]  ;;  %v204_v18 = vcombine.high %v1458_v12, %v1458_v12  ;;  %v94_v23 = vld [vmem:[%s1905_s1 + $0x1f0] sm:$0xff]  ;;  %v1049_v26 = vpack.c.bf16 %v45_v15, %v44_v11  ;;  %v1051_v28 = vpack.c.bf16 %v63_v21, %v62_v20 }
  0x15   :  { %1042 = vmatpush3.bf16.msra.mxu0 %v1041_v62  ;;  %v28_v22 = vld [vmem:[%s1904_s0 + $0x8] sm:$0xff]  ;;  %v95_v24 = vld [vmem:[%s1905_s1 + $0x1f8] sm:$0xff]  ;;  %v1081_v27 = vpack.c.bf16 %v77_v17, %v76_v16  ;;  %v46_v29 = vld [vmem:[%s1905_s1 + $0x70] sm:$0xff] }
  0x16   :  { %1044 = vmatprep.subr.bf16.mxu0 %v1043_v0  ;;  %278 = vmatprep.mubr.f32.mxu0 %v204_v18  ;;  %v205_v25 = vcombine.high %v28_v22, %v28_v22  ;;  %v47_v30 = vld [vmem:[%s1905_s1 + $0x78] sm:$0xff]  ;;  %v78_v31 = vld [vmem:[%s1905_s1 + $0x170] sm:$0xff]  ;;  %v1083_v32 = vpack.c.bf16 %v95_v24, %v94_v23  ;;  %v112_v34 = vld [vmem:[%s1905_s1 + $0x280] sm:$0xff] }
  0x17   :  { %1074 = vmatpush3.bf16.msra.mxu1 %v1073_v63  ;;  %v79_v33 = vld [vmem:[%s1905_s1 + $0x178] sm:$0xff]  ;;  %v113_v35 = vld [vmem:[%s1905_s1 + $0x288] sm:$0xff]  ;;  %v144_v36 = vld [vmem:[%s1905_s1 + $0x380] sm:$0xff]  ;;  %v1053_v38 = vpack.c.bf16 %v47_v30, %v46_v29 }
  0x18   :  { %1076 = vmatprep.subr.bf16.mxu1 %v1075_v4  ;;  %348 = vmatprep.mubr.f32.mxu1 %v205_v25  ;;  %v145_v37 = vld [vmem:[%s1905_s1 + $0x388] sm:$0xff]  ;;  %v1085_v39 = vpack.c.bf16 %v79_v33, %v78_v31  ;;  %v1087_v40 = vpack.c.bf16 %v113_v35, %v112_v34  ;;  %v96_v41 = vld [vmem:[%s1905_s1 + $0x200] sm:$0xff]  ;;  %v114_v46 = vld [vmem:[%s1905_s1 + $0x290] sm:$0xff] }
  0x19   :  { %1046 = vmatpush3.bf16.msra.mxu0 %v1045_v10  ;;  %v97_v42 = vld [vmem:[%s1905_s1 + $0x208] sm:$0xff]  ;;  %v128_v43 = vld [vmem:[%s1905_s1 + $0x300] sm:$0xff]  ;;  %v1119_v44 = vpack.c.bf16 %v145_v37, %v144_v36  ;;  %v115_v47 = vld [vmem:[%s1905_s1 + $0x298] sm:$0xff] }
  0x1a   :  { %1048 = vmatprep.subr.bf16.mxu0 %v1047_v14  ;;  %v129_v45 = vld [vmem:[%s1905_s1 + $0x308] sm:$0xff]  ;;  %v146_v48 = vld [vmem:[%s1905_s1 + $0x390] sm:$0xff]  ;;  %v147_v49 = vld [vmem:[%s1905_s1 + $0x398] sm:$0xff]  ;;  %v1089_v50 = vpack.c.bf16 %v97_v42, %v96_v41  ;;  %v1091_v52 = vpack.c.bf16 %v115_v47, %v114_v46 }
  0x1b   :  { %1078 = vmatpush3.bf16.msra.mxu1 %v1077_v13  ;;  %v1121_v51 = vpack.c.bf16 %v129_v45, %v128_v43  ;;  %v98_v53 = vld [vmem:[%s1905_s1 + $0x210] sm:$0xff]  ;;  %v99_v54 = vld [vmem:[%s1905_s1 + $0x218] sm:$0xff]  ;;  %v1123_v56 = vpack.c.bf16 %v147_v49, %v146_v48  ;;  %v116_v58 = vld [vmem:[%s1905_s1 + $0x2a0] sm:$0xff] }
  0x1c   :  { %1080 = vmatprep.subr.bf16.mxu1 %v1079_v19  ;;  %v130_v55 = vld [vmem:[%s1905_s1 + $0x310] sm:$0xff]  ;;  %v131_v57 = vld [vmem:[%s1905_s1 + $0x318] sm:$0xff]  ;;  %v117_v59 = vld [vmem:[%s1905_s1 + $0x2a8] sm:$0xff]  ;;  %v1093_v62 = vpack.c.bf16 %v99_v54, %v98_v53 }
  0x1d   :  { %1050 = vmatpush3.bf16.msra.mxu0 %v1049_v26  ;;  %v148_v60 = vld [vmem:[%s1905_s1 + $0x3a0] sm:$0xff]  ;;  %v149_v61 = vld [vmem:[%s1905_s1 + $0x3a8] sm:$0xff]  ;;  %v1125_v63 = vpack.c.bf16 %v131_v57, %v130_v55  ;;  %v1095_v0 = vpack.c.bf16 %v117_v59, %v116_v58  ;;  %v118_v6 = vld [vmem:[%s1905_s1 + $0x2b0] sm:$0xff] }
  0x1e   :  { %1052 = vmatprep.subr.bf16.mxu0 %v1051_v28  ;;  %v100_v1 = vld [vmem:[%s1905_s1 + $0x220] sm:$0xff]  ;;  %v101_v2 = vld [vmem:[%s1905_s1 + $0x228] sm:$0xff]  ;;  %v1127_v4 = vpack.c.bf16 %v149_v61, %v148_v60  ;;  %v119_v7 = vld [vmem:[%s1905_s1 + $0x2b8] sm:$0xff] }
  0x1f   :  { %1082 = vmatpush3.bf16.msra.mxu1 %v1081_v27  ;;  %v132_v3 = vld [vmem:[%s1905_s1 + $0x320] sm:$0xff]  ;;  %v133_v5 = vld [vmem:[%s1905_s1 + $0x328] sm:$0xff]  ;;  %v150_v8 = vld [vmem:[%s1905_s1 + $0x3b0] sm:$0xff]  ;;  %v1097_v10 = vpack.c.bf16 %v101_v2, %v100_v1  ;;  %v1099_v13 = vpack.c.bf16 %v119_v7, %v118_v6 }
  0x20   :  { %1084 = vmatprep.subr.bf16.mxu1 %v1083_v32  ;;  %v151_v9 = vld [vmem:[%s1905_s1 + $0x3b8] sm:$0xff]  ;;  %v102_v11 = vld [vmem:[%s1905_s1 + $0x230] sm:$0xff]  ;;  %v120_v18 = vld [vmem:[%s1905_s1 + $0x2c0] sm:$0xff] }
  0x21   :  { %1054 = vmatpush3.bf16.msra.mxu0 %v1053_v38  ;;  %v103_v14 = vld [vmem:[%s1905_s1 + $0x238] sm:$0xff]  ;;  %v134_v15 = vld [vmem:[%s1905_s1 + $0x330] sm:$0xff]  ;;  %v1131_v17 = vpack.c.bf16 %v151_v9, %v150_v8  ;;  %v121_v19 = vld [vmem:[%s1905_s1 + $0x2c8] sm:$0xff] }
  0x22   :  { %1088 = vmatprep.subr.bf16.mxu0 %v1087_v40  ;;  %v135_v16 = vld [vmem:[%s1905_s1 + $0x338] sm:$0xff]  ;;  %v1604_v20 = vld [vmem:[%s1904_s0 + $0x10] sm:$0xff]  ;;  %v152_v21 = vld [vmem:[%s1905_s1 + $0x3c0] sm:$0xff]  ;;  %v1101_v24 = vpack.c.bf16 %v103_v14, %v102_v11  ;;  %v1103_v27 = vpack.c.bf16 %v121_v19, %v120_v18 }
  0x23   :  { %1086 = vmatpush3.bf16.msra.mxu1 %v1085_v39  ;;  %v206_v23 = vcombine.high %v1604_v20, %v1604_v20  ;;  %v1617_v25 = vld [vmem:[%s1904_s0 + $0x18] sm:$0xff]  ;;  %v1133_v26 = vpack.c.bf16 %v135_v16, %v134_v15  ;;  %v104_v28 = vld [vmem:[%s1905_s1 + $0x240] sm:$0xff]  ;;  %v105_v29 = vld [vmem:[%s1905_s1 + $0x248] sm:$0xff] }
  0x24   :  { %1120 = vmatprep.subr.bf16.mxu1 %v1119_v44  ;;  %279 = vmatmul.mubr.f32.vlgmr.msra.gmra.mrb[0].mxu0 %v1458_v12  ;;  %v1129_v12 = vpack.c.bf16 %v133_v5, %v132_v3  ;;  %v136_v30 = vld [vmem:[%s1905_s1 + $0x340] sm:$0xff]  ;;  %v207_v31 = vcombine.high %v1617_v25, %v1617_v25  ;;  %v137_v33 = vld [vmem:[%s1905_s1 + $0x348] sm:$0xff]  ;;  %v122_v34 = vld [vmem:[%s1905_s1 + $0x2d0] sm:$0xff]  ;;  %v1105_v38 = vpack.c.bf16 %v105_v29, %v104_v28 }
  0x25   :  { %1090 = vmatpush3.bf16.msra.mxu0 %v1089_v50  ;;  %v123_v35 = vld [vmem:[%s1905_s1 + $0x2d8] sm:$0xff]  ;;  %418 = vmatprep.mubr.f32.mxu0 %v206_v23  ;;  %v154_v36 = vld [vmem:[%s1905_s1 + $0x3d0] sm:$0xff]  ;;  %v1137_v39 = vpack.c.bf16 %v137_v33, %v136_v30  ;;  %v124_v46 = vld [vmem:[%s1905_s1 + $0x2e0] sm:$0xff] }
  0x26   :  { %349 = vmatmul.mubr.f32.vlgmr.msra.gmra.mrb[0].mxu1 %v28_v22  ;;  %1092 = vmatprep.subr.bf16.mxu0 %v1091_v52  ;;  %v153_v22 = vld [vmem:[%s1905_s1 + $0x3c8] sm:$0xff]  ;;  %v155_v37 = vld [vmem:[%s1905_s1 + $0x3d8] sm:$0xff]  ;;  %v1107_v40 = vpack.c.bf16 %v123_v35, %v122_v34  ;;  %v106_v41 = vld [vmem:[%s1905_s1 + $0x250] sm:$0xff] }
  0x27   :  { %1122 = vmatpush3.bf16.msra.mxu1 %v1121_v51  ;;  %v1135_v32 = vpack.c.bf16 %v153_v22, %v152_v21  ;;  %488 = vmatprep.mubr.f32.mxu1 %v207_v31  ;;  %v107_v42 = vld [vmem:[%s1905_s1 + $0x258] sm:$0xff]  ;;  %v138_v43 = vld [vmem:[%s1905_s1 + $0x350] sm:$0xff]  ;;  %v1139_v44 = vpack.c.bf16 %v155_v37, %v154_v36  ;;  %v125_v47 = vld [vmem:[%s1905_s1 + $0x2e8] sm:$0xff] }
  0x28   :  { %1124 = vmatprep.subr.bf16.mxu1 %v1123_v56  ;;  %v139_v45 = vld [vmem:[%s1905_s1 + $0x358] sm:$0xff]  ;;  %v156_v48 = vld [vmem:[%s1905_s1 + $0x3e0] sm:$0xff]  ;;  %v157_v49 = vld [vmem:[%s1905_s1 + $0x3e8] sm:$0xff]  ;;  %v1109_v50 = vpack.c.bf16 %v107_v42, %v106_v41  ;;  %v1111_v52 = vpack.c.bf16 %v125_v47, %v124_v46 }
  0x29   :  { %1094 = vmatpush3.bf16.msra.mxu0 %v1093_v62  ;;  %v1141_v51 = vpack.c.bf16 %v139_v45, %v138_v43  ;;  %v108_v53 = vld [vmem:[%s1905_s1 + $0x260] sm:$0xff]  ;;  %v109_v54 = vld [vmem:[%s1905_s1 + $0x268] sm:$0xff]  ;;  %v1143_v56 = vpack.c.bf16 %v157_v49, %v156_v48  ;;  %v126_v58 = vld [vmem:[%s1905_s1 + $0x2f0] sm:$0xff] }
  0x2a   :  { %1096 = vmatprep.subr.bf16.mxu0 %v1095_v0  ;;  %v140_v55 = vld [vmem:[%s1905_s1 + $0x360] sm:$0xff]  ;;  %v141_v57 = vld [vmem:[%s1905_s1 + $0x368] sm:$0xff]  ;;  %v127_v59 = vld [vmem:[%s1905_s1 + $0x2f8] sm:$0xff] }
  0x2b   :  { %1126 = vmatpush3.bf16.msra.mxu1 %v1125_v63  ;;  %v158_v60 = vld [vmem:[%s1905_s1 + $0x3f0] sm:$0xff]  ;;  %v159_v61 = vld [vmem:[%s1905_s1 + $0x3f8] sm:$0xff] }
  0x2c   :  { %1128 = vmatprep.subr.bf16.mxu1 %v1127_v4 }
  0x2d   :  { %1098 = vmatpush3.bf16.msra.mxu0 %v1097_v10 }
  0x2e   :  { %1100 = vmatprep.subr.bf16.mxu0 %v1099_v13 }
  0x2f   :  { %1130 = vmatpush3.bf16.msra.mxu1 %v1129_v12 }
  0x30   :  { %1132 = vmatprep.subr.bf16.mxu1 %v1131_v17 }
  0x31   :  { %1102 = vmatpush3.bf16.msra.mxu0 %v1101_v24 }
  0x32   :  { %1104 = vmatprep.subr.bf16.mxu0 %v1103_v27 }
  0x33   :  { %1134 = vmatpush3.bf16.msra.mxu1 %v1133_v26 }
  0x34   :  { %1136 = vmatprep.subr.bf16.mxu1 %v1135_v32 }
  0x35   :  { %1106 = vmatpush3.bf16.msra.mxu0 %v1105_v38 }
  0x36   :  { %1108 = vmatprep.subr.bf16.mxu0 %v1107_v40 }
  0x37   :  { %1138 = vmatpush3.bf16.msra.mxu1 %v1137_v39 }
  0x38   :  { %1140 = vmatprep.subr.bf16.mxu1 %v1139_v44 }
  0x39   :  { %12 = vsyncpa [#allocation3], 0  ;;  %1110 = vmatpush3.bf16.msra.mxu0 %v1109_v50  ;;  %v1113_v62 = vpack.c.bf16 %v109_v54, %v108_v53  ;;  %v1145_v63 = vpack.c.bf16 %v141_v57, %v140_v55  ;;  %v1115_v0 = vpack.c.bf16 %v127_v59, %v126_v58  ;;  %v110_v1 = vld [vmem:[%s1905_s1 + $0x270] sm:$0xff]  ;;  %v111_v2 = vld [vmem:[%s1905_s1 + $0x278] sm:$0xff]  ;;  %v1147_v4 = vpack.c.bf16 %v159_v61, %v158_v60 }
  0x3a   :  { %1112 = vmatprep.subr.bf16.mxu0 %v1111_v52  ;;  %v142_v3 = vld [vmem:[%s1905_s1 + $0x370] sm:$0xff]  ;;  %v143_v5 = vld [vmem:[%s1905_s1 + $0x378] sm:$0xff]  ;;  %v176_v6 = vld [vmem:[%s1905_s1 + $0x480] sm:$0xff]  ;;  %v1117_v8 = vpack.c.bf16 %v111_v2, %v110_v1  ;;  %v1252_v61 = vmov 0.0|0.0   ;;  %vm1253_vm0 = vmmov 0   ;;  %vm674_vm1 = vcmask 523264  }
  0x3b   :  { %1142 = vmatpush3.bf16.msra.mxu1 %v1141_v51  ;;  %v177_v7 = vld [vmem:[%s1905_s1 + $0x488] sm:$0xff]  ;;  %v1149_v9 = vpack.c.bf16 %v143_v5, %v142_v3  ;;  %v160_v11 = vld [vmem:[%s1905_s1 + $0x400] sm:$0xff]  ;;  %v178_v13 = vld [vmem:[%s1905_s1 + $0x490] sm:$0xff]  ;;  %vm748_vm2 = vcmask 60416  }
  0x3c   :  { %1144 = vmatprep.subr.bf16.mxu1 %v1143_v56  ;;  %v1151_v10 = vpack.c.bf16 %v177_v7, %v176_v6  ;;  %v161_v12 = vld [vmem:[%s1905_s1 + $0x408] sm:$0xff]  ;;  %v179_v14 = vld [vmem:[%s1905_s1 + $0x498] sm:$0xff]  ;;  %v1726_v15 = vld [vmem:[%s1904_s0 + $0x20] sm:$0xff]  ;;  %s1255_s0 = smov [#allocation2]  }
  0x3d   :  { %1114 = vmatpush3.bf16.msra.mxu0 %v1113_v62  ;;  %v1153_v16 = vpack.c.bf16 %v161_v12, %v160_v11  ;;  %v1155_v17 = vpack.c.bf16 %v179_v14, %v178_v13  ;;  %v162_v18 = vld [vmem:[%s1905_s1 + $0x410] sm:$0xff]  ;;  %v163_v19 = vld [vmem:[%s1905_s1 + $0x418] sm:$0xff]  ;;  %v208_v21 = vcombine.high %v1726_v15, %v1726_v15  ;;  %v180_v22 = vld [vmem:[%s1905_s1 + $0x4a0] sm:$0xff]  ;;  %s756_s9 = sshll.u32 %s1255_s0, 4  ;;  %s757_s9 = int_to_ptr.vmem [resolvable:$true] %s756_s9 }
  0x3e   :  { %1116 = vmatprep.subr.bf16.mxu0 %v1115_v0  ;;  %v181_v23 = vld [vmem:[%s1905_s1 + $0x4a8] sm:$0xff]  ;;  %v1157_v24 = vpack.c.bf16 %v163_v19, %v162_v18  ;;  %v164_v27 = vld [vmem:[%s1905_s1 + $0x420] sm:$0xff]  ;;  %v182_v29 = vld [vmem:[%s1905_s1 + $0x4b0] sm:$0xff]  ;;  %v1254_v19 = vmov 0.0   ;;  %p1233_p1 = scmp.lt.s32.totalorder %s757_s9, %s757_s9 }
  0x3f   :  { %1146 = vmatpush3.bf16.msra.mxu1 %v1145_v63  ;;  %v1159_v26 = vpack.c.bf16 %v181_v23, %v180_v22  ;;  %v165_v28 = vld [vmem:[%s1905_s1 + $0x428] sm:$0xff]  ;;  %v166_v31 = vld [vmem:[%s1905_s1 + $0x430] sm:$0xff]  ;;  %v167_v32 = vld [vmem:[%s1905_s1 + $0x438] sm:$0xff] }
  0x40   :  { %1148 = vmatprep.subr.bf16.mxu1 %v1147_v4  ;;  %v184_v33 = vld [vmem:[%s1905_s1 + $0x4c0] sm:$0xff]  ;;  %v185_v34 = vld [vmem:[%s1905_s1 + $0x4c8] sm:$0xff]  ;;  %v1165_v35 = vpack.c.bf16 %v167_v32, %v166_v31  ;;  %v186_v39 = vld [vmem:[%s1905_s1 + $0x4d0] sm:$0xff] }
  0x41   :  { %1118 = vmatpush3.bf16.msra.mxu0 %v1117_v8  ;;  %v1167_v36 = vpack.c.bf16 %v185_v34, %v184_v33  ;;  %v168_v37 = vld [vmem:[%s1905_s1 + $0x440] sm:$0xff]  ;;  %v169_v38 = vld [vmem:[%s1905_s1 + $0x448] sm:$0xff]  ;;  %v187_v40 = vld [vmem:[%s1905_s1 + $0x4d8] sm:$0xff] }
  0x42   :  { %1152 = vmatprep.subr.bf16.mxu0 %v1151_v10  ;;  %v1169_v41 = vpack.c.bf16 %v169_v38, %v168_v37  ;;  %v1171_v42 = vpack.c.bf16 %v187_v40, %v186_v39  ;;  %v170_v43 = vld [vmem:[%s1905_s1 + $0x450] sm:$0xff]  ;;  %v171_v44 = vld [vmem:[%s1905_s1 + $0x458] sm:$0xff]  ;;  %v188_v45 = vld [vmem:[%s1905_s1 + $0x4e0] sm:$0xff] }
  0x43   :  { %1150 = vmatpush3.bf16.msra.mxu1 %v1149_v9  ;;  %v189_v46 = vld [vmem:[%s1905_s1 + $0x4e8] sm:$0xff]  ;;  %v1173_v47 = vpack.c.bf16 %v171_v44, %v170_v43  ;;  %v172_v49 = vld [vmem:[%s1905_s1 + $0x460] sm:$0xff]  ;;  %v190_v51 = vld [vmem:[%s1905_s1 + $0x4f0] sm:$0xff] }
  0x44   :  { %419 = vmatmul.mubr.f32.vlgmr.msra.gmra.mrb[2].mxu0 %v1604_v20  ;;  %v183_v20 = vld [vmem:[%s1905_s1 + $0x4b8] sm:$0xff]  ;;  %v1175_v48 = vpack.c.bf16 %v189_v46, %v188_v45  ;;  %v173_v50 = vld [vmem:[%s1905_s1 + $0x468] sm:$0xff]  ;;  %v174_v55 = vld [vmem:[%s1905_s1 + $0x470] sm:$0xff]  ;;  %1183 = vmatprep.subr.bf16.mxu1 %v1252_v61 }
  0x45   :  { %1154 = vmatpush3.bf16.msra.mxu0 %v1153_v16  ;;  %558 = vmatprep.mubr.f32.mxu0 %v208_v21  ;;  %v1163_v30 = vpack.c.bf16 %v183_v20, %v182_v29  ;;  %v191_v52 = vld [vmem:[%s1905_s1 + $0x4f8] sm:$0xff]  ;;  %v1177_v53 = vpack.c.bf16 %v173_v50, %v172_v49  ;;  %v565_v58 = vld [vmem:[%s1907_s3] sm:$0xff]  ;;  %v566_v59 = vld [vmem:[%s1907_s3 + $0x8] sm:$0xff] }
  0x46   :  { %489 = vmatmul.mubr.f32.vlgmr.msra.gmra.mrb[2].mxu1 %v1617_v25  ;;  %1156 = vmatprep.subr.bf16.mxu0 %v1155_v17  ;;  %v1161_v25 = vpack.c.bf16 %v165_v28, %v164_v27  ;;  %v1179_v54 = vpack.c.bf16 %v191_v52, %v190_v51  ;;  %v175_v56 = vld [vmem:[%s1905_s1 + $0x478] sm:$0xff]  ;;  %v567_v60 = vld [vmem:[%s1907_s3 + $0x10] sm:$0xff]  ;;  %v1184_v62 = vpack.c.bf16 %v566_v59, %v565_v58  ;;  %v569_v1 = vld [vmem:[%s1907_s3 + $0x20] sm:$0xff] }
  0x47   :  { %v1181_v57 = vpack.c.bf16 %v175_v56, %v174_v55  ;;  %v568_v63 = vld [vmem:[%s1907_s3 + $0x18] sm:$0xff]  ;;  %v570_v2 = vld [vmem:[%s1907_s3 + $0x28] sm:$0xff]  ;;  %v571_v4 = vld [vmem:[%s1907_s3 + $0x30] sm:$0xff]  ;;  %1001 = vmatprep.mubr.msk.f32.mxu1 %vm1253_vm0, %v1254_v19 }
  0x48   :  { %1185 = vmatpush3.bf16.msra.mxu1 %v1184_v62  ;;  %v1187_v0 = vpack.c.bf16 %v568_v63, %v567_v60  ;;  %v1190_v3 = vpack.c.bf16 %v570_v2, %v569_v1  ;;  %v572_v5 = vld [vmem:[%s1907_s3 + $0x38] sm:$0xff]  ;;  %v573_v7 = vld [vmem:[%s1907_s3 + $0x40] sm:$0xff]  ;;  %v574_v8 = vld [vmem:[%s1907_s3 + $0x48] sm:$0xff] }
  0x49   :  { %1158 = vmatpush3.bf16.msra.mxu0 %v1157_v24  ;;  %1186 = vmatprep.subr.bf16.mxu1 %v1252_v61  ;;  %v1193_v6 = vpack.c.bf16 %v572_v5, %v571_v4  ;;  %v1196_v9 = vpack.c.bf16 %v574_v8, %v573_v7  ;;  %v575_v10 = vld [vmem:[%s1907_s3 + $0x50] sm:$0xff]  ;;  %v576_v11 = vld [vmem:[%s1907_s3 + $0x58] sm:$0xff]  ;;  %v577_v13 = vld [vmem:[%s1907_s3 + $0x60] sm:$0xff] }
  0x4a   :  { %1160 = vmatprep.subr.bf16.mxu0 %v1159_v26  ;;  %v1199_v12 = vpack.c.bf16 %v576_v11, %v575_v10  ;;  %v578_v14 = vld [vmem:[%s1907_s3 + $0x68] sm:$0xff]  ;;  %v579_v16 = vld [vmem:[%s1907_s3 + $0x70] sm:$0xff]  ;;  %v580_v17 = vld [vmem:[%s1907_s3 + $0x78] sm:$0xff] }
  0x4b   :  { %v1205_v18 = vpack.c.bf16 %v580_v17, %v579_v16  ;;  %v659_v21 = vld [vmem:[%s1909_s5] sm:$0xff]  ;;  %v660_v22 = vld [vmem:[%s1909_s5 + $0x8] sm:$0xff]  ;;  %v661_v23 = vld [vmem:[%s1909_s5 + $0x10] sm:$0xff] }
  0x4c   :  { %1188 = vmatpush3.bf16.msra.mxu1 %v1187_v0  ;;  %v1208_v24 = vpack.c.bf16 %v660_v22, %v659_v21  ;;  %v662_v26 = vld [vmem:[%s1909_s5 + $0x18] sm:$0xff]  ;;  %v663_v28 = vld [vmem:[%s1909_s5 + $0x20] sm:$0xff]  ;;  %v664_v29 = vld [vmem:[%s1909_s5 + $0x28] sm:$0xff] }
  0x4d   :  { %1162 = vmatpush3.bf16.msra.mxu0 %v1161_v25  ;;  %1189 = vmatprep.subr.bf16.mxu1 %v1252_v61  ;;  %v1211_v27 = vpack.c.bf16 %v662_v26, %v661_v23  ;;  %v1214_v20 = vpack.c.bf16 %v664_v29, %v663_v28  ;;  %v665_v51 = vld [vmem:[%s1909_s5 + $0x30] sm:$0xff]  ;;  %v666_v52 = vld [vmem:[%s1909_s5 + $0x38] sm:$0xff]  ;;  %v766_v59 = vld [vmem:[%s1910_s6] ss:$0 sm:$0xff]  ;;  %s1228_s5 = scalar_lea.vmem %s757_s9, 64 }
  0x4e   :  { %1164 = vmatprep.subr.bf16.mxu0 %v1163_v30  ;;  %v764_v30 = vld [vmem:[%s1906_s2] ss:$0 sm:$0xff]  ;;  %p1229_p0 = scmp.ne.s32.totalorder %s757_s9, %s1228_s5  ;;  %p1234_p2 = scmp.lt.s32.totalorder %s1228_s5, %s1228_s5 }
  0x50   :  { %1191 = vmatpush3.bf16.msra.mxu1 %v1190_v3  ;;  %p1235_p3 = por %p1234_p2, %p1233_p1 }
  0x51   :  { %1166 = vmatpush3.bf16.msra.mxu0 %v1165_v35  ;;  %1192 = vmatprep.subr.bf16.mxu1 %v1252_v61 }
  0x52   :  { %1168 = vmatprep.subr.bf16.mxu0 %v1167_v36  ;;  %p1236_p4 = pnand %p1235_p3, %p1229_p0 }
  0x54   :  { %1194 = vmatpush3.bf16.msra.mxu1 %v1193_v6 }
  0x55   :  { %1170 = vmatpush3.bf16.msra.mxu0 %v1169_v41  ;;  %1195 = vmatprep.subr.bf16.mxu1 %v1252_v61 }
  0x56   :  { %1172 = vmatprep.subr.bf16.mxu0 %v1171_v42 }
  0x58   :  { %1197 = vmatpush3.bf16.msra.mxu1 %v1196_v9 }
  0x59   :  { %1174 = vmatpush3.bf16.msra.mxu0 %v1173_v47  ;;  %1198 = vmatprep.subr.bf16.mxu1 %v1252_v61 }
  0x5a   :  { %1176 = vmatprep.subr.bf16.mxu0 %v1175_v48 }
  0x5c   :  { %1200 = vmatpush3.bf16.msra.mxu1 %v1199_v12 }
  0x5d   :  { %1178 = vmatpush3.bf16.msra.mxu0 %v1177_v53  ;;  %1201 = vmatprep.subr.bf16.mxu1 %v1252_v61  ;;  %v1217_v53 = vpack.c.bf16 %v666_v52, %v665_v51 }
  0x5e   :  { %1180 = vmatprep.subr.bf16.mxu0 %v1179_v54  ;;  %v765_v54 = vld [vmem:[%s1908_s4] ss:$0 sm:$0xff] }
  0x61   :  { %1182 = vmatpush3.bf16.msra.mxu0 %v1181_v57 }
  0x62   :  { %1207 = vmatprep.subr.bf16.mxu0 %v1252_v61 }
  0x64   :  { %559 = vmatmul.mubr.f32.vlgmr.msra.gmra.mrb[4].mxu0 %v1726_v15  ;;  %v1202_v15 = vpack.c.bf16 %v578_v14, %v577_v13 }
  0x65   :  { %1020 = vmatprep.mubr.msk.f32.mxu0 %vm1253_vm0, %v1254_v19  ;;  %1209 = vmatpush3.bf16.msra.mxu0 %v1208_v24 }
  0x66   :  { %1203 = vmatpush3.bf16.msra.mxu1 %v1202_v15  ;;  %1210 = vmatprep.subr.bf16.mxu0 %v1252_v61 }
  0x67   :  { %1204 = vmatprep.subr.bf16.mxu1 %v1252_v61 }
  0x69   :  { %1212 = vmatpush3.bf16.msra.mxu0 %v1211_v27 }
  0x6a   :  { %1206 = vmatpush3.bf16.msra.mxu1 %v1205_v18  ;;  %1213 = vmatprep.subr.bf16.mxu0 %v1252_v61 }
  0x6d   :  { %1215 = vmatpush3.bf16.msra.mxu0 %v1214_v20 }
  0x6e   :  { %1216 = vmatprep.subr.bf16.mxu0 %v1252_v61 }
  0x71   :  { %1218 = vmatpush3.bf16.msra.mxu0 %v1217_v53 }
  0xf7   :  { %v800_v25 = vpop.f32.mrb[0].mxu0 }
  0xf8   :  { %v801_v31 = vpop.f32.mrb[1].mxu0 }
  0xf9   :  { %v835_v32 = vpop.f32.mrb[0].mxu1  ;;  %v802_v33 = vadd.f32 %v801_v31, %v800_v25 }
  0xfa   :  { %v836_v34 = vpop.f32.mrb[1].mxu1 }
  0xfb   :  { %v837_v35 = vadd.f32 %v836_v34, %v835_v32  ;;  %v281_v36 = vadd.f32 %v802_v33, %v764_v30 }
  0xfd   :  { %v351_v37 = vadd.f32 %v837_v35, %v281_v36 }
 0x117   :  { %v870_v38 = vpop.f32.mrb[2].mxu0 }
 0x118   :  { %v871_v39 = vpop.f32.mrb[3].mxu0 }
 0x119   :  { %v905_v40 = vpop.f32.mrb[2].mxu1  ;;  %v872_v41 = vadd.f32 %v871_v39, %v870_v38 }
 0x11a   :  { %v906_v42 = vpop.f32.mrb[3].mxu1 }
 0x11b   :  { %v907_v43 = vadd.f32 %v906_v42, %v905_v40  ;;  %v421_v44 = vadd.f32 %v872_v41, %v351_v37 }
 0x11d   :  { %v491_v45 = vadd.f32 %v907_v43, %v421_v44 }
 0x137   :  { %v940_v46 = vpop.f32.mrb[4].mxu0 }
 0x138   :  { %v941_v47 = vpop.f32.mrb[5].mxu0 }
 0x139   :  { %v942_v48 = vadd.f32 %v941_v47, %v940_v46 }
 0x13b   :  { %v561_v49 = vadd.f32 %v942_v48, %v491_v45 }
 0x13d   :  { %v564_v50 = vmax.f32 %v561_v49, 0.0 }
 0x13f   :  { %1002 = vmatmul.mubr.f32.vlgmr.msra.gmra.mrb[4].mxu1 %v564_v50 }
 0x212   :  { %v654_v55 = vpop.f32.mrb[4].mxu1 }
 0x213   :  { %v655_v56 = vadd.f32 %v765_v54, %v654_v55  ;;  %v1003_v57 = vpop.f32.mrb[5].mxu1 }
 0x215   :  { %v658_v58 = vmax.f32 %v655_v56, 0.0 }
 0x217   :  { %1021 = vmatmul.mubr.msk.f32.vlgmr.msra.gmra.mrb[6].mxu0 %vm674_vm1, %v658_v58 }
 0x2ea   :  { %v744_v60 = vpop.f32.mrb[6].mxu0 }
 0x2eb   :  { %v745_v61 = vadd.f32 %v766_v59, %v744_v60  ;;  %v1022_v62 = vpop.f32.mrb[7].mxu0 }
 0x2ed   :  { %749 = vst.msk [vmem:[#allocation2] sm:$0xf] %vm748_vm2, %v745_v61 }
 0x2ee   :  { %1239 = shalt.err (!%p1236_p4)
}
 0x2ef   :  { %s1240_s11 = scalar_lea.hbm %s1911_s7, 64 }
 0x2f0   :  { %p1241_p5 = scmp.ne.s32.totalorder %s1911_s7, %s1240_s11  ;;  %p1244_p6 = scmp.lt.u32.totalorder %s1240_s11, %s1911_s7 }
 0x2f2   :  { %p1246_p7 = pnand %p1244_p6, %p1241_p5 }
 0x2f4   :  { %1249 = shalt.err (!%p1246_p7)
}
 0x2f5   :  { %759 = dma.vmem_to_hbm [thread:$0]  %s757_s9, 64, %s1911_s7, [#allocation3]  }
 0x2f6   :  { %1250 = dma.done.wait [#allocation3], 64  }
 0x2f7   :  { %1251 = vsyncadd [#allocation3], 4294967232 }
 0x2f8   :  { %763 = vsyncpa [#allocation3], 1 }

// kernel: multi_head_attention_classifier_forward.2
= control target key start
LH: loop header
LB: loop body
LE: loop exit
PB: predicated region body
PF: predicated region fallthrough
CT: control target
= control target key end

     0   :  { %s5794_s0 = inlined_call_operand.vmem [shape: f32[20,256], index: 0, kind: input, shape index: {}]   ;;  %s5795_s1 = inlined_call_operand.vmem [shape: f32[20,256], index: 1, kind: input, shape index: {}]   ;;  %s5796_s2 = inlined_call_operand.vmem [shape: f32[256,256], index: 2, kind: input, shape index: {}]   ;;  %s5797_s3 = inlined_call_operand.vmem [shape: f32[1,256], index: 3, kind: input, shape index: {}]   ;;  %s5798_s4 = inlined_call_operand.hbm [shape: f32[256,256], index: 4, kind: input, shape index: {}]   ;;  %s5799_s5 = inlined_call_operand.vmem [shape: f32[1,256], index: 5, kind: input, shape index: {}]   ;;  %s5800_s6 = inlined_call_operand.hbm [shape: f32[256,256], index: 6, kind: input, shape index: {}]   ;;  %s5801_s7 = inlined_call_operand.vmem [shape: f32[1,256], index: 7, kind: input, shape index: {}]   ;;  %s5802_s8 = inlined_call_operand.hbm [shape: f32[256,256], index: 8, kind: input, shape index: {}]   ;;  %s5803_s9 = inlined_call_operand.vmem [shape: f32[1,256], index: 9, kind: input, shape index: {}]   ;;  %s5804_s10 = inlined_call_operand.hbm [shape: f32[1,256], index: 10, kind: input, shape index: {}]   ;;  %s5805_s11 = inlined_call_operand.hbm [shape: f32[1,256], index: 11, kind: input, shape index: {}]   ;;  %s5806_s12 = inlined_call_operand.hbm [shape: f32[256,512], index: 12, kind: input, shape index: {}]   ;;  %s5807_s13 = inlined_call_operand.vmem [shape: f32[1,512], index: 13, kind: input, shape index: {}]   ;;  %s5808_s14 = inlined_call_operand.hbm [shape: f32[512,256], index: 14, kind: input, shape index: {}]   ;;  %s5809_s15 = inlined_call_operand.hbm [shape: f32[1,256], index: 15, kind: input, shape index: {}]   ;;  %s5810_s16 = inlined_call_operand.hbm [shape: f32[1,256], index: 16, kind: input, shape index: {}]   ;;  %s5811_s17 = inlined_call_operand.hbm [shape: f32[1,256], index: 17, kind: input, shape index: {}]   ;;  %s5812_s18 = inlined_call_operand.vmem [shape: f32[20,256], index: 18, kind: output, shape index: {}]  }
   0x1   :  { %5818 = sst [smem:[#allocation28_spill]] %s5794_s0 }
   0x2   :  { %5819 = sst [smem:[#allocation29_spill]] %s5795_s1 }
   0x3   :  { %5820 = sst [smem:[#allocation30_spill]] %s5796_s2 }
   0x4   :  { %23 = vsyncpa [#allocation7], 0 }
   0x5   :  { %24 = vsyncpa [#allocation9], 0 }
   0x6   :  { %25 = vsyncpa [#allocation12], 0 }
   0x7   :  { %26 = vsyncpa [#allocation15], 0 }
   0x8   :  { %27 = vsyncpa [#allocation18], 0 }
   0x9   :  { %28 = vsyncpa [#allocation21], 0  ;;  %s4751_s27 = smov [#allocation8]   ;;  %s4752_s29 = smov [#allocation11]  }
   0xa   :  { %s56_s28 = sshll.u32 %s4751_s27, 4  ;;  %s85_s30 = sshll.u32 %s4752_s29, 4  ;;  %s57_s28 = int_to_ptr.vmem [resolvable:$true] %s56_s28  ;;  %s86_s30 = int_to_ptr.vmem [resolvable:$true] %s85_s30 }
   0xb   :  { %s4519_s1 = scalar_lea.hbm %s5800_s6, 8192 }
   0xc   :  { %p4520_p0 = scmp.ne.s32.totalorder %s5800_s6, %s4519_s1  ;;  %p4523_p1 = scmp.lt.u32.totalorder %s4519_s1, %s5800_s6 }
   0xe   :  { %p4525_p2 = pnand %p4523_p1, %p4520_p0 }
  0x10   :  { %4528 = shalt.err (!%p4525_p2)
}
  0x11   :  { %s4529_s23 = scalar_lea.vmem %s57_s28, 8192  ;;  %p4534_p4 = scmp.lt.s32.totalorder %s57_s28, %s57_s28 }
  0x12   :  { %p4530_p3 = scmp.ne.s32.totalorder %s57_s28, %s4529_s23  ;;  %p4535_p5 = scmp.lt.s32.totalorder %s4529_s23, %s4529_s23 }
  0x14   :  { %p4536_p6 = por %p4535_p5, %p4534_p4 }
  0x16   :  { %p4537_p7 = pnand %p4536_p6, %p4530_p3 }
  0x18   :  { %4540 = shalt.err (!%p4537_p7)
}
  0x19   :  { %s5816_s24 = smov 256   ;;  %s4754_s25 = smov 16  }
  0x1a   :  { %62 = dma.hbm_to_vmem [thread:$0]  %s5800_s6, 8192, %s57_s28, [#allocation9], %s5816_s24, %s5816_s24, %s4754_s25  }
  0x1b   :  { %s4541_s19 = scalar_lea.hbm %s5804_s10, 32 }
  0x1c   :  { %p4542_p8 = scmp.ne.s32.totalorder %s5804_s10, %s4541_s19  ;;  %p4545_p9 = scmp.lt.u32.totalorder %s4541_s19, %s5804_s10 }
  0x1e   :  { %p4547_p10 = pnand %p4545_p9, %p4542_p8 }
  0x20   :  { %4550 = shalt.err (!%p4547_p10)
}
  0x21   :  { %s4551_s2 = scalar_lea.vmem %s86_s30, 32  ;;  %p4556_p12 = scmp.lt.s32.totalorder %s86_s30, %s86_s30 }
  0x22   :  { %p4552_p11 = scmp.ne.s32.totalorder %s86_s30, %s4551_s2  ;;  %p4557_p13 = scmp.lt.s32.totalorder %s4551_s2, %s4551_s2 }
  0x24   :  { %p4558_p0 = por %p4557_p13, %p4556_p12 }
  0x26   :  { %p4559_p1 = pnand %p4558_p0, %p4552_p11 }
  0x28   :  { %4562 = shalt.err (!%p4559_p1)
}
  0x29   :  { %88 = dma.hbm_to_vmem [thread:$0]  %s5804_s10, 32, %s86_s30, [#allocation12]  }
  0x2a   :  { %s4755_s23 = smov [#allocation14]   ;;  %s4563_s0 = scalar_lea.hbm %s5806_s12, 16384 }
  0x2b   :  { %s104_s26 = sshll.u32 %s4755_s23, 4  ;;  %p4564_p2 = scmp.ne.s32.totalorder %s5806_s12, %s4563_s0  ;;  %s105_s26 = int_to_ptr.vmem [resolvable:$true] %s104_s26 }
  0x2c   :  { %p4567_p3 = scmp.lt.u32.totalorder %s4563_s0, %s5806_s12 }
  0x2e   :  { %p4569_p4 = pnand %p4567_p3, %p4564_p2 }
  0x30   :  { %4572 = shalt.err (!%p4569_p4)
}
  0x31   :  { %s4573_s22 = scalar_lea.vmem %s105_s26, 16384  ;;  %p4578_p6 = scmp.lt.s32.totalorder %s105_s26, %s105_s26 }
  0x32   :  { %p4574_p5 = scmp.ne.s32.totalorder %s105_s26, %s4573_s22  ;;  %p4579_p7 = scmp.lt.s32.totalorder %s4573_s22, %s4573_s22 }
  0x34   :  { %p4580_p8 = por %p4579_p7, %p4578_p6 }
  0x36   :  { %p4581_p9 = pnand %p4580_p8, %p4574_p5 }
  0x38   :  { %4584 = shalt.err (!%p4581_p9)
}
  0x39   :  { %s4756_s10 = smov 512   ;;  %s4757_s30 = smov 32  }
  0x3a   :  { %110 = dma.hbm_to_vmem [thread:$0]  %s5806_s12, 16384, %s105_s26, [#allocation15], %s4756_s10, %s4756_s10, %s4757_s30  }
  0x3b   :  { %s4758_s28 = smov [#allocation17]   ;;  %s4759_s27 = smov [#allocation6]  }
  0x3c   :  { %s131_s23 = sshll.u32 %s4758_s28, 4  ;;  %s42_s29 = sshll.u32 %s4759_s27, 4  ;;  %s132_s23 = int_to_ptr.vmem [resolvable:$true] %s131_s23  ;;  %s43_s29 = int_to_ptr.vmem [resolvable:$true] %s42_s29 }
  0x3d   :  { %s4585_s1 = scalar_lea.hbm %s5809_s15, 32 }
  0x3e   :  { %p4586_p10 = scmp.ne.s32.totalorder %s5809_s15, %s4585_s1  ;;  %p4589_p11 = scmp.lt.u32.totalorder %s4585_s1, %s5809_s15 }
  0x40   :  { %p4591_p12 = pnand %p4589_p11, %p4586_p10 }
  0x42   :  { %4594 = shalt.err (!%p4591_p12)
}
  0x43   :  { %s4595_s12 = scalar_lea.vmem %s132_s23, 32  ;;  %p4600_p0 = scmp.lt.s32.totalorder %s132_s23, %s132_s23 }
  0x44   :  { %p4596_p13 = scmp.ne.s32.totalorder %s132_s23, %s4595_s12  ;;  %p4601_p1 = scmp.lt.s32.totalorder %s4595_s12, %s4595_s12 }
  0x46   :  { %p4602_p2 = por %p4601_p1, %p4600_p0 }
  0x48   :  { %p4603_p3 = pnand %p4602_p2, %p4596_p13 }
  0x4a   :  { %4606 = shalt.err (!%p4603_p3)
}
  0x4b   :  { %134 = dma.hbm_to_vmem [thread:$0]  %s5809_s15, 32, %s132_s23, [#allocation18]  }
  0x4c   :  { %s4607_s6 = scalar_lea.hbm %s5798_s4, 8192 }
  0x4d   :  { %p4608_p4 = scmp.ne.s32.totalorder %s5798_s4, %s4607_s6  ;;  %p4611_p5 = scmp.lt.u32.totalorder %s4607_s6, %s5798_s4 }
  0x4f   :  { %p4613_p6 = pnand %p4611_p5, %p4608_p4 }
  0x51   :  { %4616 = shalt.err (!%p4613_p6)
}
  0x52   :  { %s4617_s19 = scalar_lea.vmem %s43_s29, 8192  ;;  %p4622_p8 = scmp.lt.s32.totalorder %s43_s29, %s43_s29 }
  0x53   :  { %p4618_p7 = scmp.ne.s32.totalorder %s43_s29, %s4617_s19  ;;  %p4623_p9 = scmp.lt.s32.totalorder %s4617_s19, %s4617_s19 }
  0x55   :  { %p4624_p10 = por %p4623_p9, %p4622_p8 }
  0x57   :  { %p4625_p11 = pnand %p4624_p10, %p4618_p7 }
  0x59   :  { %4628 = shalt.err (!%p4625_p11)
}
  0x5a   :  { %s5821_s15 = smov 256   ;;  %s4760_s20 = smov [#allocation10]  }
  0x5b   :  { %48 = dma.hbm_to_vmem [thread:$0]  %s5798_s4, 8192, %s43_s29, [#allocation7], %s5821_s15, %s5821_s15, %s4754_s25  }
  0x5c   :  { %s70_s21 = sshll.u32 %s4760_s20, 4  ;;  %s4761_s22 = smov [#allocation13]   ;;  %s71_s21 = int_to_ptr.vmem [resolvable:$true] %s70_s21 }
  0x5d   :  { %s95_s12 = sshll.u32 %s4761_s22, 4  ;;  %s4629_s30 = scalar_lea.hbm %s5802_s8, 8192  ;;  %s96_s12 = int_to_ptr.vmem [resolvable:$true] %s95_s12 }
  0x5e   :  { %p4630_p12 = scmp.ne.s32.totalorder %s5802_s8, %s4629_s30  ;;  %p4633_p13 = scmp.lt.u32.totalorder %s4629_s30, %s5802_s8 }
  0x60   :  { %p4635_p0 = pnand %p4633_p13, %p4630_p12 }
  0x62   :  { %4638 = shalt.err (!%p4635_p0)
}
  0x63   :  { %s4639_s4 = scalar_lea.vmem %s71_s21, 8192  ;;  %p4644_p2 = scmp.lt.s32.totalorder %s71_s21, %s71_s21 }
  0x64   :  { %p4640_p1 = scmp.ne.s32.totalorder %s71_s21, %s4639_s4  ;;  %p4645_p3 = scmp.lt.s32.totalorder %s4639_s4, %s4639_s4 }
  0x66   :  { %p4646_p4 = por %p4645_p3, %p4644_p2 }
  0x68   :  { %p4647_p5 = pnand %p4646_p4, %p4640_p1 }
  0x6a   :  { %4650 = shalt.err (!%p4647_p5)
}
  0x6b   :  { %76 = dma.hbm_to_vmem [thread:$0]  %s5802_s8, 8192, %s71_s21, [#allocation9], %s5821_s15, %s5821_s15, %s4754_s25  }
  0x6c   :  { %s4651_s23 = scalar_lea.hbm %s5805_s11, 32 }
  0x6d   :  { %p4652_p6 = scmp.ne.s32.totalorder %s5805_s11, %s4651_s23  ;;  %p4655_p7 = scmp.lt.u32.totalorder %s4651_s23, %s5805_s11 }
  0x6f   :  { %p4657_p8 = pnand %p4655_p7, %p4652_p6 }
  0x71   :  { %4660 = shalt.err (!%p4657_p8)
}
  0x72   :  { %s4661_s10 = scalar_lea.vmem %s96_s12, 32  ;;  %p4666_p10 = scmp.lt.s32.totalorder %s96_s12, %s96_s12 }
  0x73   :  { %p4662_p9 = scmp.ne.s32.totalorder %s96_s12, %s4661_s10  ;;  %p4667_p11 = scmp.lt.s32.totalorder %s4661_s10, %s4661_s10 }
  0x75   :  { %p4668_p12 = por %p4667_p11, %p4666_p10 }
  0x77   :  { %p4669_p13 = pnand %p4668_p12, %p4662_p9 }
  0x79   :  { %4672 = shalt.err (!%p4669_p13)
}
  0x7a   :  { %98 = dma.hbm_to_vmem [thread:$0]  %s5805_s11, 32, %s96_s12, [#allocation12]  }
  0x7b   :  { %s4762_s30 = smov [#allocation16]   ;;  %s4763_s6 = smov [#allocation19]  }
  0x7c   :  { %s118_s2 = sshll.u32 %s4762_s30, 4  ;;  %s141_s24 = sshll.u32 %s4763_s6, 4  ;;  %s119_s2 = int_to_ptr.vmem [resolvable:$true] %s118_s2  ;;  %s142_s24 = int_to_ptr.vmem [resolvable:$true] %s141_s24 }
  0x7d   :  { %s4673_s29 = scalar_lea.hbm %s5808_s14, 16384 }
  0x7e   :  { %p4674_p0 = scmp.ne.s32.totalorder %s5808_s14, %s4673_s29  ;;  %p4677_p1 = scmp.lt.u32.totalorder %s4673_s29, %s5808_s14 }
  0x80   :  { %p4679_p2 = pnand %p4677_p1, %p4674_p0 }
  0x82   :  { %4682 = shalt.err (!%p4679_p2)
}
  0x83   :  { %s4683_s11 = scalar_lea.vmem %s119_s2, 16384  ;;  %p4688_p4 = scmp.lt.s32.totalorder %s119_s2, %s119_s2 }
  0x84   :  { %p4684_p3 = scmp.ne.s32.totalorder %s119_s2, %s4683_s11  ;;  %p4689_p5 = scmp.lt.s32.totalorder %s4683_s11, %s4683_s11 }
  0x86   :  { %p4690_p6 = por %p4689_p5, %p4688_p4 }
  0x88   :  { %p4691_p7 = pnand %p4690_p6, %p4684_p3 }
  0x8a   :  { %4694 = shalt.err (!%p4691_p7)
}
  0x8b   :  { %124 = dma.hbm_to_vmem [thread:$0]  %s5808_s14, 16384, %s119_s2, [#allocation15], %s5821_s15, %s5821_s15, %s4754_s25  }
  0x8c   :  { %s4695_s26 = scalar_lea.hbm %s5810_s16, 32 }
  0x8d   :  { %p4696_p8 = scmp.ne.s32.totalorder %s5810_s16, %s4695_s26  ;;  %p4699_p9 = scmp.lt.u32.totalorder %s4695_s26, %s5810_s16 }
  0x8f   :  { %p4701_p10 = pnand %p4699_p9, %p4696_p8 }
  0x91   :  { %4704 = shalt.err (!%p4701_p10)
}
  0x92   :  { %s4705_s6 = scalar_lea.vmem %s142_s24, 32  ;;  %p4710_p12 = scmp.lt.s32.totalorder %s142_s24, %s142_s24 }
  0x93   :  { %p4706_p11 = scmp.ne.s32.totalorder %s142_s24, %s4705_s6  ;;  %p4711_p13 = scmp.lt.s32.totalorder %s4705_s6, %s4705_s6 }
  0x95   :  { %p4712_p0 = por %p4711_p13, %p4710_p12 }
  0x97   :  { %p4713_p1 = pnand %p4712_p0, %p4706_p11 }
  0x99   :  { %4716 = shalt.err (!%p4713_p1)
}
  0x9a   :  { %144 = dma.hbm_to_vmem [thread:$0]  %s5810_s16, 32, %s142_s24, [#allocation18]  }
  0x9b   :  { %s4764_s15 = smov [#allocation20]   ;;  %s4717_s29 = scalar_lea.hbm %s5811_s17, 32 }
  0x9c   :  { %s151_s2 = sshll.u32 %s4764_s15, 4  ;;  %p4718_p2 = scmp.ne.s32.totalorder %s5811_s17, %s4717_s29  ;;  %s152_s2 = int_to_ptr.vmem [resolvable:$true] %s151_s2 }
  0x9d   :  { %p4721_p3 = scmp.lt.u32.totalorder %s4717_s29, %s5811_s17 }
  0x9f   :  { %p4723_p4 = pnand %p4721_p3, %p4718_p2 }
  0xa1   :  { %4726 = shalt.err (!%p4723_p4)
}
  0xa2   :  { %s4727_s11 = scalar_lea.vmem %s152_s2, 32  ;;  %p4732_p6 = scmp.lt.s32.totalorder %s152_s2, %s152_s2 }
  0xa3   :  { %p4728_p5 = scmp.ne.s32.totalorder %s152_s2, %s4727_s11  ;;  %p4733_p7 = scmp.lt.s32.totalorder %s4727_s11, %s4727_s11 }
  0xa5   :  { %p4734_p8 = por %p4733_p7, %p4732_p6 }
  0xa7   :  { %p4735_p9 = pnand %p4734_p8, %p4728_p5 }
  0xa9   :  { %4738 = shalt.err (!%p4735_p9)
}
  0xaa   :  { %154 = dma.hbm_to_vmem [thread:$0]  %s5811_s17, 32, %s152_s2, [#allocation21]  }
  0xab   :  { %4739 = dma.done.wait [#allocation7], 8192  }
  0xac   :  { %4740 = vsyncadd [#allocation7], 4294959104 }
  0xad   :  { %4741 = dma.done.wait [#allocation9], 16384  }
  0xae   :  { %4742 = vsyncadd [#allocation9], 4294950912 }
  0xaf   :  { %4743 = dma.done.wait [#allocation12], 64  }
  0xb0   :  { %4744 = vsyncadd [#allocation12], 4294967232 }
  0xb1   :  { %4745 = dma.done.wait [#allocation15], 32768  }
  0xb2   :  { %4746 = vsyncadd [#allocation15], 4294934528 }
  0xb3   :  { %4747 = dma.done.wait [#allocation18], 64  }
  0xb4   :  { %4748 = vsyncadd [#allocation18], 4294967232 }
  0xb5   :  { %4749 = dma.done.wait [#allocation21], 32  }
  0xb6   :  { %4750 = vsyncadd [#allocation21], 4294967264  ;;  %v369_v0 = vld [vmem:[#allocation6 + $0x8] sm:$0xff]  ;;  %v371_v1 = vld [vmem:[#allocation6 + $0x18] sm:$0xff]  ;;  %s5822_s17 = sld [smem:[#allocation30_spill]]  ;;  %s5823_s20 = sld [smem:[#allocation28_spill]] }
  0xb7   :  { %v368_v2 = vld [vmem:[#allocation6] sm:$0xff]  ;;  %v3799_v3 = vpack.c.bf16 %v371_v1, %v369_v0  ;;  %v370_v4 = vld [vmem:[#allocation6 + $0x10] sm:$0xff]  ;;  %v373_v11 = vld [vmem:[#allocation6 + $0x28] sm:$0xff]  ;;  %s5824_s10 = sld [smem:[#allocation29_spill]]  ;;  %vm4766_vm0 = vmmov 0   ;;  %vm836_vm1 = vcmask 36864  }
  0xb8   :  { %v3801_v7 = vpack.c.bf16 %v370_v4, %v368_v2  ;;  %v375_v13 = vld [vmem:[#allocation6 + $0x38] sm:$0xff]  ;;  %v372_v14 = vld [vmem:[#allocation6 + $0x20] sm:$0xff]  ;;  %v374_v15 = vld [vmem:[#allocation6 + $0x30] sm:$0xff]  ;;  %vm852_vm2 = vcmask 1044480   ;;  %vm848_vm3 = vcmask 39936   ;;  %vm1239_vm4 = vcmask 1042432  }
  0xb9   :  { %3800 = vmatprep.subr.bf16.mxu1 %v3799_v3  ;;  %v3803_v16 = vpack.c.bf16 %v375_v13, %v373_v11  ;;  %v3805_v17 = vpack.c.bf16 %v374_v15, %v372_v14  ;;  %v377_v23 = vld [vmem:[#allocation6 + $0x48] sm:$0xff]  ;;  %v379_v24 = vld [vmem:[#allocation6 + $0x58] sm:$0xff]  ;;  %v376_v27 = vld [vmem:[#allocation6 + $0x40] sm:$0xff]  ;;  %vm2238_vm5 = vcmask 1040384   ;;  %vm2781_vm6 = vcmask 1043456  }
  0xba   :  { %3802 = vmatpush1.bf16.msra.mxu1 %v3801_v7  ;;  %v3807_v26 = vpack.c.bf16 %v379_v24, %v377_v23  ;;  %v378_v28 = vld [vmem:[#allocation6 + $0x50] sm:$0xff]  ;;  %v381_v35 = vld [vmem:[#allocation6 + $0x68] sm:$0xff]  ;;  %v383_v36 = vld [vmem:[#allocation6 + $0x78] sm:$0xff] }
  0xbb   :  { %3804 = vmatprep.subr.bf16.mxu1 %v3803_v16  ;;  %v3809_v33 = vpack.c.bf16 %v378_v28, %v376_v27  ;;  %v380_v37 = vld [vmem:[#allocation6 + $0x60] sm:$0xff]  ;;  %v3811_v39 = vpack.c.bf16 %v383_v36, %v381_v35  ;;  %v382_v40 = vld [vmem:[#allocation6 + $0x70] sm:$0xff]  ;;  %v385_v46 = vld [vmem:[#allocation6 + $0x88] sm:$0xff] }
  0xbc   :  { %v204_v5 = vld [vmem:[%s5822_s17 + $0x8] sm:$0xff]  ;;  %v206_v6 = vld [vmem:[%s5822_s17 + $0x18] sm:$0xff]  ;;  %v203_v9 = vld [vmem:[%s5822_s17] sm:$0xff]  ;;  %v3813_v48 = vpack.c.bf16 %v382_v40, %v380_v37 }
  0xbd   :  { %v3735_v8 = vpack.c.bf16 %v206_v6, %v204_v5  ;;  %v205_v10 = vld [vmem:[%s5822_s17 + $0x10] sm:$0xff]  ;;  %v208_v18 = vld [vmem:[%s5822_s17 + $0x28] sm:$0xff]  ;;  %v210_v19 = vld [vmem:[%s5822_s17 + $0x38] sm:$0xff] }
  0xbe   :  { %v3737_v12 = vpack.c.bf16 %v205_v10, %v203_v9  ;;  %v207_v20 = vld [vmem:[%s5822_s17 + $0x20] sm:$0xff]  ;;  %v3739_v21 = vpack.c.bf16 %v210_v19, %v208_v18  ;;  %v209_v22 = vld [vmem:[%s5822_s17 + $0x30] sm:$0xff]  ;;  %v212_v29 = vld [vmem:[%s5822_s17 + $0x48] sm:$0xff]  ;;  %3806 = vmatpush1.bf16.msra.mxu1 %v3805_v17 }
  0xbf   :  { %3736 = vmatprep.subr.bf16.mxu0 %v3735_v8  ;;  %v3741_v25 = vpack.c.bf16 %v209_v22, %v207_v20  ;;  %v214_v30 = vld [vmem:[%s5822_s17 + $0x58] sm:$0xff]  ;;  %v211_v31 = vld [vmem:[%s5822_s17 + $0x40] sm:$0xff]  ;;  %v213_v32 = vld [vmem:[%s5822_s17 + $0x50] sm:$0xff]  ;;  %3808 = vmatprep.subr.bf16.mxu1 %v3807_v26 }
  0xc0   :  { %3738 = vmatpush1.bf16.msra.mxu0 %v3737_v12  ;;  %v3743_v34 = vpack.c.bf16 %v214_v30, %v212_v29  ;;  %v3745_v38 = vpack.c.bf16 %v213_v32, %v211_v31  ;;  %v216_v41 = vld [vmem:[%s5822_s17 + $0x68] sm:$0xff]  ;;  %v218_v42 = vld [vmem:[%s5822_s17 + $0x78] sm:$0xff]  ;;  %v215_v44 = vld [vmem:[%s5822_s17 + $0x60] sm:$0xff] }
  0xc1   :  { %3740 = vmatprep.subr.bf16.mxu0 %v3739_v21  ;;  %v3747_v43 = vpack.c.bf16 %v218_v42, %v216_v41  ;;  %v217_v45 = vld [vmem:[%s5822_s17 + $0x70] sm:$0xff]  ;;  %v387_v47 = vld [vmem:[#allocation6 + $0x98] sm:$0xff]  ;;  %v220_v49 = vld [vmem:[%s5822_s17 + $0x88] sm:$0xff] }
  0xc2   :  { %3810 = vmatpush1.bf16.msra.mxu1 %v3809_v33  ;;  %v222_v50 = vld [vmem:[%s5822_s17 + $0x98] sm:$0xff]  ;;  %v3749_v51 = vpack.c.bf16 %v217_v45, %v215_v44  ;;  %v3815_v52 = vpack.c.bf16 %v387_v47, %v385_v46  ;;  %v384_v53 = vld [vmem:[#allocation6 + $0x80] sm:$0xff]  ;;  %v386_v54 = vld [vmem:[#allocation6 + $0x90] sm:$0xff] }
  0xc3   :  { %3812 = vmatprep.subr.bf16.mxu1 %v3811_v39  ;;  %v219_v55 = vld [vmem:[%s5822_s17 + $0x80] sm:$0xff]  ;;  %v3751_v56 = vpack.c.bf16 %v222_v50, %v220_v49  ;;  %v221_v57 = vld [vmem:[%s5822_s17 + $0x90] sm:$0xff]  ;;  %v389_v58 = vld [vmem:[#allocation6 + $0xa8] sm:$0xff]  ;;  %v3817_v62 = vpack.c.bf16 %v386_v54, %v384_v53 }
  0xc4   :  { %3742 = vmatpush1.bf16.msra.mxu0 %v3741_v25  ;;  %v391_v59 = vld [vmem:[#allocation6 + $0xb8] sm:$0xff]  ;;  %v224_v60 = vld [vmem:[%s5822_s17 + $0xa8] sm:$0xff]  ;;  %v3753_v63 = vpack.c.bf16 %v221_v57, %v219_v55  ;;  %v388_v1 = vld [vmem:[#allocation6 + $0xa0] sm:$0xff] }
  0xc5   :  { %3744 = vmatprep.subr.bf16.mxu0 %v3743_v34  ;;  %v226_v61 = vld [vmem:[%s5822_s17 + $0xb8] sm:$0xff]  ;;  %v3819_v0 = vpack.c.bf16 %v391_v59, %v389_v58  ;;  %v390_v2 = vld [vmem:[#allocation6 + $0xb0] sm:$0xff]  ;;  %v223_v3 = vld [vmem:[%s5822_s17 + $0xa0] sm:$0xff] }
  0xc6   :  { %3814 = vmatpush1.bf16.msra.mxu1 %v3813_v48  ;;  %v3755_v4 = vpack.c.bf16 %v226_v61, %v224_v60  ;;  %v225_v5 = vld [vmem:[%s5822_s17 + $0xb0] sm:$0xff]  ;;  %v393_v6 = vld [vmem:[#allocation6 + $0xc8] sm:$0xff]  ;;  %v395_v7 = vld [vmem:[#allocation6 + $0xd8] sm:$0xff]  ;;  %v3821_v10 = vpack.c.bf16 %v390_v2, %v388_v1 }
  0xc7   :  { %3816 = vmatprep.subr.bf16.mxu1 %v3815_v52  ;;  %v228_v8 = vld [vmem:[%s5822_s17 + $0xc8] sm:$0xff]  ;;  %v230_v9 = vld [vmem:[%s5822_s17 + $0xd8] sm:$0xff]  ;;  %v3757_v11 = vpack.c.bf16 %v225_v5, %v223_v3  ;;  %v3823_v12 = vpack.c.bf16 %v395_v7, %v393_v6  ;;  %v392_v13 = vld [vmem:[#allocation6 + $0xc0] sm:$0xff] }
  0xc8   :  { %3746 = vmatpush1.bf16.msra.mxu0 %v3745_v38  ;;  %v394_v14 = vld [vmem:[#allocation6 + $0xd0] sm:$0xff]  ;;  %v227_v15 = vld [vmem:[%s5822_s17 + $0xc0] sm:$0xff]  ;;  %v3759_v16 = vpack.c.bf16 %v230_v9, %v228_v8  ;;  %v397_v18 = vld [vmem:[#allocation6 + $0xe8] sm:$0xff] }
  0xc9   :  { %3748 = vmatprep.subr.bf16.mxu0 %v3747_v43  ;;  %v229_v17 = vld [vmem:[%s5822_s17 + $0xd0] sm:$0xff]  ;;  %v399_v19 = vld [vmem:[#allocation6 + $0xf8] sm:$0xff]  ;;  %v232_v20 = vld [vmem:[%s5822_s17 + $0xe8] sm:$0xff]  ;;  %v3825_v22 = vpack.c.bf16 %v394_v14, %v392_v13 }
  0xca   :  { %3818 = vmatpush1.bf16.msra.mxu1 %v3817_v62  ;;  %v234_v21 = vld [vmem:[%s5822_s17 + $0xf8] sm:$0xff]  ;;  %v3761_v23 = vpack.c.bf16 %v229_v17, %v227_v15  ;;  %v3827_v24 = vpack.c.bf16 %v399_v19, %v397_v18  ;;  %v396_v25 = vld [vmem:[#allocation6 + $0xe0] sm:$0xff]  ;;  %v398_v26 = vld [vmem:[#allocation6 + $0xf0] sm:$0xff] }
  0xcb   :  { %3820 = vmatprep.subr.bf16.mxu1 %v3819_v0  ;;  %v231_v27 = vld [vmem:[%s5822_s17 + $0xe0] sm:$0xff]  ;;  %v3763_v28 = vpack.c.bf16 %v234_v21, %v232_v20  ;;  %v233_v29 = vld [vmem:[%s5822_s17 + $0xf0] sm:$0xff]  ;;  %v401_v30 = vld [vmem:[#allocation6 + $0x108] sm:$0xff]  ;;  %v3829_v34 = vpack.c.bf16 %v398_v26, %v396_v25 }
  0xcc   :  { %3750 = vmatpush1.bf16.msra.mxu0 %v3749_v51  ;;  %v403_v31 = vld [vmem:[#allocation6 + $0x118] sm:$0xff]  ;;  %v236_v32 = vld [vmem:[%s5822_s17 + $0x108] sm:$0xff]  ;;  %v3765_v35 = vpack.c.bf16 %v233_v29, %v231_v27  ;;  %v400_v37 = vld [vmem:[#allocation6 + $0x100] sm:$0xff] }
  0xcd   :  { %3752 = vmatprep.subr.bf16.mxu0 %v3751_v56  ;;  %v238_v33 = vld [vmem:[%s5822_s17 + $0x118] sm:$0xff]  ;;  %v3831_v36 = vpack.c.bf16 %v403_v31, %v401_v30  ;;  %v402_v38 = vld [vmem:[#allocation6 + $0x110] sm:$0xff]  ;;  %v235_v39 = vld [vmem:[%s5822_s17 + $0x100] sm:$0xff] }
  0xce   :  { %3822 = vmatpush1.bf16.msra.mxu1 %v3821_v10  ;;  %v3767_v40 = vpack.c.bf16 %v238_v33, %v236_v32  ;;  %v237_v41 = vld [vmem:[%s5822_s17 + $0x110] sm:$0xff]  ;;  %v405_v42 = vld [vmem:[#allocation6 + $0x128] sm:$0xff]  ;;  %v407_v43 = vld [vmem:[#allocation6 + $0x138] sm:$0xff]  ;;  %v3833_v46 = vpack.c.bf16 %v402_v38, %v400_v37 }
  0xcf   :  { %3824 = vmatprep.subr.bf16.mxu1 %v3823_v12  ;;  %v240_v44 = vld [vmem:[%s5822_s17 + $0x128] sm:$0xff]  ;;  %v242_v45 = vld [vmem:[%s5822_s17 + $0x138] sm:$0xff]  ;;  %v3769_v47 = vpack.c.bf16 %v237_v41, %v235_v39  ;;  %v3835_v48 = vpack.c.bf16 %v407_v43, %v405_v42  ;;  %v404_v49 = vld [vmem:[#allocation6 + $0x120] sm:$0xff] }
  0xd0   :  { %3754 = vmatpush1.bf16.msra.mxu0 %v3753_v63  ;;  %v406_v50 = vld [vmem:[#allocation6 + $0x130] sm:$0xff]  ;;  %v239_v51 = vld [vmem:[%s5822_s17 + $0x120] sm:$0xff]  ;;  %v3771_v52 = vpack.c.bf16 %v242_v45, %v240_v44  ;;  %v409_v54 = vld [vmem:[#allocation6 + $0x148] sm:$0xff] }
  0xd1   :  { %3756 = vmatprep.subr.bf16.mxu0 %v3755_v4  ;;  %v241_v53 = vld [vmem:[%s5822_s17 + $0x130] sm:$0xff]  ;;  %v411_v55 = vld [vmem:[#allocation6 + $0x158] sm:$0xff]  ;;  %v244_v56 = vld [vmem:[%s5822_s17 + $0x148] sm:$0xff]  ;;  %v3837_v58 = vpack.c.bf16 %v406_v50, %v404_v49 }
  0xd2   :  { %3826 = vmatpush1.bf16.msra.mxu1 %v3825_v22  ;;  %v246_v57 = vld [vmem:[%s5822_s17 + $0x158] sm:$0xff]  ;;  %v3773_v59 = vpack.c.bf16 %v241_v53, %v239_v51  ;;  %v3839_v60 = vpack.c.bf16 %v411_v55, %v409_v54  ;;  %v408_v61 = vld [vmem:[#allocation6 + $0x140] sm:$0xff]  ;;  %v410_v62 = vld [vmem:[#allocation6 + $0x150] sm:$0xff] }
  0xd3   :  { %3828 = vmatprep.subr.bf16.mxu1 %v3827_v24  ;;  %v243_v63 = vld [vmem:[%s5822_s17 + $0x140] sm:$0xff]  ;;  %v3775_v0 = vpack.c.bf16 %v246_v57, %v244_v56  ;;  %v245_v1 = vld [vmem:[%s5822_s17 + $0x150] sm:$0xff]  ;;  %v413_v2 = vld [vmem:[#allocation6 + $0x168] sm:$0xff]  ;;  %v3841_v6 = vpack.c.bf16 %v410_v62, %v408_v61 }
  0xd4   :  { %3758 = vmatpush1.bf16.msra.mxu0 %v3757_v11  ;;  %v415_v3 = vld [vmem:[#allocation6 + $0x178] sm:$0xff]  ;;  %v248_v4 = vld [vmem:[%s5822_s17 + $0x168] sm:$0xff]  ;;  %v412_v7 = vld [vmem:[#allocation6 + $0x160] sm:$0xff]  ;;  %v3777_v9 = vpack.c.bf16 %v245_v1, %v243_v63 }
  0xd5   :  { %3760 = vmatprep.subr.bf16.mxu0 %v3759_v16  ;;  %v250_v5 = vld [vmem:[%s5822_s17 + $0x178] sm:$0xff]  ;;  %v414_v8 = vld [vmem:[#allocation6 + $0x170] sm:$0xff]  ;;  %v3843_v10 = vpack.c.bf16 %v415_v3, %v413_v2  ;;  %v247_v11 = vld [vmem:[%s5822_s17 + $0x160] sm:$0xff] }
  0xd6   :  { %3830 = vmatpush1.bf16.msra.mxu1 %v3829_v34  ;;  %v249_v12 = vld [vmem:[%s5822_s17 + $0x170] sm:$0xff]  ;;  %v417_v13 = vld [vmem:[#allocation6 + $0x188] sm:$0xff]  ;;  %v3779_v14 = vpack.c.bf16 %v250_v5, %v248_v4  ;;  %v419_v15 = vld [vmem:[#allocation6 + $0x198] sm:$0xff]  ;;  %v3845_v21 = vpack.c.bf16 %v414_v8, %v412_v7 }
  0xd7   :  { %3832 = vmatprep.subr.bf16.mxu1 %v3831_v36  ;;  %v186_v16 = vld [vmem:[%s5823_s20 + $0x8] sm:$0xff]  ;;  %v254_v19 = vld [vmem:[%s5822_s17 + $0x198] sm:$0xff]  ;;  %v3781_v22 = vpack.c.bf16 %v249_v12, %v247_v11  ;;  %v416_v24 = vld [vmem:[#allocation6 + $0x180] sm:$0xff] }
  0xd8   :  { %3762 = vmatpush1.bf16.msra.mxu0 %v3761_v23  ;;  %v192_v17 = vld [vmem:[%s5824_s10 + $0x8] sm:$0xff]  ;;  %v3847_v23 = vpack.c.bf16 %v419_v15, %v417_v13  ;;  %v418_v25 = vld [vmem:[#allocation6 + $0x190] sm:$0xff]  ;;  %v251_v26 = vld [vmem:[%s5822_s17 + $0x180] sm:$0xff] }
  0xd9   :  { %3764 = vmatprep.subr.bf16.mxu0 %v3763_v28  ;;  %v252_v18 = vld [vmem:[%s5822_s17 + $0x188] sm:$0xff]  ;;  %v5150_v20 = vadd.f32 %v192_v17, %v186_v16  ;;  %v253_v28 = vld [vmem:[%s5822_s17 + $0x190] sm:$0xff]  ;;  %v423_v30 = vld [vmem:[#allocation6 + $0x1b8] sm:$0xff]  ;;  %v3849_v33 = vpack.c.bf16 %v418_v25, %v416_v24 }
  0xda   :  { %3834 = vmatpush1.bf16.msra.mxu1 %v3833_v46  ;;  %v3783_v27 = vpack.c.bf16 %v254_v19, %v252_v18  ;;  %v421_v29 = vld [vmem:[#allocation6 + $0x1a8] sm:$0xff]  ;;  %v258_v32 = vld [vmem:[%s5822_s17 + $0x1b8] sm:$0xff]  ;;  %v3785_v34 = vpack.c.bf16 %v253_v28, %v251_v26  ;;  %v420_v36 = vld [vmem:[#allocation6 + $0x1a0] sm:$0xff]  ;;  %v4765_v18 = vmov 0.0   ;;  %v269_v19 = vlaneseq }
  0xdb   :  { %3836 = vmatprep.subr.bf16.mxu1 %v3835_v48  ;;  %508 = vmatprep.mubr.f32.mxu1 %v5150_v20  ;;  %v256_v31 = vld [vmem:[%s5822_s17 + $0x1a8] sm:$0xff]  ;;  %v422_v37 = vld [vmem:[#allocation6 + $0x1b0] sm:$0xff]  ;;  %v255_v38 = vld [vmem:[%s5822_s17 + $0x1a0] sm:$0xff] }
  0xdc   :  { %3766 = vmatpush1.bf16.msra.mxu0 %v3765_v35  ;;  %343 = vmatprep.mubr.f32.mxu0 %v5150_v20  ;;  %v3851_v35 = vpack.c.bf16 %v423_v30, %v421_v29  ;;  %v3787_v39 = vpack.c.bf16 %v258_v32, %v256_v31  ;;  %v425_v41 = vld [vmem:[#allocation6 + $0x1c8] sm:$0xff]  ;;  %v427_v42 = vld [vmem:[#allocation6 + $0x1d8] sm:$0xff]  ;;  %v3853_v45 = vpack.c.bf16 %v422_v37, %v420_v36  ;;  %v424_v48 = vld [vmem:[#allocation6 + $0x1c0] sm:$0xff] }
  0xdd   :  { %3768 = vmatprep.subr.bf16.mxu0 %v3767_v40  ;;  %v257_v40 = vld [vmem:[%s5822_s17 + $0x1b0] sm:$0xff]  ;;  %v260_v43 = vld [vmem:[%s5822_s17 + $0x1c8] sm:$0xff]  ;;  %v262_v44 = vld [vmem:[%s5822_s17 + $0x1d8] sm:$0xff] }
  0xde   :  { %3838 = vmatpush1.bf16.msra.mxu1 %v3837_v58  ;;  %v3789_v46 = vpack.c.bf16 %v257_v40, %v255_v38  ;;  %v426_v49 = vld [vmem:[#allocation6 + $0x1d0] sm:$0xff]  ;;  %v259_v50 = vld [vmem:[%s5822_s17 + $0x1c0] sm:$0xff]  ;;  %v3791_v51 = vpack.c.bf16 %v262_v44, %v260_v43  ;;  %v429_v53 = vld [vmem:[#allocation6 + $0x1e8] sm:$0xff] }
  0xdf   :  { %3840 = vmatprep.subr.bf16.mxu1 %v3839_v60  ;;  %v431_v54 = vld [vmem:[#allocation6 + $0x1f8] sm:$0xff]  ;;  %v264_v55 = vld [vmem:[%s5822_s17 + $0x1e8] sm:$0xff]  ;;  %v3857_v57 = vpack.c.bf16 %v426_v49, %v424_v48  ;;  %v428_v60 = vld [vmem:[#allocation6 + $0x1e0] sm:$0xff] }
  0xe0   :  { %3770 = vmatpush1.bf16.msra.mxu0 %v3769_v47  ;;  %v3855_v47 = vpack.c.bf16 %v427_v42, %v425_v41  ;;  %v266_v56 = vld [vmem:[%s5822_s17 + $0x1f8] sm:$0xff]  ;;  %v430_v61 = vld [vmem:[#allocation6 + $0x1f0] sm:$0xff]  ;;  %v263_v63 = vld [vmem:[%s5822_s17 + $0x1e0] sm:$0xff] }
  0xe1   :  { %3772 = vmatprep.subr.bf16.mxu0 %v3771_v52  ;;  %v261_v52 = vld [vmem:[%s5822_s17 + $0x1d0] sm:$0xff]  ;;  %v3795_v62 = vpack.c.bf16 %v266_v56, %v264_v55  ;;  %v3861_v1 = vpack.c.bf16 %v430_v61, %v428_v60  ;;  %v185_v2 = vld [vmem:[%s5823_s20] sm:$0xff]  ;;  %v188_v5 = vld [vmem:[%s5823_s20 + $0x18] sm:$0xff] }
  0xe2   :  { %3842 = vmatpush1.bf16.msra.mxu1 %v3841_v6  ;;  %v3793_v58 = vpack.c.bf16 %v261_v52, %v259_v50  ;;  %v191_v3 = vld [vmem:[%s5824_s10] sm:$0xff]  ;;  %v194_v6 = vld [vmem:[%s5824_s10 + $0x18] sm:$0xff]  ;;  %v190_v12 = vld [vmem:[%s5823_s20 + $0x28] sm:$0xf] }
  0xe3   :  { %3844 = vmatprep.subr.bf16.mxu1 %v3843_v10  ;;  %v5208_v7 = vadd.f32 %v191_v3, %v185_v2  ;;  %v5210_v8 = vadd.f32 %v194_v6, %v188_v5  ;;  %v193_v10 = vld [vmem:[%s5824_s10 + $0x10] sm:$0xff]  ;;  %v196_v13 = vld [vmem:[%s5824_s10 + $0x28] sm:$0xf]  ;;  %v189_v15 = vld [vmem:[%s5823_s20 + $0x20] sm:$0xf] }
  0xe4   :  { %3774 = vmatpush1.bf16.msra.mxu0 %v3773_v59  ;;  %v3859_v59 = vpack.c.bf16 %v431_v54, %v429_v53  ;;  %v195_v16 = vld [vmem:[%s5824_s10 + $0x20] sm:$0xf]  ;;  %v534_v52 = vld [vmem:[#allocation8 + $0x8] sm:$0xff]  ;;  %v536_v53 = vld [vmem:[#allocation8 + $0x18] sm:$0xff] }
  0xe5   :  { %3776 = vmatprep.subr.bf16.mxu0 %v3775_v0  ;;  %v265_v0 = vld [vmem:[%s5822_s17 + $0x1f0] sm:$0xff]  ;;  %v5240_v17 = vadd.f32 %v195_v16, %v189_v15  ;;  %v267_v25 = vld [vmem:[%s5797_s3] sm:$0x3]  ;;  %v3863_v55 = vpack.c.bf16 %v536_v53, %v534_v52  ;;  %v546_v5 = vld [vmem:[#allocation8 + $0x68] sm:$0xff] }
  0xe6   :  { %3846 = vmatpush1.bf16.msra.mxu1 %v3845_v21  ;;  %v3797_v4 = vpack.c.bf16 %v265_v0, %v263_v63  ;;  %v5250_v21 = vshrl.u32 %v269_v19, 7  ;;  %v533_v54 = vld [vmem:[#allocation8] sm:$0xff]  ;;  %v535_v56 = vld [vmem:[#allocation8 + $0x10] sm:$0xff]  ;;  %v542_v63 = vld [vmem:[#allocation8 + $0x48] sm:$0xff] }
  0xe7   :  { %3848 = vmatprep.subr.bf16.mxu1 %v3847_v23  ;;  %v432_v23 = vld [vmem:[%s5799_s5] sm:$0x3]  ;;  %v544_v0 = vld [vmem:[#allocation8 + $0x58] sm:$0xff]  ;;  %v550_v15 = vld [vmem:[#allocation8 + $0x88] sm:$0xff] }
  0xe8   :  { %3778 = vmatpush1.bf16.msra.mxu0 %v3777_v9  ;;  %v187_v9 = vld [vmem:[%s5823_s20 + $0x10] sm:$0xff]  ;;  %v5259_v24 = vsub.s32 1, %v5250_v21  ;;  %v537_v61 = vld [vmem:[#allocation8 + $0x20] sm:$0xff]  ;;  %v3871_v2 = vpack.c.bf16 %v544_v0, %v542_v63  ;;  %v548_v6 = vld [vmem:[#allocation8 + $0x78] sm:$0xff] }
  0xe9   :  { %3780 = vmatprep.subr.bf16.mxu0 %v3779_v14  ;;  %v5219_v11 = vadd.f32 %v193_v10, %v187_v9  ;;  %v5232_v14 = vadd.f32 %v196_v13, %v190_v12  ;;  %v541_v3 = vld [vmem:[#allocation8 + $0x40] sm:$0xff]  ;;  %v3875_v10 = vpack.c.bf16 %v548_v6, %v546_v5  ;;  %v547_v13 = vld [vmem:[#allocation8 + $0x70] sm:$0xff]  ;;  %v552_v16 = vld [vmem:[#allocation8 + $0x98] sm:$0xff] }
  0xea   :  { %3850 = vmatpush1.bf16.msra.mxu1 %v3849_v33  ;;  %v5270_v29 = vrot.slane %v267_v25, %v5259_v24  ;;  %v545_v12 = vld [vmem:[#allocation8 + $0x60] sm:$0xff]  ;;  %v567_v52 = vld [vmem:[#allocation8 + $0x110] sm:$0xff]  ;;  %v570_v53 = vld [vmem:[#allocation8 + $0x128] sm:$0xff] }
  0xeb   :  { %3852 = vmatprep.subr.bf16.mxu1 %v3851_v35  ;;  %v3877_v19 = vpack.c.bf16 %v547_v13, %v545_v12  ;;  %v573_v63 = vld [vmem:[#allocation8 + $0x140] sm:$0xff]  ;;  %v575_v0 = vld [vmem:[#allocation8 + $0x150] sm:$0xff] }
  0xec   :  { %3782 = vmatpush1.bf16.msra.mxu0 %v3781_v22  ;;  %v5253_v22 = vsub.s32 0, %v5250_v21  ;;  %v577_v5 = vld [vmem:[#allocation8 + $0x160] sm:$0xff]  ;;  %v579_v6 = vld [vmem:[#allocation8 + $0x170] sm:$0xff] }
  0xed   :  { %3784 = vmatprep.subr.bf16.mxu0 %v3783_v27  ;;  %v441_v27 = vrot.slane %v432_v23, %v5259_v24  ;;  %v3909_v12 = vpack.c.bf16 %v579_v6, %v577_v5 }
  0xee   :  { %3854 = vmatpush1.bf16.msra.mxu1 %v3853_v45  ;;  %v437_v26 = vrot.slane %v432_v23, %v5253_v22  ;;  %v5267_v28 = vrot.slane %v267_v25, %v5253_v22  ;;  %v3879_v23 = vpack.c.bf16 %v552_v16, %v550_v15  ;;  %v549_v25 = vld [vmem:[#allocation8 + $0x80] sm:$0xff]  ;;  %v583_v16 = vld [vmem:[#allocation8 + $0x190] sm:$0xff] }
  0xef   :  { %3856 = vmatprep.subr.bf16.mxu1 %v3855_v47  ;;  %v581_v15 = vld [vmem:[#allocation8 + $0x180] sm:$0xff] }
  0xf0   :  { %3786 = vmatpush1.bf16.msra.mxu0 %v3785_v34 }
  0xf1   :  { %3788 = vmatprep.subr.bf16.mxu0 %v3787_v39 }
  0xf2   :  { %3858 = vmatpush1.bf16.msra.mxu1 %v3857_v57  ;;  %v538_v57 = vld [vmem:[#allocation8 + $0x28] sm:$0xff] }
  0xf3   :  { %3860 = vmatprep.subr.bf16.mxu1 %v3859_v59  ;;  %v3865_v59 = vpack.c.bf16 %v535_v56, %v533_v54  ;;  %v572_v54 = vld [vmem:[#allocation8 + $0x138] sm:$0xff] }
  0xf4   :  { %3790 = vmatpush1.bf16.msra.mxu0 %v3789_v46  ;;  %v3899_v56 = vpack.c.bf16 %v572_v54, %v570_v53 }
  0xf5   :  { %3792 = vmatprep.subr.bf16.mxu0 %v3791_v51 }
  0xf6   :  { %3862 = vmatpush1.bf16.msra.mxu1 %v3861_v1 }
  0xf7   :  { %3655 = vmatprep.subr.mxu1 %v4765_v18 }
  0xf8   :  { %3794 = vmatpush1.bf16.msra.mxu0 %v3793_v58  ;;  %v540_v58 = vld [vmem:[#allocation8 + $0x38] sm:$0xff] }
  0xf9   :  { %3796 = vmatprep.subr.bf16.mxu0 %v3795_v62  ;;  %509 = vmatmul.mubr.f32.vlgmr.msra.gmra.mrb[0].mxu1 %v5208_v7  ;;  %v3867_v60 = vpack.c.bf16 %v540_v58, %v538_v57  ;;  %v539_v62 = vld [vmem:[#allocation8 + $0x30] sm:$0xff]  ;;  %v569_v57 = vld [vmem:[#allocation8 + $0x120] sm:$0xff] }
  0xfa   :  { %514 = vmatprep.mubr.f32.mxu1 %v5210_v8  ;;  %v3869_v1 = vpack.c.bf16 %v539_v62, %v537_v61  ;;  %v571_v58 = vld [vmem:[#allocation8 + $0x130] sm:$0xff] }
  0xfb   :  { %v3901_v61 = vpack.c.bf16 %v571_v58, %v569_v57 }
  0xfc   :  { %3798 = vmatpush1.bf16.msra.mxu0 %v3797_v4  ;;  %v543_v4 = vld [vmem:[#allocation8 + $0x50] sm:$0xff] }
  0xfd   :  { %515 = vmatmul.mubr.f32.gmra.mrb[2].mxu1 %v5219_v11  ;;  %3864 = vmatprep.subr.bf16.mxu0 %v3863_v55  ;;  %v3873_v9 = vpack.c.bf16 %v543_v4, %v541_v3  ;;  %v3905_v3 = vpack.c.bf16 %v575_v0, %v573_v63 }
  0xfe   :  { %520 = vmatprep.mubr.f32.mxu1 %v5232_v14 }
  0xff   :  { %344 = vmatmul.mubr.f32.vlgmr.msra.gmra.mrb[0].mxu0 %v5208_v7 }
 0x100   :  { %349 = vmatprep.mubr.f32.mxu0 %v5210_v8  ;;  %3866 = vmatpush1.bf16.msra.mxu0 %v3865_v59  ;;  %v574_v59 = vld [vmem:[#allocation8 + $0x148] sm:$0xff] }
 0x101   :  { %521 = vmatmul.mubr.f32.gmra.mrb[4].mxu1 %v5240_v17  ;;  %3868 = vmatprep.subr.bf16.mxu0 %v3867_v60  ;;  %v576_v60 = vld [vmem:[#allocation8 + $0x158] sm:$0xff] }
 0x102   :  { %3657 = vmatprep.mubr.msk.f32.mxu1 %vm4766_vm0, %v4765_v18  ;;  %v3903_v62 = vpack.c.bf16 %v576_v60, %v574_v59 }
 0x103   :  { %350 = vmatmul.mubr.f32.gmra.mrb[2].mxu0 %v5219_v11 }
 0x104   :  { %355 = vmatprep.mubr.f32.mxu0 %v5232_v14  ;;  %3870 = vmatpush1.bf16.msra.mxu0 %v3869_v1  ;;  %v578_v1 = vld [vmem:[#allocation8 + $0x168] sm:$0xff] }
 0x105   :  { %3872 = vmatprep.subr.bf16.mxu0 %v3871_v2  ;;  %v580_v2 = vld [vmem:[#allocation8 + $0x178] sm:$0xff] }
 0x106   :  { %v3907_v4 = vpack.c.bf16 %v580_v2, %v578_v1 }
 0x107   :  { %356 = vmatmul.mubr.f32.gmra.mrb[4].mxu0 %v5240_v17 }
 0x108   :  { %673 = vmatprep.mubr.f32.mxu0 %v5150_v20  ;;  %3874 = vmatpush1.bf16.msra.mxu0 %v3873_v9  ;;  %v582_v9 = vld [vmem:[#allocation8 + $0x188] sm:$0xff] }
 0x109   :  { %3876 = vmatprep.subr.bf16.mxu0 %v3875_v10  ;;  %v584_v10 = vld [vmem:[#allocation8 + $0x198] sm:$0xff] }
 0x10a   :  { %v3911_v13 = vpack.c.bf16 %v584_v10, %v582_v9 }
 0x10c   :  { %3878 = vmatpush1.bf16.msra.mxu0 %v3877_v19  ;;  %v586_v19 = vld [vmem:[#allocation8 + $0x1a8] sm:$0xff] }
 0x10d   :  { %3880 = vmatprep.subr.bf16.mxu0 %v3879_v23  ;;  %v588_v23 = vld [vmem:[#allocation8 + $0x1b8] sm:$0xff] }
 0x1cc   :  { %v510_v30 = vpop.f32.mrb[0].mxu1 }
 0x1cd   :  { %v511_v31 = vadd.f32 %v510_v30, %v437_v26  ;;  %v512_v32 = vpop.f32.mrb[1].mxu1  ;;  %v556_v30 = vld [vmem:[#allocation8 + $0xb8] sm:$0xff] }
 0x1ce   :  { %v513_v34 = vadd.f32 %v512_v32, %v441_v27 }
 0x1cf   :  { %527 = vst [vmem:[#allocation3] sm:$0xff] %v511_v31 }
 0x1d0   :  { %528 = vst [vmem:[#allocation3 + $0x8] sm:$0xff] %v513_v34  ;;  %v516_v38 = vpop.f32.mrb[2].mxu1  ;;  %v555_v34 = vld [vmem:[#allocation8 + $0xb0] sm:$0xff] }
 0x1d1   :  { %v517_v39 = vadd.f32 %v516_v38, %v437_v26  ;;  %v518_v40 = vpop.f32.mrb[3].mxu1 }
 0x1d2   :  { %v345_v33 = vpop.f32.mrb[0].mxu0  ;;  %v519_v42 = vadd.f32 %v518_v40, %v441_v27  ;;  %v559_v40 = vld [vmem:[#allocation8 + $0xd0] sm:$0xff] }
 0x1d3   :  { %v346_v35 = vadd.f32 %v345_v33, %v5267_v28  ;;  %v347_v36 = vpop.f32.mrb[1].mxu0  ;;  %529 = vst [vmem:[#allocation3 + $0x10] sm:$0xff] %v517_v39  ;;  %v553_v33 = vld [vmem:[#allocation8 + $0xa0] sm:$0xff] }
 0x1d4   :  { %v348_v37 = vadd.f32 %v347_v36, %v5270_v29  ;;  %530 = vst [vmem:[#allocation3 + $0x18] sm:$0xff] %v519_v42  ;;  %v522_v48 = vpop.f32.mrb[4].mxu1  ;;  %v560_v36 = vld [vmem:[#allocation8 + $0xd8] sm:$0xff]  ;;  %v557_v39 = vld [vmem:[#allocation8 + $0xc0] sm:$0xff] }
 0x1d5   :  { %362 = vst [vmem:[#allocation2] sm:$0xff] %v346_v35  ;;  %v523_v49 = vadd.f32 %v522_v48, %v437_v26  ;;  %v524_v50 = vpop.f32.mrb[5].mxu1  ;;  %v551_v26 = vld [vmem:[#allocation8 + $0x90] sm:$0xff]  ;;  %v558_v35 = vld [vmem:[#allocation8 + $0xc8] sm:$0xff]  ;;  %v564_v42 = vld [vmem:[#allocation8 + $0xf8] sm:$0xff] }
 0x1d6   :  { %363 = vst [vmem:[#allocation2 + $0x8] sm:$0xff] %v348_v37  ;;  %v351_v41 = vpop.f32.mrb[2].mxu0  ;;  %v763_v46 = vld [vmem:[#allocation3] sm:$0x1f]  ;;  %v525_v51 = vadd.f32 %v524_v50, %v441_v27  ;;  %v554_v27 = vld [vmem:[#allocation8 + $0xa8] sm:$0xff]  ;;  %v3881_v31 = vpack.c.bf16 %v551_v26, %v549_v25  ;;  %v3885_v37 = vpack.c.bf16 %v555_v34, %v553_v33  ;;  %v3887_v38 = vpack.c.bf16 %v560_v36, %v558_v35  ;;  %v568_v48 = vld [vmem:[#allocation8 + $0x118] sm:$0xff] }
 0x1d7   :  { %v352_v43 = vadd.f32 %v351_v41, %v5267_v28  ;;  %v353_v44 = vpop.f32.mrb[3].mxu0  ;;  %3656 = vmatpush3.xpose.msra.mxu1 %v763_v46  ;;  %531 = vst [vmem:[#allocation3 + $0x20] sm:$0xf] %v523_v49  ;;  %v3883_v32 = vpack.c.bf16 %v556_v30, %v554_v27  ;;  %v562_v41 = vld [vmem:[#allocation8 + $0xe8] sm:$0xff]  ;;  %v563_v46 = vld [vmem:[#allocation8 + $0xf0] sm:$0xff]  ;;  %v3913_v25 = vpack.c.bf16 %v583_v16, %v581_v15  ;;  %v585_v27 = vld [vmem:[#allocation8 + $0x1a0] sm:$0xff] }
 0x1d8   :  { %v354_v45 = vadd.f32 %v353_v44, %v5270_v29  ;;  %3660 = vmatprep.subr.mxu1 %v4765_v18  ;;  %532 = vst [vmem:[#allocation3 + $0x28] sm:$0xf] %v525_v51  ;;  %3882 = vmatpush1.bf16.msra.mxu0 %v3881_v31  ;;  %v3891_v44 = vpack.c.bf16 %v564_v42, %v562_v41  ;;  %v565_v51 = vld [vmem:[#allocation8 + $0x100] sm:$0xff]  ;;  %v587_v30 = vld [vmem:[#allocation8 + $0x1b0] sm:$0xff]  ;;  %v590_v31 = vld [vmem:[#allocation8 + $0x1c8] sm:$0xff] }
 0x1d9   :  { %364 = vst [vmem:[#allocation2 + $0x10] sm:$0xff] %v352_v43  ;;  %3884 = vmatprep.subr.bf16.mxu0 %v3883_v32  ;;  %v3889_v43 = vpack.c.bf16 %v559_v40, %v557_v39  ;;  %v3897_v55 = vpack.c.bf16 %v567_v52, %v565_v51  ;;  %v3915_v26 = vpack.c.bf16 %v588_v23, %v586_v19  ;;  %v592_v32 = vld [vmem:[#allocation8 + $0x1d8] sm:$0xff]  ;;  %v589_v35 = vld [vmem:[#allocation8 + $0x1c0] sm:$0xff]  ;;  %v591_v36 = vld [vmem:[#allocation8 + $0x1d0] sm:$0xff] }
 0x1da   :  { %365 = vst [vmem:[#allocation2 + $0x18] sm:$0xff] %v354_v45  ;;  %v561_v45 = vld [vmem:[#allocation8 + $0xe0] sm:$0xff]  ;;  %v3917_v33 = vpack.c.bf16 %v587_v30, %v585_v27  ;;  %v3919_v34 = vpack.c.bf16 %v592_v32, %v590_v31  ;;  %v3921_v39 = vpack.c.bf16 %v591_v36, %v589_v35  ;;  %v595_v42 = vld [vmem:[#allocation8 + $0x1f0] sm:$0xff]  ;;  %v927_v6 = vld [vmem:[#allocation3 + $0x8] sm:$0x1f] }
 0x1db   :  { %v3893_v49 = vpack.c.bf16 %v563_v46, %v561_v45  ;;  %v593_v41 = vld [vmem:[#allocation8 + $0x1e0] sm:$0xff]  ;;  %v699_v32 = vld [vmem:[#allocation10 + $0x8] sm:$0xff]  ;;  %v733_v36 = vld [vmem:[#allocation10 + $0x118] sm:$0xff] }
 0x1dc   :  { %v762_v47 = vld [vmem:[#allocation2] sm:$0x1f]  ;;  %3886 = vmatpush1.bf16.msra.mxu0 %v3885_v37  ;;  %v594_v37 = vld [vmem:[#allocation8 + $0x1e8] sm:$0xff] }
 0x1dd   :  { %3658 = vmatmul.mubr.f32.vlgmr.msra.gmra.mrb[6].mxu1 %v762_v47  ;;  %3888 = vmatprep.subr.bf16.mxu0 %v3887_v38  ;;  %v566_v47 = vld [vmem:[#allocation8 + $0x108] sm:$0xff]  ;;  %v596_v38 = vld [vmem:[#allocation8 + $0x1f8] sm:$0xff] }
 0x1de   :  { %3662 = vmatprep.mubr.msk.f32.mxu1 %vm4766_vm0, %v4765_v18  ;;  %v3895_v50 = vpack.c.bf16 %v568_v48, %v566_v47  ;;  %v3923_v40 = vpack.c.bf16 %v596_v38, %v594_v37  ;;  %v357_v48 = vpop.f32.mrb[4].mxu0  ;;  %v926_v9 = vld [vmem:[#allocation2 + $0x8] sm:$0x1f]  ;;  %v730_v37 = vld [vmem:[#allocation10 + $0x100] sm:$0xff] }
 0x1df   :  { %v731_v35 = vld [vmem:[#allocation10 + $0x108] sm:$0xff] }
 0x1e0   :  { %3890 = vmatpush1.bf16.msra.mxu0 %v3889_v43  ;;  %v3925_v43 = vpack.c.bf16 %v595_v42, %v593_v41  ;;  %v5321_v38 = vpack.c.bf16 %v733_v36, %v731_v35  ;;  %v737_v41 = vld [vmem:[#allocation10 + $0x138] sm:$0xff]  ;;  %v698_v35 = vld [vmem:[#allocation10] sm:$0xff]  ;;  %v700_v36 = vld [vmem:[#allocation10 + $0x10] sm:$0xff] }
 0x1e1   :  { %3892 = vmatprep.subr.bf16.mxu0 %v3891_v44 }
 0x1e4   :  { %3894 = vmatpush1.bf16.msra.mxu0 %v3893_v49  ;;  %v358_v49 = vadd.f32 %v357_v48, %v5267_v28 }
 0x1e5   :  { %3896 = vmatprep.subr.bf16.mxu0 %v3895_v50  ;;  %v359_v50 = vpop.f32.mrb[5].mxu0 }
 0x1e6   :  { %v360_v51 = vadd.f32 %v359_v50, %v5270_v29  ;;  %366 = vst [vmem:[#allocation2 + $0x20] sm:$0xf] %v358_v49  ;;  %v738_v50 = vld [vmem:[#allocation10 + $0x140] sm:$0xff] }
 0x1e8   :  { %3898 = vmatpush1.bf16.msra.mxu0 %v3897_v55  ;;  %367 = vst [vmem:[#allocation2 + $0x28] sm:$0xf] %v360_v51  ;;  %v597_v55 = vld [vmem:[%s5801_s7] sm:$0x3]  ;;  %v740_v51 = vld [vmem:[#allocation10 + $0x150] sm:$0xff] }
 0x1e9   :  { %3900 = vmatprep.subr.bf16.mxu0 %v3899_v56  ;;  %v5292_v56 = vrot.slane %v597_v55, %v5253_v22  ;;  %v5297_v60 = vrot.slane %v597_v55, %v5259_v24 }
 0x1ec   :  { %3902 = vmatpush1.bf16.msra.mxu0 %v3901_v61 }
 0x1ed   :  { %3904 = vmatprep.subr.bf16.mxu0 %v3903_v62 }
 0x1f0   :  { %3906 = vmatpush1.bf16.msra.mxu0 %v3905_v3 }
 0x1f1   :  { %3908 = vmatprep.subr.bf16.mxu0 %v3907_v4 }
 0x1f4   :  { %3910 = vmatpush1.bf16.msra.mxu0 %v3909_v12 }
 0x1f5   :  { %3912 = vmatprep.subr.bf16.mxu0 %v3911_v13 }
 0x1f8   :  { %3914 = vmatpush1.bf16.msra.mxu0 %v3913_v25 }
 0x1f9   :  { %3916 = vmatprep.subr.bf16.mxu0 %v3915_v26 }
 0x1fc   :  { %3918 = vmatpush1.bf16.msra.mxu0 %v3917_v33  ;;  %v701_v33 = vld [vmem:[#allocation10 + $0x18] sm:$0xff] }
 0x1fd   :  { %3920 = vmatprep.subr.bf16.mxu0 %v3919_v34  ;;  %v5318_v34 = vpack.c.bf16 %v701_v33, %v699_v32 }
 0x200   :  { %3922 = vmatpush1.bf16.msra.mxu0 %v3921_v39  ;;  %v732_v39 = vld [vmem:[#allocation10 + $0x110] sm:$0xff] }
 0x201   :  { %3924 = vmatprep.subr.bf16.mxu0 %v3923_v40  ;;  %v735_v40 = vld [vmem:[#allocation10 + $0x128] sm:$0xff]  ;;  %v5323_v42 = vpack.c.bf16 %v732_v39, %v730_v37  ;;  %v705_v39 = vld [vmem:[#allocation10 + $0x38] sm:$0xff] }
 0x202   :  { %v703_v37 = vld [vmem:[#allocation10 + $0x28] sm:$0xff] }
 0x204   :  { %3926 = vmatpush1.bf16.msra.mxu0 %v3925_v43  ;;  %v5325_v43 = vpack.c.bf16 %v737_v41, %v735_v40  ;;  %v5370_v41 = vpack.c.bf16 %v700_v36, %v698_v35  ;;  %v723_v35 = vld [vmem:[#allocation10 + $0xc8] sm:$0xff]  ;;  %v725_v36 = vld [vmem:[#allocation10 + $0xd8] sm:$0xff] }
 0x205   :  { %3928 = vmatprep.subr.bf16.mxu0 %v5321_v38 }
 0x207   :  { %674 = vmatmul.mubr.f32.vlgmr.msra.gmra.mrb[6].mxu0 %v5208_v7 }
 0x208   :  { %679 = vmatprep.mubr.f32.mxu0 %v5210_v8  ;;  %3930 = vmatpush1.bf16.msra.mxu0 %v5323_v42 }
 0x209   :  { %3932 = vmatprep.subr.bf16.mxu0 %v5325_v43 }
 0x20b   :  { %680 = vmatmul.mubr.f32.gmra.mrb[8].mxu0 %v5219_v11 }
 0x20c   :  { %685 = vmatprep.mubr.f32.mxu0 %v5232_v14 }
 0x20f   :  { %686 = vmatmul.mubr.f32.gmra.mrb[10].mxu0 %v5240_v17 }
 0x210   :  { %1151 = vmatprep.mubr.f32.mxu0 %v4765_v18 }
 0x2b0   :  { %v831_v44 = vpop.f32.mrb[6].mxu1 }
 0x2b1   :  { %v835_v45 = vmul.f32 0.088388346, %v831_v44  ;;  %v3659_v46 = vpop.f32.mrb[7].mxu1  ;;  %v734_v44 = vld [vmem:[#allocation10 + $0x120] sm:$0xff] }
 0x2b2   :  { %v739_v46 = vld [vmem:[#allocation10 + $0x148] sm:$0xff] }
 0x2b3   :  { %v837_v47 = vsel %vm836_vm1, %v835_v45, -inf }
 0x2b4   :  { %838 = vmax.xlane.f32.xlu0 %v837_v47  ;;  %v741_v47 = vld [vmem:[#allocation10 + $0x158] sm:$0xff] }
 0x2b5   :  { %v5332_v49 = vpack.c.bf16 %v741_v47, %v739_v46  ;;  %v702_v46 = vld [vmem:[#allocation10 + $0x20] sm:$0xff]  ;;  %v704_v47 = vld [vmem:[#allocation10 + $0x30] sm:$0xff] }
 0x2da   :  { %v675_v57 = vpop.f32.mrb[6].mxu0 }
 0x2db   :  { %v676_v58 = vadd.f32 %v675_v57, %v5292_v56  ;;  %v677_v59 = vpop.f32.mrb[7].mxu0  ;;  %v742_v57 = vld [vmem:[#allocation10 + $0x160] sm:$0xff] }
 0x2dc   :  { %v678_v63 = vadd.f32 %v677_v59, %v5297_v60 }
 0x2dd   :  { %692 = vst [vmem:[#allocation4] sm:$0xff] %v676_v58  ;;  %v744_v58 = vld [vmem:[#allocation10 + $0x170] sm:$0xff] }
 0x2de   :  { %v681_v61 = vpop.f32.mrb[8].mxu0  ;;  %693 = vst [vmem:[#allocation4 + $0x8] sm:$0xff] %v678_v63  ;;  %v5341_v59 = vpack.c.bf16 %v744_v58, %v742_v57  ;;  %v748_v63 = vld [vmem:[#allocation10 + $0x190] sm:$0xff]  ;;  %v706_v57 = vld [vmem:[#allocation10 + $0x40] sm:$0xff]  ;;  %v711_v58 = vld [vmem:[#allocation10 + $0x68] sm:$0xff] }
 0x2df   :  { %v683_v62 = vpop.f32.mrb[9].mxu0  ;;  %v682_v0 = vadd.f32 %v681_v61, %v5292_v56 }
 0x2e0   :  { %v684_v1 = vadd.f32 %v683_v62, %v5297_v60  ;;  %v746_v62 = vld [vmem:[#allocation10 + $0x180] sm:$0xff] }
 0x2e1   :  { %694 = vst [vmem:[#allocation4 + $0x10] sm:$0xff] %v682_v0  ;;  %v751_v0 = vld [vmem:[#allocation10 + $0x1a8] sm:$0xff] }
 0x2e2   :  { %695 = vst [vmem:[#allocation4 + $0x18] sm:$0xff] %v684_v1  ;;  %v753_v1 = vld [vmem:[#allocation10 + $0x1b8] sm:$0xff] }
 0x2e4   :  { %v764_v2 = vld [vmem:[#allocation4] sm:$0x1f] }
 0x2e5   :  { %3661 = vmatpush3.msk.msra.mxu1 %vm852_vm2, %v764_v2  ;;  %v928_v10 = vld [vmem:[#allocation4 + $0x8] sm:$0x1f]  ;;  %v5347_v2 = vpack.c.bf16 %v748_v63, %v746_v62  ;;  %v710_v63 = vld [vmem:[#allocation10 + $0x60] sm:$0xff] }
 0x2e6   :  { %3665 = vmatprep.subr.mxu1 %v4765_v18 }
 0x341   :  { %v839_v52 = vpop.xlane.xlu0 %838 }
 0x342   :  { %v840_v53 = vsub.f32 %v835_v45, %v839_v52  ;;  %v736_v45 = vld [vmem:[#allocation10 + $0x130] sm:$0xff]  ;;  %v743_v52 = vld [vmem:[#allocation10 + $0x168] sm:$0xff] }
 0x343   :  { %v5329_v48 = vpack.c.bf16 %v736_v45, %v734_v44  ;;  %v5373_v45 = vpack.c.bf16 %v705_v39, %v703_v37  ;;  %v5405_v39 = vpack.c.bf16 %v725_v36, %v723_v35 }
 0x344   :  { %v841_v54 = vmul.f32 1.442695, %v840_v53  ;;  %v745_v53 = vld [vmem:[#allocation10 + $0x178] sm:$0xff] }
 0x345   :  { %3934 = vmatpush1.bf16.msra.mxu0 %v5329_v48  ;;  %v5338_v55 = vpack.c.bf16 %v745_v53, %v743_v52  ;;  %v5377_v52 = vpack.c.bf16 %v704_v47, %v702_v46  ;;  %v727_v46 = vld [vmem:[#allocation10 + $0xe8] sm:$0xff]  ;;  %v729_v47 = vld [vmem:[#allocation10 + $0xf8] sm:$0xff] }
 0x346   :  { %4475 = vpow2.f32 %v841_v54  ;;  %v5335_v54 = vpack.c.bf16 %v740_v51, %v738_v50  ;;  %3936 = vmatprep.subr.bf16.mxu0 %v5332_v49  ;;  %v707_v50 = vld [vmem:[#allocation10 + $0x48] sm:$0xff]  ;;  %v709_v51 = vld [vmem:[#allocation10 + $0x58] sm:$0xff] }
 0x347   :  { %v5381_v53 = vpack.c.bf16 %v709_v51, %v707_v50  ;;  %v5411_v51 = vpack.c.bf16 %v729_v47, %v727_v46 }
 0x349   :  { %3938 = vmatpush1.bf16.msra.mxu0 %v5335_v54 }
 0x34a   :  { %3940 = vmatprep.subr.bf16.mxu0 %v5338_v55 }
 0x34d   :  { %3942 = vmatpush1.bf16.msra.mxu0 %v5341_v59 }
 0x350   :  { %v4476_v28 = vpop.eup %4475 }
 0x351   :  { %v843_v29 = vsel %vm836_vm1, %v4476_v28, 0.0 }
 0x352   :  { %844 = vadd.xlane.f32.xlu0 %v843_v29  ;;  %v749_v29 = vld [vmem:[#allocation10 + $0x198] sm:$0xff] }
 0x3df   :  { %v845_v3 = vpop.xlane.xlu0 %844 }
 0x3e0   :  { %4477 = vrcp.f32 %v845_v3  ;;  %v5350_v3 = vpack.c.bf16 %v753_v1, %v751_v0  ;;  %v712_v0 = vld [vmem:[#allocation10 + $0x70] sm:$0xff]  ;;  %v715_v1 = vld [vmem:[#allocation10 + $0x88] sm:$0xff] }
 0x3ea   :  { %v4478_v4 = vpop.eup %4477 }
 0x3eb   :  { %v847_v5 = vmul.f32 %v4478_v4, %v4476_v28  ;;  %v747_v28 = vld [vmem:[#allocation10 + $0x188] sm:$0xff]  ;;  %v750_v4 = vld [vmem:[#allocation10 + $0x1a0] sm:$0xff] }
 0x3ec   :  { %v5344_v61 = vpack.c.bf16 %v749_v29, %v747_v28  ;;  %v713_v28 = vld [vmem:[#allocation10 + $0x78] sm:$0xff] }
 0x3ed   :  { %3663 = vmatmul.mubr.msk.f32.vlgmr.msra.gmra.mrb[8].mxu1 %vm848_vm3, %v847_v5  ;;  %v752_v5 = vld [vmem:[#allocation10 + $0x1b0] sm:$0xff]  ;;  %v5387_v62 = vpack.c.bf16 %v713_v28, %v711_v58  ;;  %v687_v28 = vpop.f32.mrb[10].mxu0 }
 0x3ee   :  { %3666 = vmatpush3.xpose.msra.mxu1 %v927_v6  ;;  %3667 = vmatprep.mubr.msk.f32.mxu1 %vm4766_vm0, %v4765_v18  ;;  %v755_v6 = vld [vmem:[#allocation10 + $0x1c8] sm:$0xff] }
 0x3ef   :  { %3670 = vmatprep.subr.mxu1 %v4765_v18  ;;  %3944 = vmatprep.subr.bf16.mxu0 %v5344_v61 }
 0x3f0   :  { %3946 = vmatpush1.bf16.msra.mxu0 %v5347_v2 }
 0x3f1   :  { %3668 = vmatmul.mubr.f32.vlgmr.msra.gmra.mrb[10].mxu1 %v926_v9  ;;  %v757_v9 = vld [vmem:[#allocation10 + $0x1d8] sm:$0xff]  ;;  %3948 = vmatprep.subr.bf16.mxu0 %v5350_v3 }
 0x3f2   :  { %3671 = vmatpush3.msk.msra.mxu1 %vm852_vm2, %v928_v10  ;;  %3672 = vmatprep.mubr.msk.f32.mxu1 %vm4766_vm0, %v4765_v18  ;;  %v5353_v10 = vpack.c.bf16 %v752_v5, %v750_v4  ;;  %v717_v4 = vld [vmem:[#allocation10 + $0x98] sm:$0xff]  ;;  %v5390_v5 = vpack.c.bf16 %v712_v0, %v710_v63  ;;  %v688_v63 = vadd.f32 %v687_v28, %v5292_v56  ;;  %v689_v0 = vpop.f32.mrb[11].mxu0 }
 0x3f3   :  { %3960 = vmatprep.subr.bf16.mxu1 %v5318_v34 }
 0x3f4   :  { %3950 = vmatpush1.bf16.msra.mxu0 %v5353_v10  ;;  %696 = vst [vmem:[#allocation4 + $0x20] sm:$0xf] %v688_v63  ;;  %v1746_v63 = vld [vmem:[#allocation4 + $0x10] sm:$0x7c] }
 0x4c0   :  { %v5311_v12 = vpop.f32.mrb[8].mxu1 }
 0x4c1   :  { %v3664_v13 = vpop.f32.mrb[9].mxu1 }
 0x4c2   :  { %v5356_v13 = vpack.c.bf16 %v757_v9, %v755_v6  ;;  %v5393_v6 = vpack.c.bf16 %v717_v4, %v715_v1  ;;  %v714_v9 = vld [vmem:[#allocation10 + $0x80] sm:$0xff]  ;;  %v690_v1 = vadd.f32 %v689_v0, %v5297_v60  ;;  %v1836_v0 = vrot.slane %v1746_v63, 2  ;;  %v1417_v63 = vld [vmem:[#allocation4 + $0x18] sm:$0x3] }
 0x4c3   :  { %v1234_v4 = vld [vmem:[#allocation3 + $0x10] sm:$0x3] }
 0x4c4   :  { %v995_v15 = vpop.f32.mrb[10].mxu1  ;;  %3952 = vmatprep.subr.bf16.mxu0 %v5356_v13  ;;  %697 = vst [vmem:[#allocation4 + $0x28] sm:$0xf] %v690_v1 }
 0x4c5   :  { %v999_v16 = vmul.f32 0.088388346, %v995_v15  ;;  %v3669_v19 = vpop.f32.mrb[11].mxu1  ;;  %v754_v15 = vld [vmem:[#allocation10 + $0x1c0] sm:$0xff] }
 0x4c6   :  { %v759_v19 = vld [vmem:[#allocation10 + $0x1e8] sm:$0xff] }
 0x4c7   :  { %v1000_v23 = vsel %vm836_vm1, %v999_v16, -inf }
 0x4c8   :  { %1001 = vmax.xlane.f32.xlu1 %v1000_v23  ;;  %v761_v23 = vld [vmem:[#allocation10 + $0x1f8] sm:$0xff] }
 0x555   :  { %v1002_v25 = vpop.xlane.xlu1 %1001 }
 0x556   :  { %v1003_v26 = vsub.f32 %v999_v16, %v1002_v25  ;;  %v756_v16 = vld [vmem:[#allocation10 + $0x1d0] sm:$0xff] }
 0x557   :  { %v5359_v25 = vpack.c.bf16 %v756_v16, %v754_v15  ;;  %v716_v15 = vld [vmem:[#allocation10 + $0x90] sm:$0xff]  ;;  %v719_v16 = vld [vmem:[#allocation10 + $0xa8] sm:$0xff] }
 0x558   :  { %v1004_v27 = vmul.f32 1.442695, %v1003_v26  ;;  %v5362_v26 = vpack.c.bf16 %v761_v23, %v759_v19  ;;  %v721_v19 = vld [vmem:[#allocation10 + $0xb8] sm:$0xff]  ;;  %v5396_v23 = vpack.c.bf16 %v716_v15, %v714_v9  ;;  %v1233_v9 = vld [vmem:[#allocation3] sm:$0xe0]  ;;  %v1247_v15 = vrot.slane %v1234_v4, 5 }
 0x559   :  { %3954 = vmatpush1.bf16.msra.mxu0 %v5359_v25 }
 0x55a   :  { %4479 = vpow2.f32 %v1004_v27  ;;  %v758_v27 = vld [vmem:[#allocation10 + $0x1e0] sm:$0xff]  ;;  %3956 = vmatprep.subr.bf16.mxu0 %v5362_v26 }
 0x564   :  { %v5314_v30 = vpop.eup %4479 }
 0x565   :  { %v1006_v31 = vsel %vm836_vm1, %v5314_v30, 0.0 }
 0x566   :  { %1007 = vadd.xlane.f32.xlu1 %v1006_v31  ;;  %v760_v31 = vld [vmem:[#allocation10 + $0x1f0] sm:$0xff] }
 0x567   :  { %v5365_v32 = vpack.c.bf16 %v760_v31, %v758_v27  ;;  %v5399_v27 = vpack.c.bf16 %v721_v19, %v719_v16  ;;  %v718_v31 = vld [vmem:[#allocation10 + $0xa0] sm:$0xff]  ;;  %v1232_v19 = vld [vmem:[#allocation2 + $0x10] sm:$0x3] }
 0x568   :  { %v1231_v16 = vld [vmem:[#allocation2] sm:$0xe0] }
 0x569   :  { %3958 = vmatpush1.bf16.msra.mxu0 %v5365_v32  ;;  %v1240_v36 = vrot.slane %v1231_v16, 5 }
 0x56a   :  { %3675 = vmatprep.subr.mxu0 %v4765_v18 }
 0x5f3   :  { %v1008_v33 = vpop.xlane.xlu1 %1007 }
 0x5f4   :  { %4481 = vrcp.f32 %v1008_v33  ;;  %v720_v33 = vld [vmem:[#allocation10 + $0xb0] sm:$0xff] }
 0x5f5   :  { %v5402_v37 = vpack.c.bf16 %v720_v33, %v718_v31  ;;  %v1235_v31 = vld [vmem:[#allocation4] sm:$0xe0]  ;;  %v1236_v33 = vld [vmem:[#allocation4 + $0x10] sm:$0x3] }
 0x5f6   :  { %v1334_v46 = vrot.slane %v1235_v31, 5  ;;  %v1335_v60 = vrot.slane %v1236_v33, 5 }
 0x5fe   :  { %v4482_v40 = vpop.eup %4481 }
 0x5ff   :  { %v1010_v44 = vmul.f32 %v4482_v40, %v5314_v30  ;;  %v708_v30 = vld [vmem:[#allocation10 + $0x50] sm:$0xff]  ;;  %v722_v40 = vld [vmem:[#allocation10 + $0xc0] sm:$0xff] }
 0x600   :  { %v5384_v29 = vpack.c.bf16 %v708_v30, %v706_v57  ;;  %v726_v57 = vld [vmem:[#allocation10 + $0xe0] sm:$0xff]  ;;  %v728_v30 = vld [vmem:[#allocation10 + $0xf0] sm:$0xff] }
 0x601   :  { %3673 = vmatmul.mubr.msk.f32.vlgmr.msra.gmra.mrb[12].mxu1 %vm848_vm3, %v1010_v44  ;;  %v724_v44 = vld [vmem:[#allocation10 + $0xd0] sm:$0xff]  ;;  %v5414_v58 = vpack.c.bf16 %v728_v30, %v726_v57  ;;  %v1336_v57 = vsel %vm1239_vm4, %v1334_v46, %v1335_v60  ;;  %v1415_v46 = vld [vmem:[#allocation3 + $0x18] sm:$0x3]  ;;  %v1414_v60 = vld [vmem:[#allocation3 + $0x8] sm:$0xe0] }
 0x602   :  { %3962 = vmatpush1.bf16.msra.mxu1 %v5370_v41  ;;  %1222 = vmatprep.mubr.f32.mxu1 %v4765_v18  ;;  %v5408_v50 = vpack.c.bf16 %v724_v44, %v722_v40  ;;  %v1241_v40 = vrot.slane %v1232_v19, 5 }
 0x603   :  { %3964 = vmatprep.subr.bf16.mxu1 %v5373_v45 }
 0x604   :  { %v1242_v47 = vsel %vm1239_vm4, %v1240_v36, %v1241_v40 }
 0x606   :  { %3966 = vmatpush1.bf16.msra.mxu1 %v5377_v52 }
 0x607   :  { %3968 = vmatprep.subr.bf16.mxu1 %v5381_v53 }
 0x60a   :  { %3970 = vmatpush1.bf16.msra.mxu1 %v5384_v29 }
 0x60b   :  { %3972 = vmatprep.subr.bf16.mxu1 %v5387_v62 }
 0x60e   :  { %3974 = vmatpush1.bf16.msra.mxu1 %v5390_v5 }
 0x60f   :  { %3976 = vmatprep.subr.bf16.mxu1 %v5393_v6 }
 0x612   :  { %3978 = vmatpush1.bf16.msra.mxu1 %v5396_v23 }
 0x613   :  { %3980 = vmatprep.subr.bf16.mxu1 %v5399_v27 }
 0x616   :  { %3982 = vmatpush1.bf16.msra.mxu1 %v5402_v37 }
 0x617   :  { %3984 = vmatprep.subr.bf16.mxu1 %v5405_v39 }
 0x61a   :  { %3986 = vmatpush1.bf16.msra.mxu1 %v5408_v50 }
 0x61b   :  { %3988 = vmatprep.subr.bf16.mxu1 %v5411_v51 }
 0x61e   :  { %3990 = vmatpush1.bf16.msra.mxu1 %v5414_v58 }
 0x61f   :  { %3700 = vmatprep.subr.mxu1 %v4765_v18 }
 0x621   :  { %1223 = vmatmul.mubr.f32.vlgmr.msra.gmra.mrb[14].mxu1 %v5311_v12  ;;  %v1246_v12 = vrot.slane %v1233_v9, 5 }
 0x622   :  { %3702 = vmatprep.mubr.msk.f32.mxu1 %vm4766_vm0, %v4765_v18  ;;  %3701 = vmatpush3.msk.msra.mxu1 %vm852_vm2, %v1836_v0 }
 0x623   :  { %v1248_v56 = vsel %vm1239_vm4, %v1246_v12, %v1247_v15  ;;  %3705 = vmatprep.subr.mxu1 %v4765_v18 }
 0x6d4   :  { %v1083_v35 = vpop.f32.mrb[12].mxu1 }
 0x6d5   :  { %v3674_v44 = vpop.f32.mrb[13].mxu1  ;;  %1152 = vmatmul.mubr.f32.vlgmr.msra.gmra.mrb[12].mxu0 %v1083_v35 }
 0x6d6   :  { %3676 = vmatpush3.xpose.msra.mxu0 %v1248_v56  ;;  %3677 = vmatprep.mubr.msk.f32.mxu0 %vm4766_vm0, %v4765_v18 }
 0x6d7   :  { %3680 = vmatprep.subr.mxu0 %v4765_v18 }
 0x6d9   :  { %3678 = vmatmul.mubr.f32.vlgmr.msra.gmra.mrb[14].mxu0 %v1242_v47  ;;  %v1427_v47 = vrot.slane %v1415_v46, 5 }
 0x6da   :  { %3681 = vmatpush3.msk.msra.mxu0 %vm852_vm2, %v1336_v57  ;;  %3682 = vmatprep.mubr.msk.f32.mxu0 %vm4766_vm0, %v4765_v18  ;;  %v1413_v57 = vld [vmem:[#allocation2 + $0x18] sm:$0x3] }
 0x6db   :  { %3685 = vmatprep.subr.mxu0 %v4765_v18 }
 0x6f4   :  { %v1224_v30 = vpop.f32.mrb[14].mxu1 }
 0x6f5   :  { %v1226_v28 = vpop.f32.mrb[15].mxu1 }
 0x7a8   :  { %v1153_v1 = vpop.f32.mrb[12].mxu0 }
 0x7a9   :  { %v1225_v4 = vadd.f32 %v1224_v30, %v1153_v1  ;;  %v1155_v9 = vpop.f32.mrb[13].mxu0  ;;  %v1426_v1 = vrot.slane %v1414_v60, 5 }
 0x7aa   :  { %v1227_v15 = vadd.f32 %v1226_v28, %v1155_v9  ;;  %v1416_v28 = vld [vmem:[#allocation4 + $0x8] sm:$0xe0]  ;;  %v1421_v9 = vrot.slane %v1413_v57, 5 }
 0x7ab   :  { %1229 = vst [vmem:[#allocation5] sm:$0x1f] %v1225_v4  ;;  %v1412_v4 = vld [vmem:[#allocation2 + $0x8] sm:$0xe0] }
 0x7ac   :  { %1230 = vst [vmem:[#allocation5 + $0x8] sm:$0x1f] %v1227_v15  ;;  %v1316_v16 = vpop.f32.mrb[14].mxu0  ;;  %v1428_v15 = vsel %vm1239_vm4, %v1426_v1, %v1427_v47 }
 0x7ad   :  { %v1320_v19 = vmul.f32 0.088388346, %v1316_v16  ;;  %v3679_v31 = vpop.f32.mrb[15].mxu0  ;;  %v1514_v16 = vrot.slane %v1416_v28, 5 }
 0x7ae   :  { %v1420_v31 = vrot.slane %v1412_v4, 5 }
 0x7af   :  { %v1321_v33 = vsel %vm836_vm1, %v1320_v19, -inf }
 0x7b0   :  { %1322 = vmax.xlane.f32.xlu0 %v1321_v33  ;;  %v1422_v33 = vsel %vm1239_vm4, %v1420_v31, %v1421_v9 }
 0x83d   :  { %v1323_v12 = vpop.xlane.xlu0 %1322 }
 0x83e   :  { %v1324_v35 = vsub.f32 %v1320_v19, %v1323_v12  ;;  %v1515_v19 = vrot.slane %v1417_v63, 5 }
 0x840   :  { %v1325_v36 = vmul.f32 1.442695, %v1324_v35  ;;  %v1516_v12 = vsel %vm1239_vm4, %v1514_v16, %v1515_v19  ;;  %v2232_v16 = vld [vmem:[#allocation3 + $0x10] sm:$0x80]  ;;  %v2233_v19 = vld [vmem:[#allocation3 + $0x20] sm:$0xf] }
 0x842   :  { %4483 = vpow2.f32 %v1325_v36 }
 0x84c   :  { %v4484_v40 = vpop.eup %4483 }
 0x84d   :  { %v1327_v44 = vsel %vm836_vm1, %v4484_v40, 0.0 }
 0x84e   :  { %1328 = vadd.xlane.f32.xlu1 %v1327_v44 }
 0x8db   :  { %v1329_v56 = vpop.xlane.xlu1 %1328 }
 0x8dc   :  { %4485 = vrcp.f32 %v1329_v56 }
 0x8e6   :  { %v4486_v30 = vpop.eup %4485 }
 0x8e7   :  { %v1331_v0 = vmul.f32 %v4486_v30, %v4484_v40 }
 0x8e9   :  { %3683 = vmatmul.mubr.msk.f32.vlgmr.msra.gmra.mrb[16].mxu0 %vm848_vm3, %v1331_v0 }
 0x8ea   :  { %3686 = vmatpush3.xpose.msra.mxu0 %v1428_v15  ;;  %3687 = vmatprep.mubr.msk.f32.mxu0 %vm4766_vm0, %v4765_v18  ;;  %v1745_v15 = vld [vmem:[#allocation3 + $0x10] sm:$0x7c] }
 0x8eb   :  { %3690 = vmatprep.subr.mxu0 %v4765_v18  ;;  %v1751_v31 = vrot.slane %v1745_v15, 2 }
 0x8ed   :  { %3688 = vmatmul.mubr.f32.vlgmr.msra.gmra.mrb[18].mxu0 %v1422_v33  ;;  %v1744_v33 = vld [vmem:[#allocation2 + $0x10] sm:$0x7c] }
 0x8ee   :  { %3691 = vmatpush3.msk.msra.mxu0 %vm852_vm2, %v1516_v12  ;;  %3692 = vmatprep.mubr.msk.f32.mxu0 %vm4766_vm0, %v4765_v18  ;;  %v2245_v12 = vrot.slane %v2232_v16, 7 }
 0x8ef   :  { %3992 = vmatprep.subr.bf16.mxu0 %v5321_v38 }
 0x9bc   :  { %v1408_v35 = vpop.f32.mrb[16].mxu0 }
 0x9bd   :  { %v3684_v36 = vpop.f32.mrb[17].mxu0 }
 0x9be   :  { %v2246_v36 = vrot.slane %v2233_v19, 7 }
 0x9c0   :  { %v1496_v40 = vpop.f32.mrb[18].mxu0 }
 0x9c1   :  { %v1500_v44 = vmul.f32 0.088388346, %v1496_v40  ;;  %v3689_v56 = vpop.f32.mrb[19].mxu0  ;;  %v2230_v40 = vld [vmem:[#allocation2 + $0x10] sm:$0x80] }
 0x9c2   :  { %v2234_v56 = vld [vmem:[#allocation4 + $0x10] sm:$0x80] }
 0x9c3   :  { %v1501_v46 = vsel %vm836_vm1, %v1500_v44, -inf }
 0x9c4   :  { %1502 = vmax.xlane.f32.xlu0 %v1501_v46  ;;  %v2235_v46 = vld [vmem:[#allocation4 + $0x20] sm:$0xf] }
 0xa51   :  { %v1503_v60 = vpop.xlane.xlu0 %1502 }
 0xa52   :  { %v1504_v47 = vsub.f32 %v1500_v44, %v1503_v60  ;;  %v2231_v44 = vld [vmem:[#allocation2 + $0x20] sm:$0xf]  ;;  %v1748_v60 = vrot.slane %v1744_v33, 2 }
 0xa54   :  { %v1505_v57 = vmul.f32 1.442695, %v1504_v47  ;;  %v2240_v47 = vrot.slane %v2231_v44, 7 }
 0xa56   :  { %4487 = vpow2.f32 %v1505_v57  ;;  %v2247_v57 = vsel %vm2238_vm5, %v2245_v12, %v2246_v36 }
 0xa60   :  { %v4488_v30 = vpop.eup %4487 }
 0xa61   :  { %v1507_v28 = vsel %vm836_vm1, %v4488_v30, 0.0 }
 0xa62   :  { %1508 = vadd.xlane.f32.xlu1 %v1507_v28  ;;  %v2334_v28 = vrot.slane %v2235_v46, 7 }
 0xaef   :  { %v1509_v63 = vpop.xlane.xlu1 %1508 }
 0xaf0   :  { %4489 = vrcp.f32 %v1509_v63 }
 0xafa   :  { %v4490_v0 = vpop.eup %4489 }
 0xafb   :  { %v1511_v1 = vmul.f32 %v4490_v0, %v4488_v30  ;;  %v2333_v30 = vrot.slane %v2234_v56, 7 }
 0xafd   :  { %3693 = vmatmul.mubr.msk.f32.vlgmr.msra.gmra.mrb[20].mxu0 %vm848_vm3, %v1511_v1  ;;  %v2335_v0 = vsel %vm2238_vm5, %v2333_v30, %v2334_v28 }
 0xafe   :  { %3994 = vmatpush1.bf16.msra.mxu0 %v5323_v42  ;;  %1656 = vmatprep.mubr.f32.mxu0 %v4765_v18 }
 0xaff   :  { %3996 = vmatprep.subr.bf16.mxu0 %v5325_v43 }
 0xb02   :  { %3998 = vmatpush1.bf16.msra.mxu0 %v5329_v48 }
 0xb03   :  { %4000 = vmatprep.subr.bf16.mxu0 %v5332_v49 }
 0xb06   :  { %4002 = vmatpush1.bf16.msra.mxu0 %v5335_v54 }
 0xb07   :  { %4004 = vmatprep.subr.bf16.mxu0 %v5338_v55 }
 0xb0a   :  { %4006 = vmatpush1.bf16.msra.mxu0 %v5341_v59 }
 0xb0b   :  { %4008 = vmatprep.subr.bf16.mxu0 %v5344_v61 }
 0xb0e   :  { %4010 = vmatpush1.bf16.msra.mxu0 %v5347_v2 }
 0xb0f   :  { %4012 = vmatprep.subr.bf16.mxu0 %v5350_v3 }
 0xb12   :  { %4014 = vmatpush1.bf16.msra.mxu0 %v5353_v10 }
 0xb13   :  { %4016 = vmatprep.subr.bf16.mxu0 %v5356_v13 }
 0xb16   :  { %4018 = vmatpush1.bf16.msra.mxu0 %v5359_v25 }
 0xb17   :  { %4020 = vmatprep.subr.bf16.mxu0 %v5362_v26 }
 0xb1a   :  { %4022 = vmatpush1.bf16.msra.mxu0 %v5365_v32 }
 0xb1b   :  { %4024 = vmatprep.subr.bf16.mxu0 %v5318_v34 }
 0xbd0   :  { %v1588_v4 = vpop.f32.mrb[20].mxu0 }
 0xbd1   :  { %v3694_v9 = vpop.f32.mrb[21].mxu0  ;;  %1657 = vmatmul.mubr.f32.vlgmr.msra.gmra.mrb[22].mxu0 %v1588_v4 }
 0xbd2   :  { %4026 = vmatpush1.bf16.msra.mxu0 %v5370_v41  ;;  %1727 = vmatprep.mubr.f32.mxu0 %v4765_v18 }
 0xbd3   :  { %4028 = vmatprep.subr.bf16.mxu0 %v5373_v45 }
 0xbd6   :  { %4030 = vmatpush1.bf16.msra.mxu0 %v5377_v52 }
 0xbd7   :  { %4032 = vmatprep.subr.bf16.mxu0 %v5381_v53 }
 0xbda   :  { %4034 = vmatpush1.bf16.msra.mxu0 %v5384_v29 }
 0xbdb   :  { %4036 = vmatprep.subr.bf16.mxu0 %v5387_v62 }
 0xbde   :  { %4038 = vmatpush1.bf16.msra.mxu0 %v5390_v5 }
 0xbdf   :  { %4040 = vmatprep.subr.bf16.mxu0 %v5393_v6 }
 0xbe2   :  { %4042 = vmatpush1.bf16.msra.mxu0 %v5396_v23 }
 0xbe3   :  { %4044 = vmatprep.subr.bf16.mxu0 %v5399_v27 }
 0xbe6   :  { %4046 = vmatpush1.bf16.msra.mxu0 %v5402_v37 }
 0xbe7   :  { %4048 = vmatprep.subr.bf16.mxu0 %v5405_v39 }
 0xbea   :  { %4050 = vmatpush1.bf16.msra.mxu0 %v5408_v50 }
 0xbeb   :  { %4052 = vmatprep.subr.bf16.mxu0 %v5411_v51 }
 0xbee   :  { %4054 = vmatpush1.bf16.msra.mxu0 %v5414_v58 }
 0xbef   :  { %3695 = vmatprep.subr.mxu0 %v4765_v18 }
 0xbf1   :  { %1728 = vmatmul.mubr.f32.vlgmr.msra.gmra.mrb[22].mxu0 %v1408_v35  ;;  %v2239_v35 = vrot.slane %v2230_v40, 7 }
 0xbf2   :  { %3697 = vmatprep.mubr.msk.f32.mxu0 %vm4766_vm0, %v4765_v18 }
 0xbf3   :  { %v2241_v63 = vsel %vm2238_vm5, %v2239_v35, %v2240_v47 }
 0xbf7   :  { %3696 = vmatpush3.xpose.msra.mxu0 %v1751_v31 }
 0xbf8   :  { %3715 = vmatprep.subr.mxu0 %v4765_v18 }
 0xbfa   :  { %3698 = vmatmul.mubr.f32.vlgmr.msra.gmra.mrb[24].mxu0 %v1748_v60 }
 0xbfb   :  { %3716 = vmatpush3.xpose.msra.mxu0 %v2247_v57  ;;  %3717 = vmatprep.mubr.msk.f32.mxu0 %vm4766_vm0, %v4765_v18 }
 0xbfc   :  { %3720 = vmatprep.subr.mxu0 %v4765_v18 }
 0xbfe   :  { %3718 = vmatmul.mubr.f32.vlgmr.msra.gmra.mrb[26].mxu0 %v2241_v63 }
 0xbff   :  { %3721 = vmatpush3.msk.msra.mxu0 %vm852_vm2, %v2335_v0  ;;  %3722 = vmatprep.mubr.msk.f32.mxu0 %vm4766_vm0, %v4765_v18 }
 0xc00   :  { %3725 = vmatprep.subr.mxu0 %v4765_v18 }
 0xcc4   :  { %v1729_v1 = vpop.f32.mrb[22].mxu0 }
 0xcc5   :  { %v1736_v4 = vrot.slane %v1729_v1, 3  ;;  %v1731_v9 = vpop.f32.mrb[23].mxu0 }
 0xcc6   :  { %v1737_v15 = vrot.slane %v1731_v9, 3  ;;  %v1913_v9 = vld [vmem:[#allocation3 + $0x18] sm:$0x7c] }
 0xcc7   :  { %1740 = vst [vmem:[#allocation5 + $0x10] ss:$-12 sps:$4 sm:$0xe3] %v1736_v4  }
 0xcc8   :  { %1741 = vst [vmem:[#allocation5 + $0x18] ss:$-12 sps:$4 sm:$0xe3] %v1737_v15   ;;  %v2413_v15 = vld [vmem:[#allocation3 + $0x18] sm:$0x80] }
 0xccd   :  { %v1819_v16 = vpop.f32.mrb[24].mxu0 }
 0xcce   :  { %v1823_v19 = vmul.f32 0.088388346, %v1819_v16  ;;  %v3699_v31 = vpop.f32.mrb[25].mxu0  ;;  %v2414_v16 = vld [vmem:[#allocation3 + $0x28] sm:$0xf] }
 0xcd0   :  { %v1824_v33 = vsel %vm836_vm1, %v1823_v19, -inf }
 0xcd1   :  { %1825 = vmax.xlane.f32.xlu0 %v1824_v33  ;;  %v2315_v12 = vpop.f32.mrb[26].mxu0  ;;  %v1919_v33 = vrot.slane %v1913_v9, 2 }
 0xcd2   :  { %v2319_v36 = vmul.f32 0.088388346, %v2315_v12  ;;  %v3719_v40 = vpop.f32.mrb[27].mxu0  ;;  %v1912_v12 = vld [vmem:[#allocation2 + $0x18] sm:$0x7c] }
 0xcd3   :  { %v2426_v40 = vrot.slane %v2414_v16, 7 }
 0xcd4   :  { %v2320_v44 = vsel %vm836_vm1, %v2319_v36, -inf }
 0xcd5   :  { %2321 = vmax.xlane.f32.xlu1 %v2320_v44  ;;  %v1914_v44 = vld [vmem:[#allocation4 + $0x18] sm:$0x7c] }
 0xd5e   :  { %v1826_v56 = vpop.xlane.xlu0 %1825 }
 0xd5f   :  { %v1827_v46 = vsub.f32 %v1823_v19, %v1826_v56  ;;  %v2411_v56 = vld [vmem:[#allocation2 + $0x18] sm:$0x80] }
 0xd61   :  { %v1828_v60 = vmul.f32 1.442695, %v1827_v46  ;;  %v2412_v46 = vld [vmem:[#allocation2 + $0x28] sm:$0xf] }
 0xd62   :  { %v2322_v35 = vpop.xlane.xlu1 %2321 }
 0xd63   :  { %4491 = vpow2.f32 %v1828_v60  ;;  %v2323_v47 = vsub.f32 %v2319_v36, %v2322_v35  ;;  %v2425_v36 = vrot.slane %v2413_v15, 7  ;;  %v2415_v35 = vld [vmem:[#allocation4 + $0x18] sm:$0x80] }
 0xd64   :  { %v2513_v9 = vrot.slane %v2415_v35, 7 }
 0xd65   :  { %v2324_v57 = vmul.f32 1.442695, %v2323_v47  ;;  %v2416_v47 = vld [vmem:[#allocation4 + $0x28] sm:$0xf] }
 0xd66   :  { %v2514_v15 = vrot.slane %v2416_v47, 7 }
 0xd67   :  { %4493 = vpow2.f32 %v2324_v57 }
 0xd68   :  { %v2515_v16 = vsel %vm2238_vm5, %v2513_v9, %v2514_v15 }
 0xd6d   :  { %v4492_v30 = vpop.eup %4491 }
 0xd6e   :  { %v1830_v28 = vsel %vm836_vm1, %v4492_v30, 0.0 }
 0xd6f   :  { %1831 = vadd.xlane.f32.xlu0 %v1830_v28  ;;  %v2004_v28 = vrot.slane %v1914_v44, 2 }
 0xd71   :  { %v4494_v63 = vpop.eup %4493 }
 0xd72   :  { %v2326_v0 = vsel %vm836_vm1, %v4494_v63, 0.0 }
 0xd73   :  { %2327 = vadd.xlane.f32.xlu1 %v2326_v0  ;;  %v2419_v0 = vrot.slane %v2411_v56, 7 }
 0xdfc   :  { %v1832_v1 = vpop.xlane.xlu0 %1831 }
 0xdfd   :  { %4495 = vrcp.f32 %v1832_v1  ;;  %v2420_v1 = vrot.slane %v2412_v46, 7 }
 0xe00   :  { %v2328_v4 = vpop.xlane.xlu1 %2327 }
 0xe01   :  { %4497 = vrcp.f32 %v2328_v4  ;;  %v2427_v4 = vsel %vm2238_vm5, %v2425_v36, %v2426_v40 }
 0xe07   :  { %v4496_v19 = vpop.eup %4495 }
 0xe08   :  { %v1834_v31 = vmul.f32 %v4496_v19, %v4492_v30  ;;  %v1916_v30 = vrot.slane %v1912_v12, 2 }
 0xe0a   :  { %3703 = vmatmul.mubr.msk.f32.vlgmr.msra.gmra.mrb[16].mxu1 %vm848_vm3, %v1834_v31 }
 0xe0b   :  { %v4498_v60 = vpop.eup %4497  ;;  %3706 = vmatpush3.xpose.msra.mxu1 %v1919_v33  ;;  %3707 = vmatprep.mubr.msk.f32.mxu1 %vm4766_vm0, %v4765_v18 }
 0xe0c   :  { %v2330_v57 = vmul.f32 %v4498_v60, %v4494_v63  ;;  %3710 = vmatprep.subr.mxu1 %v4765_v18  ;;  %v2421_v63 = vsel %vm2238_vm5, %v2419_v0, %v2420_v1  ;;  %v2749_v0 = vld [vmem:[%s5803_s9] sm:$0x3] }
 0xe0d   :  { %v5532_v9 = vrot.slane %v2749_v0, %v5253_v22  ;;  %v5535_v15 = vrot.slane %v2749_v0, %v5259_v24  ;;  %v2883_v0 = vld [vmem:[#allocation14 + $0xa0] sm:$0xff] }
 0xe0e   :  { %3708 = vmatmul.mubr.f32.vlgmr.msra.gmra.mrb[18].mxu1 %v1916_v30  ;;  %3723 = vmatmul.mubr.msk.f32.vlgmr.msra.gmra.mrb[28].mxu0 %vm848_vm3, %v2330_v57 }
 0xe0f   :  { %3711 = vmatpush3.msk.msra.mxu1 %vm852_vm2, %v2004_v28  ;;  %3726 = vmatpush3.xpose.msra.mxu0 %v2427_v4 }
 0xe10   :  { %3727 = vmatprep.mubr.msk.f32.mxu0 %vm4766_vm0, %v4765_v18  ;;  %3730 = vmatprep.subr.mxu0 %v4765_v18 }
 0xe11   :  { %3712 = vmatprep.mubr.msk.f32.mxu1 %vm4766_vm0, %v4765_v18  ;;  %4056 = vmatprep.subr.bf16.mxu1 %v5321_v38 }
 0xe12   :  { %3728 = vmatmul.mubr.f32.vlgmr.msra.gmra.mrb[30].mxu0 %v2421_v63  ;;  %v2743_v63 = vld [vmem:[#allocation5] sm:$0xff] }
 0xe13   :  { %3731 = vmatpush3.msk.msra.mxu0 %vm852_vm2, %v2515_v16  ;;  %3732 = vmatprep.mubr.msk.f32.mxu0 %vm4766_vm0, %v4765_v18  ;;  %v2744_v16 = vld [vmem:[#allocation5 + $0x8] sm:$0xff] }
 0xe14   :  { %4120 = vmatprep.subr.bf16.mxu0 %v5321_v38 }
 0xedd   :  { %v5522_v19 = vpop.f32.mrb[16].mxu1 }
 0xede   :  { %v3704_v31 = vpop.f32.mrb[17].mxu1 }
 0xedf   :  { %v2761_v31 = vadd.f32 %v5532_v9, %v2743_v63 }
 0xee1   :  { %v1987_v33 = vpop.f32.mrb[18].mxu1  ;;  %v5524_v12 = vpop.f32.mrb[28].mxu0 }
 0xee2   :  { %v1991_v36 = vmul.f32 0.088388346, %v1987_v33  ;;  %v3709_v40 = vpop.f32.mrb[19].mxu1  ;;  %v3724_v44 = vpop.f32.mrb[29].mxu0  ;;  %v2762_v33 = vadd.f32 %v5535_v15, %v2744_v16  ;;  %v2888_v16 = vld [vmem:[#allocation14 + $0xc8] sm:$0xff] }
 0xee3   :  { %v5540_v40 = vadd.f32 %v2761_v31, %v5208_v7  ;;  %v2892_v31 = vld [vmem:[#allocation14 + $0xe8] sm:$0xff] }
 0xee4   :  { %v1992_v56 = vsel %vm836_vm1, %v1991_v36, -inf  ;;  %v5543_v44 = vadd.f32 %v2762_v33, %v5150_v20  ;;  %v2890_v33 = vld [vmem:[#allocation14 + $0xd8] sm:$0xff] }
 0xee5   :  { %v2495_v46 = vpop.f32.mrb[30].mxu0  ;;  %1993 = vmax.xlane.f32.xlu0 %v1992_v56 }
 0xee6   :  { %v2499_v60 = vmul.f32 0.088388346, %v2495_v46  ;;  %v3729_v35 = vpop.f32.mrb[31].mxu0 }
 0xee8   :  { %v2500_v47 = vsel %vm836_vm1, %v2499_v60, -inf }
 0xee9   :  { %2501 = vmax.xlane.f32.xlu1 %v2500_v47 }
 0xf72   :  { %v1994_v57 = vpop.xlane.xlu0 %1993 }
 0xf73   :  { %v1995_v38 = vsub.f32 %v1991_v36, %v1994_v57 }
 0xf75   :  { %v1996_v30 = vmul.f32 1.442695, %v1995_v38 }
 0xf76   :  { %v2502_v28 = vpop.xlane.xlu1 %2501 }
 0xf77   :  { %4499 = vpow2.f32 %v1996_v30  ;;  %v2503_v1 = vsub.f32 %v2499_v60, %v2502_v28  ;;  %v2775_v60 = vadd.f32 %v5543_v44, %v5540_v40 }
 0xf79   :  { %v2504_v4 = vmul.f32 1.442695, %v2503_v1  ;;  %v2881_v1 = vld [vmem:[#allocation14 + $0x90] sm:$0xff] }
 0xf7b   :  { %4501 = vpow2.f32 %v2504_v4  ;;  %v2885_v4 = vld [vmem:[#allocation14 + $0xb0] sm:$0xff] }
 0xf81   :  { %v4500_v36 = vpop.eup %4499 }
 0xf82   :  { %v1998_v56 = vsel %vm836_vm1, %v4500_v36, 0.0 }
 0xf83   :  { %1999 = vadd.xlane.f32.xlu0 %v1998_v56  ;;  %v4195_v56 = vpack.c.bf16 %v2892_v31, %v2888_v16  ;;  %v2919_v31 = vld [vmem:[#allocation14 + $0x1c0] sm:$0xff] }
 0xf85   :  { %v4502_v46 = vpop.eup %4501 }
 0xf86   :  { %v2506_v35 = vsel %vm836_vm1, %v4502_v46, 0.0 }
 0xf87   :  { %2507 = vadd.xlane.f32.xlu1 %v2506_v35  ;;  %2776 = vadd.xlane.f32.xlu0 %v2775_v60  ;;  %v2887_v60 = vld [vmem:[#allocation14 + $0xc0] sm:$0xff] }
 0xf88   :  { %v2891_v35 = vld [vmem:[#allocation14 + $0xe0] sm:$0xff] }
0x1010   :  { %v2000_v47 = vpop.xlane.xlu0 %1999 }
0x1011   :  { %4503 = vrcp.f32 %v2000_v47 }
0x1014   :  { %v2508_v57 = vpop.xlane.xlu1 %2507 }
0x1015   :  { %4505 = vrcp.f32 %v2508_v57  ;;  %v2889_v57 = vld [vmem:[#allocation14 + $0xd0] sm:$0xff] }
0x101b   :  { %v4504_v7 = vpop.eup %4503 }
0x101c   :  { %v2002_v38 = vmul.f32 %v4504_v7, %v4500_v36  ;;  %v4257_v36 = vpack.c.bf16 %v2885_v4, %v2881_v1  ;;  %v2893_v7 = vld [vmem:[#allocation14 + $0xf0] sm:$0xff]  ;;  %v2926_v1 = vld [vmem:[#allocation14 + $0x1f8] sm:$0xff] }
0x101e   :  { %3713 = vmatmul.mubr.msk.f32.vlgmr.msra.gmra.mrb[20].mxu1 %vm848_vm3, %v2002_v38  ;;  %v2896_v38 = vld [vmem:[#allocation14 + $0x108] sm:$0xff] }
0x101f   :  { %v4506_v20 = vpop.eup %4505  ;;  %4058 = vmatpush1.bf16.msra.mxu1 %v5323_v42  ;;  %2144 = vmatprep.mubr.f32.mxu1 %v4765_v18 }
0x1020   :  { %v2510_v30 = vmul.f32 %v4506_v20, %v4502_v46  ;;  %4060 = vmatprep.subr.bf16.mxu1 %v5325_v43  ;;  %v2894_v46 = vld [vmem:[#allocation14 + $0xf8] sm:$0xff]  ;;  %v2900_v20 = vld [vmem:[#allocation14 + $0x128] sm:$0xff] }
0x1021   :  { %v4259_v47 = vpack.c.bf16 %v2894_v46, %v2890_v33  ;;  %v2923_v33 = vld [vmem:[#allocation14 + $0x1e0] sm:$0xff]  ;;  %v2925_v46 = vld [vmem:[#allocation14 + $0x1f0] sm:$0xff] }
0x1022   :  { %3733 = vmatmul.mubr.msk.f32.vlgmr.msra.gmra.mrb[32].mxu0 %vm848_vm3, %v2510_v30  ;;  %v2898_v30 = vld [vmem:[#allocation14 + $0x118] sm:$0xff] }
0x1023   :  { %4062 = vmatpush1.bf16.msra.mxu1 %v5329_v48  ;;  %4122 = vmatpush1.bf16.msra.mxu0 %v5323_v42 }
0x1024   :  { %4064 = vmatprep.subr.bf16.mxu1 %v5332_v49  ;;  %4124 = vmatprep.subr.bf16.mxu0 %v5325_v43 }
0x1025   :  { %2655 = vmatprep.mubr.f32.mxu0 %v4765_v18 }
0x1027   :  { %4066 = vmatpush1.bf16.msra.mxu1 %v5335_v54  ;;  %4126 = vmatpush1.bf16.msra.mxu0 %v5329_v48 }
0x1028   :  { %4068 = vmatprep.subr.bf16.mxu1 %v5338_v55  ;;  %4128 = vmatprep.subr.bf16.mxu0 %v5332_v49 }
0x102b   :  { %4070 = vmatpush1.bf16.msra.mxu1 %v5341_v59  ;;  %4130 = vmatpush1.bf16.msra.mxu0 %v5335_v54  ;;  %v2866_v54 = vld [vmem:[#allocation14 + $0x18] sm:$0xff] }
0x102c   :  { %4072 = vmatprep.subr.bf16.mxu1 %v5344_v61  ;;  %4132 = vmatprep.subr.bf16.mxu0 %v5338_v55 }
0x102f   :  { %4074 = vmatpush1.bf16.msra.mxu1 %v5347_v2  ;;  %4134 = vmatpush1.bf16.msra.mxu0 %v5341_v59  ;;  %v2870_v59 = vld [vmem:[#allocation14 + $0x38] sm:$0xff] }
0x1030   :  { %4076 = vmatprep.subr.bf16.mxu1 %v5350_v3  ;;  %4136 = vmatprep.subr.bf16.mxu0 %v5344_v61  ;;  %v2863_v61 = vld [vmem:[#allocation14] sm:$0xff] }
0x1033   :  { %4078 = vmatpush1.bf16.msra.mxu1 %v5353_v10  ;;  %4138 = vmatpush1.bf16.msra.mxu0 %v5347_v2  ;;  %v2867_v2 = vld [vmem:[#allocation14 + $0x20] sm:$0xff] }
0x1034   :  { %4080 = vmatprep.subr.bf16.mxu1 %v5356_v13  ;;  %4140 = vmatprep.subr.bf16.mxu0 %v5350_v3  ;;  %v4247_v3 = vpack.c.bf16 %v2870_v59, %v2866_v54  ;;  %v2897_v54 = vld [vmem:[#allocation14 + $0x110] sm:$0xff] }
0x1035   :  { %v2901_v59 = vld [vmem:[#allocation14 + $0x130] sm:$0xff] }
0x1037   :  { %4082 = vmatpush1.bf16.msra.mxu1 %v5359_v25  ;;  %4142 = vmatpush1.bf16.msra.mxu0 %v5353_v10  ;;  %v4185_v10 = vpack.c.bf16 %v2867_v2, %v2863_v61  ;;  %v2904_v61 = vld [vmem:[#allocation14 + $0x148] sm:$0xff] }
0x1038   :  { %4084 = vmatprep.subr.bf16.mxu1 %v5362_v26  ;;  %4144 = vmatprep.subr.bf16.mxu0 %v5356_v13  ;;  %v2865_v13 = vld [vmem:[#allocation14 + $0x10] sm:$0xff]  ;;  %v2908_v2 = vld [vmem:[#allocation14 + $0x168] sm:$0xff] }
0x103b   :  { %4086 = vmatpush1.bf16.msra.mxu1 %v5365_v32  ;;  %4146 = vmatpush1.bf16.msra.mxu0 %v5359_v25  ;;  %v2869_v25 = vld [vmem:[#allocation14 + $0x30] sm:$0xff] }
0x103c   :  { %4088 = vmatprep.subr.bf16.mxu1 %v5318_v34  ;;  %4148 = vmatprep.subr.bf16.mxu0 %v5362_v26  ;;  %v2872_v26 = vld [vmem:[#allocation14 + $0x48] sm:$0xff] }
0x103f   :  { %4150 = vmatpush1.bf16.msra.mxu0 %v5365_v32  ;;  %v4249_v32 = vpack.c.bf16 %v2869_v25, %v2865_v13  ;;  %v4265_v25 = vpack.c.bf16 %v2901_v59, %v2897_v54  ;;  %v2938_v54 = vld [vmem:[#allocation14 + $0x258] sm:$0xff] }
0x1040   :  { %4152 = vmatprep.subr.bf16.mxu0 %v5318_v34  ;;  %v2868_v34 = vld [vmem:[#allocation14 + $0x28] sm:$0xff] }
0x10f1   :  { %v2076_v42 = vpop.f32.mrb[20].mxu1 }
0x10f2   :  { %v3714_v43 = vpop.f32.mrb[21].mxu1  ;;  %2145 = vmatmul.mubr.f32.vlgmr.msra.gmra.mrb[22].mxu1 %v2076_v42  ;;  %v2902_v42 = vld [vmem:[#allocation14 + $0x138] sm:$0xff] }
0x10f3   :  { %4090 = vmatpush1.bf16.msra.mxu1 %v5370_v41  ;;  %2215 = vmatprep.mubr.f32.mxu1 %v4765_v18  ;;  %v4197_v43 = vpack.c.bf16 %v2891_v35, %v2887_v60  ;;  %v2928_v60 = vld [vmem:[#allocation14 + $0x208] sm:$0xff] }
0x10f4   :  { %4092 = vmatprep.subr.bf16.mxu1 %v5373_v45  ;;  %v2932_v35 = vld [vmem:[#allocation14 + $0x228] sm:$0xff] }
0x10f5   :  { %v2587_v48 = vpop.f32.mrb[32].mxu0 }
0x10f6   :  { %v3734_v49 = vpop.f32.mrb[33].mxu0  ;;  %2656 = vmatmul.mubr.f32.vlgmr.msra.gmra.mrb[34].mxu0 %v2587_v48  ;;  %v4261_v48 = vpack.c.bf16 %v2893_v7, %v2889_v57  ;;  %v2934_v57 = vld [vmem:[#allocation14 + $0x238] sm:$0xff]  ;;  %v4213_v7 = vpack.c.bf16 %v2923_v33, %v2919_v31  ;;  %v2944_v33 = vld [vmem:[#allocation14 + $0x288] sm:$0xff] }
0x10f7   :  { %4094 = vmatpush1.bf16.msra.mxu1 %v5377_v52  ;;  %4154 = vmatpush1.bf16.msra.mxu0 %v5370_v41  ;;  %v2876_v41 = vld [vmem:[#allocation14 + $0x68] sm:$0xff]  ;;  %v4199_v49 = vpack.c.bf16 %v2900_v20, %v2896_v38  ;;  %v4215_v20 = vpack.c.bf16 %v2932_v35, %v2928_v60  ;;  %v2950_v60 = vld [vmem:[#allocation14 + $0x2b8] sm:$0xff]  ;;  %v2943_v35 = vld [vmem:[#allocation14 + $0x280] sm:$0xff] }
0x10f8   :  { %4096 = vmatprep.subr.bf16.mxu1 %v5381_v53  ;;  %4156 = vmatprep.subr.bf16.mxu0 %v5373_v45  ;;  %v2874_v45 = vld [vmem:[#allocation14 + $0x58] sm:$0xff] }
0x10f9   :  { %2726 = vmatprep.mubr.f32.mxu0 %v4765_v18  ;;  %v2864_v18 = vld [vmem:[#allocation14 + $0x8] sm:$0xff] }
0x10fa   :  { %v4183_v55 = vpack.c.bf16 %v2868_v34, %v2864_v18  ;;  %v2895_v18 = vld [vmem:[#allocation14 + $0x100] sm:$0xff] }
0x10fb   :  { %4098 = vmatpush1.bf16.msra.mxu1 %v5384_v29  ;;  %4158 = vmatpush1.bf16.msra.mxu0 %v5377_v52  ;;  %v2878_v52 = vld [vmem:[#allocation14 + $0x78] sm:$0xff]  ;;  %v2899_v34 = vld [vmem:[#allocation14 + $0x120] sm:$0xff] }
0x10fc   :  { %4100 = vmatprep.subr.bf16.mxu1 %v5387_v62  ;;  %4160 = vmatprep.subr.bf16.mxu0 %v5381_v53  ;;  %v4187_v53 = vpack.c.bf16 %v2876_v41, %v2872_v26  ;;  %v4201_v13 = vpack.c.bf16 %v2899_v34, %v2895_v18  ;;  %v4203_v26 = vpack.c.bf16 %v2908_v2, %v2904_v61  ;;  %v2907_v41 = vld [vmem:[#allocation14 + $0x160] sm:$0xff]  ;;  %v2936_v18 = vld [vmem:[#allocation14 + $0x248] sm:$0xff] }
0x10fd   :  { %v2940_v34 = vld [vmem:[#allocation14 + $0x268] sm:$0xff] }
0x10fe   :  { %v4219_v2 = vpack.c.bf16 %v2940_v34, %v2936_v18  ;;  %v2958_v18 = vld [vmem:[#allocation14 + $0x2f8] sm:$0xff]  ;;  %v2951_v34 = vld [vmem:[#allocation14 + $0x2c0] sm:$0xff] }
0x10ff   :  { %4102 = vmatpush1.bf16.msra.mxu1 %v5390_v5  ;;  %4162 = vmatpush1.bf16.msra.mxu0 %v5384_v29  ;;  %v4251_v29 = vpack.c.bf16 %v2878_v52, %v2874_v45  ;;  %v2905_v45 = vld [vmem:[#allocation14 + $0x150] sm:$0xff] }
0x1100   :  { %4104 = vmatprep.subr.bf16.mxu1 %v5393_v6  ;;  %4164 = vmatprep.subr.bf16.mxu0 %v5387_v62  ;;  %v2871_v62 = vld [vmem:[#allocation14 + $0x40] sm:$0xff] }
0x1103   :  { %4106 = vmatpush1.bf16.msra.mxu1 %v5396_v23  ;;  %4166 = vmatpush1.bf16.msra.mxu0 %v5390_v5  ;;  %v2875_v5 = vld [vmem:[#allocation14 + $0x60] sm:$0xff] }
0x1104   :  { %4108 = vmatprep.subr.bf16.mxu1 %v5399_v27  ;;  %4168 = vmatprep.subr.bf16.mxu0 %v5393_v6  ;;  %v2873_v6 = vld [vmem:[#allocation14 + $0x50] sm:$0xff] }
0x1107   :  { %4110 = vmatpush1.bf16.msra.mxu1 %v5402_v37  ;;  %4170 = vmatpush1.bf16.msra.mxu0 %v5396_v23  ;;  %v4189_v23 = vpack.c.bf16 %v2875_v5, %v2871_v62  ;;  %v2916_v62 = vld [vmem:[#allocation14 + $0x1a8] sm:$0xff]  ;;  %v2914_v5 = vld [vmem:[#allocation14 + $0x198] sm:$0xff] }
0x1108   :  { %4112 = vmatprep.subr.bf16.mxu1 %v5405_v39  ;;  %4172 = vmatprep.subr.bf16.mxu0 %v5399_v27  ;;  %v2877_v27 = vld [vmem:[#allocation14 + $0x70] sm:$0xff] }
0x110b   :  { %4114 = vmatpush1.bf16.msra.mxu1 %v5408_v50  ;;  %4174 = vmatpush1.bf16.msra.mxu0 %v5402_v37  ;;  %v2880_v37 = vld [vmem:[#allocation14 + $0x88] sm:$0xff] }
0x110c   :  { %4116 = vmatprep.subr.bf16.mxu1 %v5411_v51  ;;  %4176 = vmatprep.subr.bf16.mxu0 %v5405_v39  ;;  %v2884_v39 = vld [vmem:[#allocation14 + $0xa8] sm:$0xff] }
0x110f   :  { %4118 = vmatpush1.bf16.msra.mxu1 %v5414_v58  ;;  %4178 = vmatpush1.bf16.msra.mxu0 %v5408_v50  ;;  %v4253_v50 = vpack.c.bf16 %v2877_v27, %v2873_v6  ;;  %v2918_v6 = vld [vmem:[#allocation14 + $0x1b8] sm:$0xff] }
0x1110   :  { %4180 = vmatprep.subr.bf16.mxu0 %v5411_v51  ;;  %4184 = vmatprep.subr.bf16.mxu1 %v4183_v55  ;;  %v4191_v51 = vpack.c.bf16 %v2884_v39, %v2880_v37  ;;  %v4263_v55 = vpack.c.bf16 %v2902_v42, %v2898_v30  ;;  %v2911_v39 = vld [vmem:[#allocation14 + $0x180] sm:$0xff] }
0x1111   :  { %v2927_v30 = vld [vmem:[#allocation14 + $0x200] sm:$0xff] }
0x1112   :  { %2216 = vmatmul.mubr.f32.vlgmr.msra.gmra.mrb[22].mxu1 %v5522_v19  ;;  %v2886_v19 = vld [vmem:[#allocation14 + $0xb8] sm:$0xff]  ;;  %v2931_v42 = vld [vmem:[#allocation14 + $0x220] sm:$0xff] }
0x1113   :  { %4182 = vmatpush1.bf16.msra.mxu0 %v5414_v58  ;;  %4186 = vmatpush1.bf16.msra.mxu1 %v4185_v10  ;;  %v2882_v58 = vld [vmem:[#allocation14 + $0x98] sm:$0xff]  ;;  %v4217_v59 = vpack.c.bf16 %v2931_v42, %v2927_v30  ;;  %v2952_v42 = vld [vmem:[#allocation14 + $0x2c8] sm:$0xff] }
0x1114   :  { %4248 = vmatprep.subr.bf16.mxu0 %v4247_v3  ;;  %4188 = vmatprep.subr.bf16.mxu1 %v4187_v53  ;;  %v4255_v28 = vpack.c.bf16 %v2886_v19, %v2882_v58  ;;  %v2906_v3 = vld [vmem:[#allocation14 + $0x158] sm:$0xff]  ;;  %v2909_v53 = vld [vmem:[#allocation14 + $0x170] sm:$0xff]  ;;  %v4271_v58 = vpack.c.bf16 %v2918_v6, %v2914_v5 }
0x1115   :  { %v2910_v10 = vld [vmem:[#allocation14 + $0x178] sm:$0xff]  ;;  %v4269_v27 = vpack.c.bf16 %v2909_v53, %v2905_v45  ;;  %v2917_v19 = vld [vmem:[#allocation14 + $0x1b0] sm:$0xff] }
0x1116   :  { %2727 = vmatmul.mubr.f32.vlgmr.msra.gmra.mrb[34].mxu0 %v5524_v12  ;;  %v2879_v12 = vld [vmem:[#allocation14 + $0x80] sm:$0xff]  ;;  %v4267_v52 = vpack.c.bf16 %v2910_v10, %v2906_v3 }
0x1117   :  { %4250 = vmatpush1.bf16.msra.mxu0 %v4249_v32  ;;  %4190 = vmatpush1.bf16.msra.mxu1 %v4189_v23  ;;  %v4193_v63 = vpack.c.bf16 %v2883_v0, %v2879_v12  ;;  %v2903_v32 = vld [vmem:[#allocation14 + $0x140] sm:$0xff]  ;;  %v2920_v12 = vld [vmem:[#allocation14 + $0x1c8] sm:$0xff]  ;;  %v2922_v0 = vld [vmem:[#allocation14 + $0x1d8] sm:$0xff] }
0x1118   :  { %4252 = vmatprep.subr.bf16.mxu0 %v4251_v29  ;;  %4192 = vmatprep.subr.bf16.mxu1 %v4191_v51  ;;  %v2912_v29 = vld [vmem:[#allocation14 + $0x188] sm:$0xff]  ;;  %v4205_v23 = vpack.c.bf16 %v2907_v41, %v2903_v32  ;;  %v2913_v51 = vld [vmem:[#allocation14 + $0x190] sm:$0xff]  ;;  %v2935_v3 = vld [vmem:[#allocation14 + $0x240] sm:$0xff] }
0x1119   :  { %v4207_v37 = vpack.c.bf16 %v2916_v62, %v2912_v29  ;;  %v2939_v10 = vld [vmem:[#allocation14 + $0x260] sm:$0xff] }
0x111a   :  { %v4221_v32 = vpack.c.bf16 %v2939_v10, %v2935_v3  ;;  %v2960_v10 = vld [vmem:[#allocation14 + $0x308] sm:$0xff] }
0x111b   :  { %4254 = vmatpush1.bf16.msra.mxu0 %v4253_v50  ;;  %4194 = vmatpush1.bf16.msra.mxu1 %v4193_v63  ;;  %v2915_v50 = vld [vmem:[#allocation14 + $0x1a0] sm:$0xff]  ;;  %v4273_v63 = vpack.c.bf16 %v2917_v19, %v2913_v51 }
0x111c   :  { %4256 = vmatprep.subr.bf16.mxu0 %v4255_v28  ;;  %4196 = vmatprep.subr.bf16.mxu1 %v4195_v56  ;;  %v2924_v28 = vld [vmem:[#allocation14 + $0x1e8] sm:$0xff]  ;;  %v4209_v4 = vpack.c.bf16 %v2915_v50, %v2911_v39  ;;  %v4275_v56 = vpack.c.bf16 %v2926_v1, %v2922_v0 }
0x111d   :  { %v4211_v16 = vpack.c.bf16 %v2924_v28, %v2920_v12 }
0x111f   :  { %4258 = vmatpush1.bf16.msra.mxu0 %v4257_v36  ;;  %4198 = vmatpush1.bf16.msra.mxu1 %v4197_v43  ;;  %v2921_v36 = vld [vmem:[#allocation14 + $0x1d0] sm:$0xff] }
0x1120   :  { %4260 = vmatprep.subr.bf16.mxu0 %v4259_v47  ;;  %4200 = vmatprep.subr.bf16.mxu1 %v4199_v49  ;;  %v2930_v47 = vld [vmem:[#allocation14 + $0x218] sm:$0xff]  ;;  %v4277_v38 = vpack.c.bf16 %v2925_v46, %v2921_v36  ;;  %v2929_v43 = vld [vmem:[#allocation14 + $0x210] sm:$0xff]  ;;  %v2948_v36 = vld [vmem:[#allocation14 + $0x2a8] sm:$0xff] }
0x1121   :  { %v2933_v49 = vld [vmem:[#allocation14 + $0x230] sm:$0xff]  ;;  %v4223_v46 = vpack.c.bf16 %v2948_v36, %v2944_v33  ;;  %v2979_v33 = vld [vmem:[#allocation14 + $0x3a0] sm:$0xff] }
0x1122   :  { %v4281_v61 = vpack.c.bf16 %v2933_v49, %v2929_v43  ;;  %v2956_v43 = vld [vmem:[#allocation14 + $0x2e8] sm:$0xff]  ;;  %v2977_v36 = vld [vmem:[#allocation14 + $0x390] sm:$0xff] }
0x1123   :  { %4262 = vmatpush1.bf16.msra.mxu0 %v4261_v48  ;;  %4202 = vmatpush1.bf16.msra.mxu1 %v4201_v13  ;;  %v4279_v48 = vpack.c.bf16 %v2934_v57, %v2930_v47  ;;  %v2947_v47 = vld [vmem:[#allocation14 + $0x2a0] sm:$0xff]  ;;  %v4227_v49 = vpack.c.bf16 %v2956_v43, %v2952_v42  ;;  %v2985_v43 = vld [vmem:[#allocation14 + $0x3d0] sm:$0xff] }
0x1124   :  { %4264 = vmatprep.subr.bf16.mxu0 %v4263_v55  ;;  %4204 = vmatprep.subr.bf16.mxu1 %v4203_v26  ;;  %v2942_v55 = vld [vmem:[#allocation14 + $0x278] sm:$0xff]  ;;  %v2941_v26 = vld [vmem:[#allocation14 + $0x270] sm:$0xff]  ;;  %v2987_v42 = vld [vmem:[#allocation14 + $0x3e0] sm:$0xff] }
0x1125   :  { %v4283_v13 = vpack.c.bf16 %v2942_v55, %v2938_v54  ;;  %v2955_v54 = vld [vmem:[#allocation14 + $0x2e0] sm:$0xff] }
0x1127   :  { %4266 = vmatpush1.bf16.msra.mxu0 %v4265_v25  ;;  %4206 = vmatpush1.bf16.msra.mxu1 %v4205_v23  ;;  %v2937_v25 = vld [vmem:[#allocation14 + $0x250] sm:$0xff] }
0x1128   :  { %4268 = vmatprep.subr.bf16.mxu0 %v4267_v52  ;;  %4208 = vmatprep.subr.bf16.mxu1 %v4207_v37  ;;  %v4285_v41 = vpack.c.bf16 %v2941_v26, %v2937_v25  ;;  %v2962_v25 = vld [vmem:[#allocation14 + $0x318] sm:$0xff] }
0x112b   :  { %4270 = vmatpush1.bf16.msra.mxu0 %v4269_v27  ;;  %4210 = vmatpush1.bf16.msra.mxu1 %v4209_v4  ;;  %v2777_v27 = vpop.xlane.xlu0 %2776 }
0x112c   :  { %4272 = vmatprep.subr.bf16.mxu0 %v4271_v58  ;;  %4212 = vmatprep.subr.bf16.mxu1 %v4211_v16  ;;  %v2788_v37 = vmul.f32 0.00390625, %v2777_v27  ;;  %v2970_v27 = vld [vmem:[#allocation14 + $0x358] sm:$0xff] }
0x112e   :  { %v5620_v51 = vsub.f32 %v5540_v40, %v2788_v37  ;;  %v5625_v0 = vsub.f32 %v5543_v44, %v2788_v37 }
0x112f   :  { %4274 = vmatpush1.bf16.msra.mxu0 %v4273_v63  ;;  %4214 = vmatpush1.bf16.msra.mxu1 %v4213_v7  ;;  %v4225_v7 = vpack.c.bf16 %v2947_v47, %v2943_v35  ;;  %v2988_v35 = vld [vmem:[#allocation14 + $0x3e8] sm:$0xff] }
0x1130   :  { %4276 = vmatprep.subr.bf16.mxu0 %v4275_v56  ;;  %4216 = vmatprep.subr.bf16.mxu1 %v4215_v20  ;;  %v2946_v56 = vld [vmem:[#allocation14 + $0x298] sm:$0xff]  ;;  %v2949_v20 = vld [vmem:[#allocation14 + $0x2b0] sm:$0xff] }
0x1131   :  { %v4287_v57 = vpack.c.bf16 %v2950_v60, %v2946_v56  ;;  %v2984_v60 = vld [vmem:[#allocation14 + $0x3c8] sm:$0xff] }
0x1133   :  { %4278 = vmatpush1.bf16.msra.mxu0 %v4277_v38  ;;  %4218 = vmatpush1.bf16.msra.mxu1 %v4217_v59  ;;  %v2945_v38 = vld [vmem:[#allocation14 + $0x290] sm:$0xff]  ;;  %v4229_v59 = vpack.c.bf16 %v2955_v54, %v2951_v34 }
0x1134   :  { %4280 = vmatprep.subr.bf16.mxu0 %v4279_v48  ;;  %4220 = vmatprep.subr.bf16.mxu1 %v4219_v2  ;;  %v4289_v30 = vpack.c.bf16 %v2949_v20, %v2945_v38  ;;  %v2954_v48 = vld [vmem:[#allocation14 + $0x2d8] sm:$0xff]  ;;  %v2957_v2 = vld [vmem:[#allocation14 + $0x2f0] sm:$0xff]  ;;  %v2983_v20 = vld [vmem:[#allocation14 + $0x3c0] sm:$0xff] }
0x1135   :  { %v4291_v55 = vpack.c.bf16 %v2958_v18, %v2954_v48  ;;  %v2990_v38 = vld [vmem:[#allocation14 + $0x3f8] sm:$0xff]  ;;  %v2989_v48 = vld [vmem:[#allocation14 + $0x3f0] sm:$0xff] }
0x1136   :  { %v4309_v18 = vpack.c.bf16 %v2989_v48, %v2985_v43 }
0x1137   :  { %4282 = vmatpush1.bf16.msra.mxu0 %v4281_v61  ;;  %4222 = vmatpush1.bf16.msra.mxu1 %v4221_v32  ;;  %v2953_v61 = vld [vmem:[#allocation14 + $0x2d0] sm:$0xff]  ;;  %v2966_v32 = vld [vmem:[#allocation14 + $0x338] sm:$0xff] }
0x1138   :  { %4284 = vmatprep.subr.bf16.mxu0 %v4283_v13  ;;  %4224 = vmatprep.subr.bf16.mxu1 %v4223_v46  ;;  %v4293_v3 = vpack.c.bf16 %v2957_v2, %v2953_v61  ;;  %v2964_v13 = vld [vmem:[#allocation14 + $0x328] sm:$0xff]  ;;  %v2981_v46 = vld [vmem:[#allocation14 + $0x3b0] sm:$0xff] }
0x1139   :  { %v4231_v26 = vpack.c.bf16 %v2964_v13, %v2960_v10  ;;  %v4305_v47 = vpack.c.bf16 %v2981_v46, %v2977_v36  ;;  %v3199_v46 = vld [vmem:[#allocation16 + $0x40] sm:$0xff] }
0x113b   :  { %4286 = vmatpush1.bf16.msra.mxu0 %v4285_v41  ;;  %4226 = vmatpush1.bf16.msra.mxu1 %v4225_v7  ;;  %v2959_v41 = vld [vmem:[#allocation14 + $0x300] sm:$0xff]  ;;  %v2986_v7 = vld [vmem:[#allocation14 + $0x3d8] sm:$0xff] }
0x113c   :  { %4288 = vmatprep.subr.bf16.mxu0 %v4287_v57  ;;  %4228 = vmatprep.subr.bf16.mxu1 %v4227_v49  ;;  %v4243_v57 = vpack.c.bf16 %v2988_v35, %v2984_v60  ;;  %v4245_v49 = vpack.c.bf16 %v2987_v42, %v2983_v20  ;;  %v3201_v60 = vld [vmem:[#allocation16 + $0x50] sm:$0xff]  ;;  %v3204_v35 = vld [vmem:[#allocation16 + $0x68] sm:$0xff]  ;;  %v3210_v42 = vld [vmem:[#allocation16 + $0x98] sm:$0xff] }
0x113d   :  { %v3205_v20 = vld [vmem:[#allocation16 + $0x70] sm:$0xff] }
0x113f   :  { %4290 = vmatpush1.bf16.msra.mxu0 %v4289_v30  ;;  %4230 = vmatpush1.bf16.msra.mxu1 %v4229_v59  ;;  %v4307_v30 = vpack.c.bf16 %v2990_v38, %v2986_v7  ;;  %v3203_v38 = vld [vmem:[#allocation16 + $0x60] sm:$0xff] }
0x1140   :  { %4292 = vmatprep.subr.bf16.mxu0 %v4291_v55  ;;  %4232 = vmatprep.subr.bf16.mxu1 %v4231_v26  ;;  %v4325_v43 = vpack.c.bf16 %v3205_v20, %v3203_v38  ;;  %v3242_v38 = vld [vmem:[#allocation16 + $0x198] sm:$0xff] }
0x1143   :  { %4294 = vmatpush1.bf16.msra.mxu0 %v4293_v3 }
0x11e5   :  { %v2217_v45 = vpop.f32.mrb[22].mxu1 }
0x11e6   :  { %v2224_v52 = vrot.slane %v2217_v45, 6  ;;  %v2219_v53 = vpop.f32.mrb[23].mxu1  ;;  %v2963_v45 = vld [vmem:[#allocation14 + $0x320] sm:$0xff] }
0x11e7   :  { %v2225_v29 = vrot.slane %v2219_v53, 6  ;;  %v4233_v53 = vpack.c.bf16 %v2963_v45, %v2959_v41 }
0x11e8   :  { %2228 = vst [vmem:[#allocation5 + $0x10] sm:$0x7c] %v2224_v52  ;;  %v4295_v52 = vpack.c.bf16 %v2966_v32, %v2962_v25 }
0x11e9   :  { %2229 = vst [vmem:[#allocation5 + $0x18] sm:$0x7c] %v2225_v29  ;;  %v2728_v62 = vpop.f32.mrb[34].mxu0  ;;  %v2961_v29 = vld [vmem:[#allocation14 + $0x310] sm:$0xff]  ;;  %4234 = vmatpush1.bf16.msra.mxu1 %v4233_v53  ;;  %v2773_v53 = vld [vmem:[#allocation11] sm:$0x3] }
0x11ea   :  { %v2735_v5 = vrot.slane %v2728_v62, 1  ;;  %v2730_v6 = vpop.f32.mrb[35].mxu0  ;;  %v2965_v62 = vld [vmem:[#allocation14 + $0x330] sm:$0xff]  ;;  %4296 = vmatprep.subr.bf16.mxu0 %v4295_v52 }
0x11eb   :  { %v2736_v23 = vrot.slane %v2730_v6, 1  ;;  %v2968_v6 = vld [vmem:[#allocation14 + $0x348] sm:$0xff] }
0x11ec   :  { %2739 = vst [vmem:[#allocation5 + $0x20] ss:$-12 sps:$4 sm:$0x8f] %v2735_v5   ;;  %v4297_v5 = vpack.c.bf16 %v2965_v62, %v2961_v29  ;;  %v2774_v29 = vld [vmem:[#allocation13] sm:$0x3]  ;;  %v5674_v62 = vrot.slane %v2773_v53, %v5253_v22 }
0x11ed   :  { %2740 = vst [vmem:[#allocation5 + $0x28] ss:$-12 sps:$4 sm:$0x8f] %v2736_v23   ;;  %v2972_v23 = vld [vmem:[#allocation14 + $0x368] sm:$0xff] }
0x11ee   :  { %v4235_v37 = vpack.c.bf16 %v2972_v23, %v2968_v6  ;;  %4298 = vmatpush1.bf16.msra.mxu0 %v4297_v5  ;;  %v5677_v5 = vrot.slane %v2773_v53, %v5259_v24 }
0x11f0   :  { %4236 = vmatprep.subr.bf16.mxu1 %v4235_v37  ;;  %v5684_v37 = vrot.slane %v2774_v29, %v5259_v24 }
0x11f3   :  { %v2745_v39 = vld [vmem:[#allocation5 + $0x10] sm:$0xff]  ;;  %v2747_v50 = vld [vmem:[#allocation5 + $0x20] sm:$0xf] }
0x11f4   :  { %v2746_v58 = vld [vmem:[#allocation5 + $0x18] sm:$0xff]  ;;  %v2763_v19 = vadd.f32 %v5532_v9, %v2745_v39  ;;  %v2748_v12 = vld [vmem:[#allocation5 + $0x28] sm:$0xf]  ;;  %v2765_v28 = vadd.f32 %v5532_v9, %v2747_v50  ;;  %v2974_v39 = vld [vmem:[#allocation14 + $0x378] sm:$0xff] }
0x11f5   :  { %v2764_v1 = vadd.f32 %v5535_v15, %v2746_v58  ;;  %v2766_v4 = vadd.f32 %v5535_v15, %v2748_v12  ;;  %v2967_v50 = vld [vmem:[#allocation14 + $0x340] sm:$0xff] }
0x11f6   :  { %v5630_v63 = vadd.f32 %v2763_v19, %v5219_v11  ;;  %v5633_v40 = vadd.f32 %v2765_v28, %v5240_v17  ;;  %v2797_v11 = vmul.f32 %v5620_v51, %v5620_v51  ;;  %v2798_v17 = vmul.f32 %v5625_v0, %v5625_v0  ;;  %v2971_v58 = vld [vmem:[#allocation14 + $0x360] sm:$0xff]  ;;  %v2969_v28 = vld [vmem:[#allocation14 + $0x350] sm:$0xff] }
0x11f7   :  { %v5636_v16 = vadd.f32 %v2764_v1, %v5210_v8  ;;  %v5639_v31 = vadd.f32 %v2766_v4, %v5232_v14  ;;  %v4299_v19 = vpack.c.bf16 %v2974_v39, %v2970_v27  ;;  %v4237_v12 = vpack.c.bf16 %v2971_v58, %v2967_v50  ;;  %v2973_v1 = vld [vmem:[#allocation14 + $0x370] sm:$0xff]  ;;  %v2976_v4 = vld [vmem:[#allocation14 + $0x388] sm:$0xff] }
0x11f8   :  { %v2782_v9 = vsel %vm2781_vm6, %v5633_v40, 0.0  ;;  %v2803_v14 = vadd.f32 %v2798_v17, %v2797_v11  ;;  %v2982_v11 = vld [vmem:[#allocation14 + $0x3b8] sm:$0xff]  ;;  %v5681_v27 = vrot.slane %v2774_v29, %v5253_v22  ;;  %v3219_v29 = vld [vmem:[#allocation16 + $0xe0] sm:$0xff] }
0x11f9   :  { %v2778_v44 = vadd.f32 %v5636_v16, %v5630_v63  ;;  %v2783_v15 = vsel %vm2781_vm6, %v5639_v31, 0.0  ;;  %4300 = vmatprep.subr.bf16.mxu0 %v4299_v19  ;;  %4238 = vmatpush1.bf16.msra.mxu1 %v4237_v12 }
0x11fa   :  { %v2784_v8 = vadd.f32 %v2783_v15, %v2782_v9  ;;  %v4301_v9 = vpack.c.bf16 %v2973_v1, %v2969_v28  ;;  %v2978_v15 = vld [vmem:[#allocation14 + $0x398] sm:$0xff]  ;;  %v3191_v28 = vld [vmem:[#allocation16] sm:$0xff] }
0x11fb   :  { %2779 = vadd.xlane.f32.xlu1 %v2778_v44  ;;  %v2980_v44 = vld [vmem:[#allocation14 + $0x3a8] sm:$0xff] }
0x11fc   :  { %2785 = vadd.xlane.f32.xlu0 %v2784_v8  ;;  %v4239_v17 = vpack.c.bf16 %v2980_v44, %v2976_v4  ;;  %v4303_v8 = vpack.c.bf16 %v2982_v11, %v2978_v15  ;;  %4302 = vmatpush1.bf16.msra.mxu0 %v4301_v9  ;;  %v3193_v4 = vld [vmem:[#allocation16 + $0x10] sm:$0xff]  ;;  %v3196_v9 = vld [vmem:[#allocation16 + $0x28] sm:$0xff]  ;;  %v3198_v44 = vld [vmem:[#allocation16 + $0x38] sm:$0xff] }
0x11fd   :  { %v4313_v15 = vpack.c.bf16 %v3193_v4, %v3191_v28  ;;  %v4315_v11 = vpack.c.bf16 %v3198_v44, %v3196_v9  ;;  %v3228_v28 = vld [vmem:[#allocation16 + $0x128] sm:$0xff]  ;;  %v3227_v44 = vld [vmem:[#allocation16 + $0x120] sm:$0xff] }
0x11fe   :  { %4240 = vmatprep.subr.bf16.mxu1 %v4239_v17  ;;  %4304 = vmatprep.subr.bf16.mxu0 %v4303_v8  ;;  %v3195_v17 = vld [vmem:[#allocation16 + $0x20] sm:$0xff]  ;;  %v3197_v8 = vld [vmem:[#allocation16 + $0x30] sm:$0xff] }
0x11ff   :  { %2804 = vadd.xlane.f32.xlu1 %v2803_v14  ;;  %v2975_v14 = vld [vmem:[#allocation14 + $0x380] sm:$0xff]  ;;  %v4317_v36 = vpack.c.bf16 %v3197_v8, %v3195_v17  ;;  %v3234_v17 = vld [vmem:[#allocation16 + $0x158] sm:$0xff] }
0x1200   :  { %v4241_v56 = vpack.c.bf16 %v2979_v33, %v2975_v14  ;;  %4306 = vmatpush1.bf16.msra.mxu0 %v4305_v47  ;;  %v3200_v14 = vld [vmem:[#allocation16 + $0x48] sm:$0xff]  ;;  %v3202_v33 = vld [vmem:[#allocation16 + $0x58] sm:$0xff] }
0x1201   :  { %4308 = vmatprep.subr.bf16.mxu0 %v4307_v30  ;;  %v3206_v47 = vld [vmem:[#allocation16 + $0x78] sm:$0xff]  ;;  %v3208_v30 = vld [vmem:[#allocation16 + $0x88] sm:$0xff] }
0x1202   :  { %4242 = vmatpush1.bf16.msra.mxu1 %v4241_v56  ;;  %v4319_v56 = vpack.c.bf16 %v3202_v33, %v3200_v14  ;;  %v4323_v7 = vpack.c.bf16 %v3206_v47, %v3204_v35  ;;  %v4327_v48 = vpack.c.bf16 %v3210_v42, %v3208_v30  ;;  %v3231_v33 = vld [vmem:[#allocation16 + $0x140] sm:$0xff] }
0x1203   :  { %4244 = vmatprep.subr.bf16.mxu1 %v4243_v57  ;;  %v4321_v57 = vpack.c.bf16 %v3201_v60, %v3199_v46  ;;  %v3238_v46 = vld [vmem:[#allocation16 + $0x178] sm:$0xff]  ;;  %v3235_v47 = vld [vmem:[#allocation16 + $0x160] sm:$0xff] }
0x1204   :  { %4310 = vmatpush1.bf16.msra.mxu0 %v4309_v18  ;;  %v3209_v18 = vld [vmem:[#allocation16 + $0x90] sm:$0xff]  ;;  %v3239_v42 = vld [vmem:[#allocation16 + $0x180] sm:$0xff] }
0x1206   :  { %4246 = vmatpush1.bf16.msra.mxu1 %v4245_v49  ;;  %v3207_v49 = vld [vmem:[#allocation16 + $0x80] sm:$0xff] }
0x1288   :  { %v2780_v34 = vpop.xlane.xlu1 %2779 }
0x1289   :  { %v2789_v54 = vmul.f32 0.00390625, %v2780_v34  ;;  %v2786_v55 = vpop.xlane.xlu0 %2785  ;;  %v3212_v34 = vld [vmem:[#allocation16 + $0xa8] sm:$0xff] }
0x128a   :  { %v2790_v59 = vmul.f32 0.00390625, %v2786_v55  ;;  %v4329_v55 = vpack.c.bf16 %v3209_v18, %v3207_v49  ;;  %v3246_v49 = vld [vmem:[#allocation16 + $0x1b8] sm:$0xff] }
0x128b   :  { %v5652_v61 = vsub.f32 %v5630_v63, %v2789_v54  ;;  %v5655_v2 = vsub.f32 %v5636_v16, %v2789_v54  ;;  %v3214_v54 = vld [vmem:[#allocation16 + $0xb8] sm:$0xff] }
0x128c   :  { %v5658_v3 = vsub.f32 %v5633_v40, %v2790_v59  ;;  %v5661_v10 = vsub.f32 %v5639_v31, %v2790_v59  ;;  %v2805_v13 = vpop.xlane.xlu1 %2804  ;;  %v4331_v59 = vpack.c.bf16 %v3214_v54, %v3212_v34  ;;  %v3243_v54 = vld [vmem:[#allocation16 + $0x1a0] sm:$0xff] }
0x128d   :  { %v2814_v25 = vmul.f32 0.00390625, %v2805_v13  ;;  %v2799_v26 = vmul.f32 %v5652_v61, %v5652_v61  ;;  %v2800_v32 = vmul.f32 %v5655_v2, %v5655_v2  ;;  %v3211_v13 = vld [vmem:[#allocation16 + $0xa0] sm:$0xff] }
0x128e   :  { %v2801_v63 = vmul.f32 %v5658_v3, %v5658_v3  ;;  %v2802_v16 = vmul.f32 %v5661_v10, %v5661_v10 }
0x128f   :  { %v2817_v41 = vadd.f32 1e-05, %v2814_v25  ;;  %v2806_v40 = vadd.f32 %v2800_v32, %v2799_v26  ;;  %v3213_v25 = vld [vmem:[#allocation16 + $0xb0] sm:$0xff]  ;;  %v3216_v26 = vld [vmem:[#allocation16 + $0xc8] sm:$0xff]  ;;  %v3218_v32 = vld [vmem:[#allocation16 + $0xd8] sm:$0xff] }
0x1290   :  { %v2809_v45 = vsel %vm2781_vm6, %v2801_v63, 0.0  ;;  %v2810_v31 = vsel %vm2781_vm6, %v2802_v16, 0.0  ;;  %v4333_v63 = vpack.c.bf16 %v3213_v25, %v3211_v13  ;;  %v4335_v16 = vpack.c.bf16 %v3218_v32, %v3216_v26  ;;  %v3250_v13 = vld [vmem:[#allocation16 + $0x1d8] sm:$0xff]  ;;  %v3247_v32 = vld [vmem:[#allocation16 + $0x1c0] sm:$0xff] }
0x1291   :  { %4507 = vrsqrt.f32 %v2817_v41  ;;  %2807 = vadd.xlane.f32.xlu0 %v2806_v40  ;;  %v2811_v52 = vadd.f32 %v2810_v31, %v2809_v45  ;;  %v3215_v41 = vld [vmem:[#allocation16 + $0xc0] sm:$0xff]  ;;  %v3217_v40 = vld [vmem:[#allocation16 + $0xd0] sm:$0xff]  ;;  %v3220_v45 = vld [vmem:[#allocation16 + $0xe8] sm:$0xff] }
0x1292   :  { %v3222_v31 = vld [vmem:[#allocation16 + $0xf8] sm:$0xff] }
0x1293   :  { %2812 = vadd.xlane.f32.xlu1 %v2811_v52  ;;  %v4337_v52 = vpack.c.bf16 %v3217_v40, %v3215_v41  ;;  %v4339_v53 = vpack.c.bf16 %v3222_v31, %v3220_v45  ;;  %v3252_v41 = vld [vmem:[#allocation16 + $0x1e8] sm:$0xff]  ;;  %v3254_v40 = vld [vmem:[#allocation16 + $0x1f8] sm:$0xff]  ;;  %v3251_v31 = vld [vmem:[#allocation16 + $0x1e0] sm:$0xff] }
0x1294   :  { %v4371_v45 = vpack.c.bf16 %v3254_v40, %v3252_v41  ;;  %v3268_v41 = vld [vmem:[#allocation16 + $0x268] sm:$0xff]  ;;  %v3270_v40 = vld [vmem:[#allocation16 + $0x278] sm:$0xff] }
0x129b   :  { %v4508_v6 = vpop.eup %4507 }
0x129c   :  { %v2824_v23 = vmul.f32 %v4508_v6, %v5625_v0  ;;  %v2823_v39 = vmul.f32 %v4508_v6, %v5620_v51  ;;  %v3192_v0 = vld [vmem:[#allocation16 + $0x8] sm:$0xff]  ;;  %v3194_v51 = vld [vmem:[#allocation16 + $0x18] sm:$0xff]  ;;  %v3221_v6 = vld [vmem:[#allocation16 + $0xf0] sm:$0xff] }
0x129d   :  { %v4311_v1 = vpack.c.bf16 %v3194_v51, %v3192_v0  ;;  %v3223_v0 = vld [vmem:[#allocation16 + $0x100] sm:$0xff]  ;;  %v3225_v51 = vld [vmem:[#allocation16 + $0x110] sm:$0xff] }
0x129e   :  { %v2841_v50 = vmul.f32 %v5677_v5, %v2824_v23  ;;  %v2840_v58 = vmul.f32 %v5674_v62, %v2823_v39  ;;  %v3224_v23 = vld [vmem:[#allocation16 + $0x108] sm:$0xff]  ;;  %v3226_v39 = vld [vmem:[#allocation16 + $0x118] sm:$0xff]  ;;  %v4345_v4 = vpack.c.bf16 %v3225_v51, %v3223_v0 }
0x129f   :  { %4312 = vmatprep.subr.bf16.mxu1 %v4311_v1  ;;  %v3230_v1 = vld [vmem:[#allocation16 + $0x138] sm:$0xff] }
0x12a0   :  { %v5690_v19 = vadd.f32 %v5684_v37, %v2841_v50  ;;  %v5693_v12 = vadd.f32 %v5681_v27, %v2840_v58  ;;  %v4341_v50 = vpack.c.bf16 %v3221_v6, %v3219_v29  ;;  %v4343_v58 = vpack.c.bf16 %v3226_v39, %v3224_v23  ;;  %v3256_v29 = vld [vmem:[#allocation16 + $0x208] sm:$0xff]  ;;  %v3258_v6 = vld [vmem:[#allocation16 + $0x218] sm:$0xff] }
0x12a1   :  { %v4347_v9 = vpack.c.bf16 %v3230_v1, %v3228_v28  ;;  %v4375_v23 = vpack.c.bf16 %v3258_v6, %v3256_v29  ;;  %v3272_v29 = vld [vmem:[#allocation16 + $0x288] sm:$0xff]  ;;  %v3274_v6 = vld [vmem:[#allocation16 + $0x298] sm:$0xff] }
0x12a2   :  { %3077 = vmatprep.mubr.f32.mxu1 %v5690_v19  ;;  %3160 = vmatprep.mubr.f32.mxu0 %v5690_v19 }
0x12a3   :  { %3078 = vmatmul.mubr.f32.vlgmr.msra.gmra.mrb[24].mxu1 %v5693_v12  ;;  %3161 = vmatmul.mubr.f32.vlgmr.msra.gmra.mrb[36].mxu0 %v5693_v12 }
0x12a4   :  { %4314 = vmatpush1.bf16.msra.mxu1 %v4313_v15  ;;  %v3229_v15 = vld [vmem:[#allocation16 + $0x130] sm:$0xff] }
0x12a5   :  { %4316 = vmatprep.subr.bf16.mxu1 %v4315_v11  ;;  %v3232_v11 = vld [vmem:[#allocation16 + $0x148] sm:$0xff]  ;;  %v4349_v8 = vpack.c.bf16 %v3229_v15, %v3227_v44 }
0x12a6   :  { %v4351_v14 = vpack.c.bf16 %v3234_v17, %v3232_v11 }
0x12a8   :  { %4318 = vmatpush1.bf16.msra.mxu1 %v4317_v36  ;;  %v3233_v36 = vld [vmem:[#allocation16 + $0x150] sm:$0xff] }
0x12a9   :  { %4320 = vmatprep.subr.bf16.mxu1 %v4319_v56  ;;  %v3236_v56 = vld [vmem:[#allocation16 + $0x168] sm:$0xff]  ;;  %v4353_v60 = vpack.c.bf16 %v3233_v36, %v3231_v33 }
0x12aa   :  { %v4355_v35 = vpack.c.bf16 %v3238_v46, %v3236_v56 }
0x12ac   :  { %4322 = vmatpush1.bf16.msra.mxu1 %v4321_v57  ;;  %v3237_v57 = vld [vmem:[#allocation16 + $0x170] sm:$0xff] }
0x12ad   :  { %4324 = vmatprep.subr.bf16.mxu1 %v4323_v7  ;;  %v3240_v7 = vld [vmem:[#allocation16 + $0x188] sm:$0xff]  ;;  %v4357_v20 = vpack.c.bf16 %v3237_v57, %v3235_v47 }
0x12ae   :  { %v4359_v30 = vpack.c.bf16 %v3242_v38, %v3240_v7 }
0x12b0   :  { %4326 = vmatpush1.bf16.msra.mxu1 %v4325_v43  ;;  %v3241_v43 = vld [vmem:[#allocation16 + $0x190] sm:$0xff] }
0x12b1   :  { %4328 = vmatprep.subr.bf16.mxu1 %v4327_v48  ;;  %v3244_v48 = vld [vmem:[#allocation16 + $0x1a8] sm:$0xff]  ;;  %v4361_v18 = vpack.c.bf16 %v3241_v43, %v3239_v42 }
0x12b2   :  { %v4363_v34 = vpack.c.bf16 %v3246_v49, %v3244_v48  ;;  %v3260_v43 = vld [vmem:[#allocation16 + $0x228] sm:$0xff]  ;;  %v3262_v48 = vld [vmem:[#allocation16 + $0x238] sm:$0xff] }
0x12b4   :  { %4330 = vmatpush1.bf16.msra.mxu1 %v4329_v55  ;;  %v3245_v55 = vld [vmem:[#allocation16 + $0x1b0] sm:$0xff] }
0x12b5   :  { %4332 = vmatprep.subr.bf16.mxu1 %v4331_v59  ;;  %v3248_v59 = vld [vmem:[#allocation16 + $0x1c8] sm:$0xff]  ;;  %v4365_v25 = vpack.c.bf16 %v3245_v55, %v3243_v54  ;;  %v4379_v54 = vpack.c.bf16 %v3262_v48, %v3260_v43  ;;  %v3259_v55 = vld [vmem:[#allocation16 + $0x220] sm:$0xff]  ;;  %v3294_v48 = vld [vmem:[#allocation16 + $0x338] sm:$0xff] }
0x12b6   :  { %v4367_v26 = vpack.c.bf16 %v3250_v13, %v3248_v59  ;;  %v3261_v59 = vld [vmem:[#allocation16 + $0x230] sm:$0xff]  ;;  %v3264_v13 = vld [vmem:[#allocation16 + $0x248] sm:$0xff] }
0x12b7   :  { %v3292_v43 = vld [vmem:[#allocation16 + $0x328] sm:$0xff] }
0x12b8   :  { %4334 = vmatpush1.bf16.msra.mxu1 %v4333_v63  ;;  %v3249_v63 = vld [vmem:[#allocation16 + $0x1d0] sm:$0xff] }
0x12b9   :  { %4336 = vmatprep.subr.bf16.mxu1 %v4335_v16  ;;  %v4369_v16 = vpack.c.bf16 %v3249_v63, %v3247_v32  ;;  %v3263_v63 = vld [vmem:[#allocation16 + $0x240] sm:$0xff] }
0x12bc   :  { %4338 = vmatpush1.bf16.msra.mxu1 %v4337_v52  ;;  %v3253_v52 = vld [vmem:[#allocation16 + $0x1f0] sm:$0xff] }
0x12bd   :  { %4340 = vmatprep.subr.bf16.mxu1 %v4339_v53  ;;  %v4373_v53 = vpack.c.bf16 %v3253_v52, %v3251_v31  ;;  %v4387_v31 = vpack.c.bf16 %v3270_v40, %v3268_v41  ;;  %v3267_v52 = vld [vmem:[#allocation16 + $0x260] sm:$0xff] }
0x12c0   :  { %4342 = vmatpush1.bf16.msra.mxu1 %v4341_v50 }
0x12c1   :  { %4344 = vmatprep.subr.bf16.mxu1 %v4343_v58 }
0x12c4   :  { %4346 = vmatpush1.bf16.msra.mxu1 %v4345_v4 }
0x12c5   :  { %4348 = vmatprep.subr.bf16.mxu1 %v4347_v9 }
0x12c8   :  { %4350 = vmatpush1.bf16.msra.mxu1 %v4349_v8 }
0x12c9   :  { %4352 = vmatprep.subr.bf16.mxu1 %v4351_v14 }
0x12cc   :  { %4354 = vmatpush1.bf16.msra.mxu1 %v4353_v60 }
0x12cd   :  { %4356 = vmatprep.subr.bf16.mxu1 %v4355_v35 }
0x12d0   :  { %4358 = vmatpush1.bf16.msra.mxu1 %v4357_v20  ;;  %v3257_v20 = vld [vmem:[#allocation16 + $0x210] sm:$0xff] }
0x12d1   :  { %4360 = vmatprep.subr.bf16.mxu1 %v4359_v30 }
0x12d4   :  { %4362 = vmatpush1.bf16.msra.mxu1 %v4361_v18 }
0x12d5   :  { %4364 = vmatprep.subr.bf16.mxu1 %v4363_v34 }
0x12d8   :  { %4366 = vmatpush1.bf16.msra.mxu1 %v4365_v25  ;;  %v3266_v25 = vld [vmem:[#allocation16 + $0x258] sm:$0xff] }
0x12d9   :  { %4368 = vmatprep.subr.bf16.mxu1 %v4367_v26  ;;  %v4381_v26 = vpack.c.bf16 %v3261_v59, %v3259_v55  ;;  %v4383_v32 = vpack.c.bf16 %v3266_v25, %v3264_v13  ;;  %v3296_v55 = vld [vmem:[#allocation16 + $0x348] sm:$0xff]  ;;  %v3298_v59 = vld [vmem:[#allocation16 + $0x358] sm:$0xff] }
0x12da   :  { %v4415_v25 = vpack.c.bf16 %v3298_v59, %v3296_v55 }
0x12dc   :  { %4370 = vmatpush1.bf16.msra.mxu1 %v4369_v16  ;;  %v3265_v16 = vld [vmem:[#allocation16 + $0x250] sm:$0xff] }
0x12dd   :  { %4372 = vmatprep.subr.bf16.mxu1 %v4371_v45  ;;  %v4385_v45 = vpack.c.bf16 %v3265_v16, %v3263_v63  ;;  %v3300_v63 = vld [vmem:[#allocation16 + $0x368] sm:$0xff]  ;;  %v3302_v16 = vld [vmem:[#allocation16 + $0x378] sm:$0xff] }
0x12de   :  { %v4419_v40 = vpack.c.bf16 %v3302_v16, %v3300_v63 }
0x12e0   :  { %4374 = vmatpush1.bf16.msra.mxu1 %v4373_v53  ;;  %v3269_v53 = vld [vmem:[#allocation16 + $0x270] sm:$0xff] }
0x12e1   :  { %4376 = vmatprep.subr.bf16.mxu1 %v4375_v23  ;;  %v4389_v23 = vpack.c.bf16 %v3269_v53, %v3267_v52  ;;  %v3304_v52 = vld [vmem:[#allocation16 + $0x388] sm:$0xff]  ;;  %v3306_v53 = vld [vmem:[#allocation16 + $0x398] sm:$0xff] }
0x131e   :  { %v2808_v39 = vpop.xlane.xlu0 %2807 }
0x131f   :  { %v2815_v50 = vmul.f32 0.00390625, %v2808_v39  ;;  %v4391_v39 = vpack.c.bf16 %v3274_v6, %v3272_v29  ;;  %v4423_v6 = vpack.c.bf16 %v3306_v53, %v3304_v52 }
0x1320   :  { %v2813_v58 = vpop.xlane.xlu1 %2812 }
0x1321   :  { %v2818_v0 = vadd.f32 1e-05, %v2815_v50  ;;  %v2816_v51 = vmul.f32 0.00390625, %v2813_v58  ;;  %v3271_v50 = vld [vmem:[#allocation16 + $0x280] sm:$0xff]  ;;  %v3273_v58 = vld [vmem:[#allocation16 + $0x290] sm:$0xff] }
0x1323   :  { %4509 = vrsqrt.f32 %v2818_v0  ;;  %v2819_v28 = vadd.f32 1e-05, %v2816_v51  ;;  %v3276_v0 = vld [vmem:[#allocation16 + $0x2a8] sm:$0xff]  ;;  %v3278_v51 = vld [vmem:[#allocation16 + $0x2b8] sm:$0xff] }
0x1325   :  { %4511 = vrsqrt.f32 %v2819_v28  ;;  %v4393_v28 = vpack.c.bf16 %v3273_v58, %v3271_v50  ;;  %v3308_v50 = vld [vmem:[#allocation16 + $0x3a8] sm:$0xff]  ;;  %v3310_v58 = vld [vmem:[#allocation16 + $0x3b8] sm:$0xff] }
0x132d   :  { %v4510_v1 = vpop.eup %4509 }
0x132e   :  { %v2826_v4 = vmul.f32 %v4510_v1, %v5655_v2  ;;  %v2825_v9 = vmul.f32 %v4510_v1, %v5652_v61  ;;  %v4395_v1 = vpack.c.bf16 %v3278_v51, %v3276_v0  ;;  %v4427_v51 = vpack.c.bf16 %v3310_v58, %v3308_v50 }
0x132f   :  { %v4512_v44 = vpop.eup %4511 }
0x1330   :  { %v2843_v15 = vmul.f32 %v5677_v5, %v2826_v4  ;;  %v2842_v11 = vmul.f32 %v5674_v62, %v2825_v9  ;;  %v2828_v17 = vmul.f32 %v4512_v44, %v5661_v10  ;;  %v2827_v8 = vmul.f32 %v4512_v44, %v5658_v3  ;;  %v3275_v4 = vld [vmem:[#allocation16 + $0x2a0] sm:$0xff]  ;;  %v3277_v9 = vld [vmem:[#allocation16 + $0x2b0] sm:$0xff]  ;;  %v3280_v44 = vld [vmem:[#allocation16 + $0x2c8] sm:$0xff] }
0x1331   :  { %v3003_v10 = vsub.s32 2, %v5250_v21 }
0x1332   :  { %v5706_v14 = vadd.f32 %v5684_v37, %v2843_v15  ;;  %v5709_v33 = vadd.f32 %v5681_v27, %v2842_v11  ;;  %v2845_v36 = vmul.f32 %v5677_v5, %v2828_v17  ;;  %v2844_v2 = vmul.f32 %v5674_v62, %v2827_v8  ;;  %v2991_v62 = vld [vmem:[%s5807_s13] sm:$0xf]  ;;  %v3279_v8 = vld [vmem:[#allocation16 + $0x2c0] sm:$0xff] }
0x1333   :  { %v3007_v5 = vsub.s32 3, %v5250_v21  ;;  %v5735_v56 = vrot.slane %v2991_v62, %v3003_v10  ;;  %v3255_v21 = vld [vmem:[#allocation16 + $0x200] sm:$0xff]  ;;  %v3282_v15 = vld [vmem:[#allocation16 + $0x2d8] sm:$0xff]  ;;  %v4397_v11 = vpack.c.bf16 %v3277_v9, %v3275_v4  ;;  %v3312_v4 = vld [vmem:[#allocation16 + $0x3c8] sm:$0xff] }
0x1334   :  { %3083 = vmatprep.mubr.f32.mxu1 %v5706_v14  ;;  %3166 = vmatprep.mubr.f32.mxu0 %v5706_v14  ;;  %v5716_v61 = vadd.f32 %v5684_v37, %v2845_v36  ;;  %v5723_v3 = vadd.f32 %v5681_v27, %v2844_v2  ;;  %v5733_v37 = vrot.slane %v2991_v62, %v5253_v22  ;;  %v3281_v36 = vld [vmem:[#allocation16 + $0x2d0] sm:$0xff]  ;;  %v3284_v2 = vld [vmem:[#allocation16 + $0x2e8] sm:$0xff]  ;;  %v3286_v10 = vld [vmem:[#allocation16 + $0x2f8] sm:$0xff] }
0x1335   :  { %3084 = vmatmul.mubr.f32.gmra.mrb[26].mxu1 %v5709_v33  ;;  %3167 = vmatmul.mubr.f32.gmra.mrb[38].mxu0 %v5709_v33  ;;  %v5738_v27 = vrot.slane %v2991_v62, %v5259_v24  ;;  %v5740_v46 = vrot.slane %v2991_v62, %v3007_v5  ;;  %v4377_v18 = vpack.c.bf16 %v3257_v20, %v3255_v21  ;;  %v3287_v20 = vld [vmem:[#allocation16 + $0x300] sm:$0xff]  ;;  %v3314_v9 = vld [vmem:[#allocation16 + $0x3d8] sm:$0xff] }
0x1336   :  { %3089 = vmatprep.mubr.f32.mxu1 %v5716_v61  ;;  %3172 = vmatprep.mubr.f32.mxu0 %v5716_v61  ;;  %v4399_v17 = vpack.c.bf16 %v3282_v15, %v3280_v44  ;;  %v4401_v62 = vpack.c.bf16 %v3281_v36, %v3279_v8  ;;  %v4403_v5 = vpack.c.bf16 %v3286_v10, %v3284_v2  ;;  %v3316_v8 = vld [vmem:[#allocation16 + $0x3e8] sm:$0xff]  ;;  %v3318_v36 = vld [vmem:[#allocation16 + $0x3f8] sm:$0xff] }
0x1337   :  { %v4431_v15 = vpack.c.bf16 %v3314_v9, %v3312_v4  ;;  %v4435_v10 = vpack.c.bf16 %v3318_v36, %v3316_v8 }
0x1339   :  { %3090 = vmatmul.mubr.f32.gmra.mrb[28].mxu1 %v5723_v3  ;;  %3173 = vmatmul.mubr.f32.gmra.mrb[40].mxu0 %v5723_v3 }
0x1376   :  { %v3079_v60 = vpop.f32.mrb[24].mxu1  ;;  %v3162_v35 = vpop.f32.mrb[36].mxu0 }
0x1377   :  { %v3080_v47 = vadd.f32 %v3079_v60, %v5733_v37  ;;  %v5744_v57 = vadd.f32 %v3162_v35, %v5735_v56  ;;  %v3081_v7 = vpop.f32.mrb[25].mxu1  ;;  %v3164_v38 = vpop.f32.mrb[37].mxu0  ;;  %v3283_v60 = vld [vmem:[#allocation16 + $0x2e0] sm:$0xff]  ;;  %v3285_v35 = vld [vmem:[#allocation16 + $0x2f0] sm:$0xff] }
0x1378   :  { %v3082_v30 = vadd.f32 %v3081_v7, %v5738_v27  ;;  %v5748_v42 = vadd.f32 %v3164_v38, %v5740_v46  ;;  %v3290_v7 = vld [vmem:[#allocation16 + $0x318] sm:$0xff]  ;;  %v4405_v38 = vpack.c.bf16 %v3285_v35, %v3283_v60 }
0x1379   :  { %v3179_v34 = vmax.f32 %v3080_v47, 0.0  ;;  %v3288_v47 = vld [vmem:[#allocation16 + $0x308] sm:$0xff] }
0x137a   :  { %v3180_v49 = vmax.f32 %v3082_v30, 0.0  ;;  %v4407_v21 = vpack.c.bf16 %v3290_v7, %v3288_v47  ;;  %v3289_v30 = vld [vmem:[#allocation16 + $0x310] sm:$0xff]  ;;  %v3182_v16 = vmax.f32 %v5748_v42, 0.0 }
0x137c   :  { %3395 = vmatprep.mubr.f32.mxu1 %v3180_v49  ;;  %v4409_v49 = vpack.c.bf16 %v3289_v30, %v3287_v20 }
0x137d   :  { %3396 = vmatmul.mubr.f32.vlgmr.msra.gmra.mrb[30].mxu1 %v3179_v34  ;;  %v3291_v34 = vld [vmem:[#allocation16 + $0x320] sm:$0xff] }
0x137e   :  { %4378 = vmatpush1.bf16.msra.mxu1 %v4377_v18  ;;  %v4411_v18 = vpack.c.bf16 %v3294_v48, %v3292_v43 }
0x137f   :  { %4380 = vmatprep.subr.bf16.mxu1 %v4379_v54  ;;  %v3293_v54 = vld [vmem:[#allocation16 + $0x330] sm:$0xff] }
0x1380   :  { %v4413_v13 = vpack.c.bf16 %v3293_v54, %v3291_v34 }
0x1382   :  { %4382 = vmatpush1.bf16.msra.mxu1 %v4381_v26  ;;  %v3295_v26 = vld [vmem:[#allocation16 + $0x340] sm:$0xff] }
0x1383   :  { %4384 = vmatprep.subr.bf16.mxu1 %v4383_v32  ;;  %v3297_v32 = vld [vmem:[#allocation16 + $0x350] sm:$0xff] }
0x1384   :  { %v4417_v41 = vpack.c.bf16 %v3297_v32, %v3295_v26 }
0x1386   :  { %4386 = vmatpush1.bf16.msra.mxu1 %v4385_v45  ;;  %v3299_v45 = vld [vmem:[#allocation16 + $0x360] sm:$0xff] }
0x1387   :  { %4388 = vmatprep.subr.bf16.mxu1 %v4387_v31  ;;  %v3301_v31 = vld [vmem:[#allocation16 + $0x370] sm:$0xff] }
0x1388   :  { %v4421_v29 = vpack.c.bf16 %v3301_v31, %v3299_v45 }
0x138a   :  { %4390 = vmatpush1.bf16.msra.mxu1 %v4389_v23  ;;  %v3303_v23 = vld [vmem:[#allocation16 + $0x380] sm:$0xff] }
0x138b   :  { %4392 = vmatprep.subr.bf16.mxu1 %v4391_v39  ;;  %v3305_v39 = vld [vmem:[#allocation16 + $0x390] sm:$0xff] }
0x138c   :  { %v4425_v0 = vpack.c.bf16 %v3305_v39, %v3303_v23 }
0x138e   :  { %4394 = vmatpush1.bf16.msra.mxu1 %v4393_v28  ;;  %v3307_v28 = vld [vmem:[#allocation16 + $0x3a0] sm:$0xff] }
0x138f   :  { %4396 = vmatprep.subr.bf16.mxu1 %v4395_v1  ;;  %v3309_v1 = vld [vmem:[#allocation16 + $0x3b0] sm:$0xff] }
0x1390   :  { %v4429_v44 = vpack.c.bf16 %v3309_v1, %v3307_v28 }
0x1392   :  { %4398 = vmatpush1.bf16.msra.mxu1 %v4397_v11  ;;  %v3311_v11 = vld [vmem:[#allocation16 + $0x3c0] sm:$0xff] }
0x1393   :  { %4400 = vmatprep.subr.bf16.mxu1 %v4399_v17  ;;  %v3313_v17 = vld [vmem:[#allocation16 + $0x3d0] sm:$0xff] }
0x1394   :  { %v4433_v2 = vpack.c.bf16 %v3313_v17, %v3311_v11 }
0x1396   :  { %4402 = vmatpush1.bf16.msra.mxu1 %v4401_v62  ;;  %v3315_v62 = vld [vmem:[#allocation16 + $0x3e0] sm:$0xff] }
0x1397   :  { %4404 = vmatprep.subr.bf16.mxu1 %v4403_v5  ;;  %v3317_v5 = vld [vmem:[#allocation16 + $0x3f0] sm:$0xff] }
0x1398   :  { %v4437_v60 = vpack.c.bf16 %v3317_v5, %v3315_v62 }
0x139a   :  { %4406 = vmatpush1.bf16.msra.mxu1 %v4405_v38 }
0x139b   :  { %4408 = vmatprep.subr.bf16.mxu1 %v4407_v21 }
0x139e   :  { %4410 = vmatpush1.bf16.msra.mxu1 %v4409_v49 }
0x139f   :  { %4412 = vmatprep.subr.bf16.mxu1 %v4411_v18 }
0x13a2   :  { %4414 = vmatpush1.bf16.msra.mxu1 %v4413_v13 }
0x13a3   :  { %4416 = vmatprep.subr.bf16.mxu1 %v4415_v25 }
0x13a6   :  { %4418 = vmatpush1.bf16.msra.mxu1 %v4417_v41  ;;  %v3181_v41 = vmax.f32 %v5744_v57, 0.0 }
0x13a7   :  { %4420 = vmatprep.subr.bf16.mxu1 %v4419_v40 }
0x13aa   :  { %4422 = vmatpush1.bf16.msra.mxu1 %v4421_v29 }
0x13ab   :  { %4424 = vmatprep.subr.bf16.mxu1 %v4423_v6 }
0x13ae   :  { %4426 = vmatpush1.bf16.msra.mxu1 %v4425_v0 }
0x13af   :  { %4428 = vmatprep.subr.bf16.mxu1 %v4427_v51 }
0x13b2   :  { %4430 = vmatpush1.bf16.msra.mxu1 %v4429_v44 }
0x13b3   :  { %4432 = vmatprep.subr.bf16.mxu1 %v4431_v15 }
0x13b6   :  { %4434 = vmatpush1.bf16.msra.mxu1 %v4433_v2 }
0x13b7   :  { %4436 = vmatprep.subr.bf16.mxu1 %v4435_v10 }
0x13ba   :  { %4438 = vmatpush1.bf16.msra.mxu1 %v4437_v60 }
0x1408   :  { %v3085_v35 = vpop.f32.mrb[26].mxu1  ;;  %v3168_v47 = vpop.f32.mrb[38].mxu0 }
0x1409   :  { %v3086_v7 = vadd.f32 %v3085_v35, %v5733_v37  ;;  %v3169_v38 = vadd.f32 %v3168_v47, %v5735_v56  ;;  %v3087_v21 = vpop.f32.mrb[27].mxu1  ;;  %v3170_v20 = vpop.f32.mrb[39].mxu0 }
0x140a   :  { %v3088_v30 = vadd.f32 %v3087_v21, %v5738_v27  ;;  %v3171_v43 = vadd.f32 %v3170_v20, %v5740_v46 }
0x140b   :  { %v3183_v34 = vmax.f32 %v3086_v7, 0.0 }
0x140c   :  { %v3184_v48 = vmax.f32 %v3088_v30, 0.0  ;;  %v3091_v49 = vpop.f32.mrb[28].mxu1  ;;  %v3174_v18 = vpop.f32.mrb[40].mxu0 }
0x140d   :  { %v3092_v54 = vadd.f32 %v3091_v49, %v5733_v37  ;;  %v3175_v55 = vadd.f32 %v3174_v18, %v5735_v56  ;;  %v3093_v59 = vpop.f32.mrb[29].mxu1  ;;  %v3176_v13 = vpop.f32.mrb[41].mxu0  ;;  %v3186_v37 = vmax.f32 %v3171_v43, 0.0  ;;  %v3185_v56 = vmax.f32 %v3169_v38, 0.0 }
0x140e   :  { %v3094_v25 = vadd.f32 %v3093_v59, %v5738_v27  ;;  %v3177_v26 = vadd.f32 %v3176_v13, %v5740_v46  ;;  %3401 = vmatprep.mubr.f32.mxu1 %v3184_v48  ;;  %v3319_v46 = vld [vmem:[#allocation17] sm:$0x3] }
0x140f   :  { %3402 = vmatmul.mubr.f32.gmra.mrb[32].mxu1 %v3183_v34  ;;  %v3187_v63 = vmax.f32 %v3092_v54, 0.0  ;;  %v3189_v27 = vmax.f32 %v3175_v55, 0.0  ;;  %v3324_v45 = vrot.slane %v3319_v46, %v5253_v22  ;;  %v3328_v31 = vrot.slane %v3319_v46, %v5259_v24 }
0x1410   :  { %v3188_v32 = vmax.f32 %v3094_v25, 0.0  ;;  %v3190_v40 = vmax.f32 %v3177_v26, 0.0  ;;  %v3503_v26 = vld [vmem:[#allocation19] sm:$0x3] }
0x1412   :  { %3407 = vmatprep.mubr.f32.mxu1 %v3188_v32 }
0x1413   :  { %3408 = vmatmul.mubr.f32.gmra.mrb[34].mxu1 %v3187_v63  ;;  %v3504_v63 = vld [vmem:[#allocation20] sm:$0x3] }
0x1414   :  { %3478 = vmatprep.mubr.f32.mxu1 %v3182_v16  ;;  %v3578_v46 = vrot.slane %v3504_v63, %v5253_v22 }
0x1417   :  { %3479 = vmatmul.mubr.f32.vlgmr.msra.gmra.mrb[30].mxu1 %v3181_v41 }
0x1418   :  { %3484 = vmatprep.mubr.f32.mxu1 %v3186_v37  ;;  %v3561_v37 = vrot.slane %v3503_v26, %v5253_v22 }
0x141b   :  { %3485 = vmatmul.mubr.f32.gmra.mrb[32].mxu1 %v3185_v56  ;;  %v3565_v56 = vrot.slane %v3503_v26, %v5259_v24 }
0x141c   :  { %3490 = vmatprep.mubr.f32.mxu1 %v3190_v40 }
0x141f   :  { %3491 = vmatmul.mubr.f32.gmra.mrb[34].mxu1 %v3189_v27 }
0x14ea   :  { %v3480_v42 = vpop.f32.mrb[30].mxu1 }
0x14eb   :  { %v4441_v52 = vadd.f32 %v3480_v42, %v3324_v45  ;;  %v3482_v53 = vpop.f32.mrb[31].mxu1 }
0x14ec   :  { %v4442_v29 = vadd.f32 %v3482_v53, %v3328_v31 }
0x14ed   :  { %v3497_v57 = vadd.f32 %v4441_v52, %v5693_v12 }
0x14ee   :  { %v3498_v6 = vadd.f32 %v4442_v29, %v5690_v19  ;;  %v3486_v23 = vpop.f32.mrb[32].mxu1 }
0x14ef   :  { %v3488_v39 = vpop.f32.mrb[33].mxu1  ;;  %v4443_v1 = vadd.f32 %v3486_v23, %v3324_v45 }
0x14f0   :  { %v3505_v50 = vadd.f32 %v3498_v6, %v3497_v57  ;;  %v4444_v4 = vadd.f32 %v3488_v39, %v3328_v31 }
0x14f1   :  { %v3499_v19 = vadd.f32 %v4443_v1, %v5709_v33 }
0x14f2   :  { %v3492_v58 = vpop.f32.mrb[34].mxu1  ;;  %3506 = vadd.xlane.f32.xlu1 %v3505_v50  ;;  %v3500_v11 = vadd.f32 %v4444_v4, %v5706_v14 }
0x14f3   :  { %v4445_v0 = vadd.f32 %v3492_v58, %v3324_v45  ;;  %v3494_v51 = vpop.f32.mrb[35].mxu1  ;;  %v3582_v45 = vrot.slane %v3504_v63, %v5259_v24 }
0x14f4   :  { %v4446_v28 = vadd.f32 %v3494_v51, %v3328_v31  ;;  %v3508_v8 = vadd.f32 %v3500_v11, %v3499_v19 }
0x14f5   :  { %v3501_v9 = vadd.f32 %v4445_v0, %v5723_v3 }
0x14f6   :  { %v3502_v44 = vadd.f32 %v4446_v28, %v5716_v61 }
0x14f7   :  { %v3511_v15 = vsel %vm2781_vm6, %v3501_v9, 0.0 }
0x14f8   :  { %v3512_v12 = vsel %vm2781_vm6, %v3502_v44, 0.0 }
0x14f9   :  { %v3513_v17 = vadd.f32 %v3512_v12, %v3511_v15 }
0x14fb   :  { %3514 = vadd.xlane.f32.xlu0 %v3513_v17 }
0x14ff   :  { %3509 = vadd.xlane.f32.xlu0 %v3508_v8 }
0x157f   :  { %v3507_v36 = vpop.xlane.xlu1 %3506 }
0x1580   :  { %v3516_v2 = vmul.f32 0.00390625, %v3507_v36 }
0x1582   :  { %v3519_v10 = vsub.f32 %v3497_v57, %v3516_v2  ;;  %v3520_v62 = vsub.f32 %v3498_v6, %v3516_v2 }
0x1584   :  { %v3525_v5 = vmul.f32 %v3519_v10, %v3519_v10  ;;  %v3526_v3 = vmul.f32 %v3520_v62, %v3520_v62 }
0x1586   :  { %v3531_v60 = vadd.f32 %v3526_v3, %v3525_v5 }
0x1588   :  { %v3515_v61 = vpop.xlane.xlu0 %3514  ;;  %3532 = vadd.xlane.f32.xlu1 %v3531_v60 }
0x1589   :  { %v3518_v35 = vmul.f32 0.00390625, %v3515_v61 }
0x158b   :  { %v3523_v47 = vsub.f32 %v3501_v9, %v3518_v35  ;;  %v3524_v7 = vsub.f32 %v3502_v44, %v3518_v35 }
0x158c   :  { %v3510_v38 = vpop.xlane.xlu0 %3509 }
0x158d   :  { %v3517_v33 = vmul.f32 0.00390625, %v3510_v38  ;;  %v3529_v21 = vmul.f32 %v3523_v47, %v3523_v47  ;;  %v3530_v14 = vmul.f32 %v3524_v7, %v3524_v7 }
0x158f   :  { %v3521_v20 = vsub.f32 %v3499_v19, %v3517_v33  ;;  %v3522_v30 = vsub.f32 %v3500_v11, %v3517_v33  ;;  %v3537_v43 = vsel %vm2781_vm6, %v3529_v21, 0.0  ;;  %v3538_v48 = vsel %vm2781_vm6, %v3530_v14, 0.0 }
0x1590   :  { %v3539_v49 = vadd.f32 %v3538_v48, %v3537_v43 }
0x1591   :  { %v3527_v18 = vmul.f32 %v3521_v20, %v3521_v20  ;;  %v3528_v34 = vmul.f32 %v3522_v30, %v3522_v30 }
0x1592   :  { %3540 = vadd.xlane.f32.xlu1 %v3539_v49 }
0x1593   :  { %v3534_v54 = vadd.f32 %v3528_v34, %v3527_v18 }
0x1595   :  { %3535 = vadd.xlane.f32.xlu0 %v3534_v54 }
0x1615   :  { %v3533_v55 = vpop.xlane.xlu1 %3532 }
0x1616   :  { %v3542_v59 = vmul.f32 0.00390625, %v3533_v55 }
0x1618   :  { %v3545_v13 = vadd.f32 1e-05, %v3542_v59 }
0x161a   :  { %4513 = vrsqrt.f32 %v3545_v13 }
0x161f   :  { %v3541_v25 = vpop.xlane.xlu1 %3540 }
0x1620   :  { %v3544_v32 = vmul.f32 0.00390625, %v3541_v25 }
0x1622   :  { %v3547_v16 = vadd.f32 1e-05, %v3544_v32  ;;  %v3536_v41 = vpop.xlane.xlu0 %3535 }
0x1623   :  { %v3543_v40 = vmul.f32 0.00390625, %v3536_v41 }
0x1624   :  { %v4514_v27 = vpop.eup %4513  ;;  %4515 = vrsqrt.f32 %v3547_v16 }
0x1625   :  { %v3551_v31 = vmul.f32 %v4514_v27, %v3519_v10  ;;  %v3552_v42 = vmul.f32 %v4514_v27, %v3520_v62  ;;  %v3546_v52 = vadd.f32 1e-05, %v3543_v40 }
0x1627   :  { %v3568_v53 = vmul.f32 %v3561_v37, %v3551_v31  ;;  %v3569_v29 = vmul.f32 %v3565_v56, %v3552_v42  ;;  %4517 = vrsqrt.f32 %v3546_v52 }
0x1629   :  { %v3585_v57 = vadd.f32 %v3578_v46, %v3568_v53  ;;  %v3586_v6 = vadd.f32 %v3582_v45, %v3569_v29 }
0x162b   :  { %3591 = vst [vmem:[%s5812_s18] sm:$0xff] %v3585_v57  ;;  %3592 = vst [vmem:[%s5812_s18 + $0x8] sm:$0xff] %v3586_v6 }
0x162e   :  { %v4516_v22 = vpop.eup %4515 }
0x162f   :  { %v3555_v23 = vmul.f32 %v4516_v22, %v3523_v47  ;;  %v3556_v39 = vmul.f32 %v4516_v22, %v3524_v7 }
0x1631   :  { %v4518_v24 = vpop.eup %4517  ;;  %v3572_v50 = vmul.f32 %v3561_v37, %v3555_v23  ;;  %v3573_v58 = vmul.f32 %v3565_v56, %v3556_v39 }
0x1632   :  { %v3553_v0 = vmul.f32 %v4518_v24, %v3521_v20  ;;  %v3554_v51 = vmul.f32 %v4518_v24, %v3522_v30 }
0x1633   :  { %v3589_v28 = vadd.f32 %v3578_v46, %v3572_v50  ;;  %v3590_v1 = vadd.f32 %v3582_v45, %v3573_v58 }
0x1634   :  { %v3570_v4 = vmul.f32 %v3561_v37, %v3553_v0  ;;  %v3571_v9 = vmul.f32 %v3565_v56, %v3554_v51 }
0x1635   :  { %3595 = vst [vmem:[%s5812_s18 + $0x20] sm:$0xf] %v3589_v28  ;;  %3596 = vst [vmem:[%s5812_s18 + $0x28] sm:$0xf] %v3590_v1 }
0x1636   :  { %v3587_v44 = vadd.f32 %v3578_v46, %v3570_v4  ;;  %v3588_v15 = vadd.f32 %v3582_v45, %v3571_v9 }
0x1638   :  { %3593 = vst [vmem:[%s5812_s18 + $0x10] sm:$0xff] %v3587_v44  ;;  %3594 = vst [vmem:[%s5812_s18 + $0x18] sm:$0xff] %v3588_v15 }
0x1639   :  { %3601 = vsyncpa [#allocation7], 1 }
0x163a   :  { %3602 = vsyncpa [#allocation9], 1 }
0x163b   :  { %3603 = vsyncpa [#allocation12], 1 }
0x163c   :  { %3604 = vsyncpa [#allocation15], 1 }
0x163d   :  { %3605 = vsyncpa [#allocation18], 1 }
0x163e   :  { %3606 = vsyncpa [#allocation21], 1 }

</bundles_post_ra>
